<compile_context>
chip_gen: v6e
topology: v6e:2x2x1
jax: 0.10.0
libtpu: 0.0.40
codegen_flags: <defaults>
</compile_context>

<pallas_src>
import jax
import jax.numpy as jnp
from jax.experimental import pallas as pl
from jax.experimental.pallas import tpu as pltpu


# ---------------------------------------------------------------------------
# Conv (+ folded BN + ReLU + optional residual add) as a Pallas matmul kernel
# ---------------------------------------------------------------------------

def _make_conv_kernel(relu, with_add):
    def kernel(*refs):
        if with_add:
            p_ref, w_ref, s_ref, b_ref, add_ref, o_ref = refs
        else:
            p_ref, w_ref, s_ref, b_ref, o_ref = refs
        patches = p_ref[0]                                   # (K*K*Cin, HW)
        acc = jnp.dot(w_ref[...], patches,
                      preferred_element_type=jnp.float32)    # (Cout, HW)
        out = acc * s_ref[...] + b_ref[...]                  # folded BN (+ conv bias)
        if relu:
            out = jnp.maximum(out, 0.0)
        if with_add:
            out = out + add_ref[0].astype(jnp.float32)       # post-activation residual
        o_ref[0] = out.astype(o_ref.dtype)
    return kernel


def conv_bn_act(x, w, scale, bias, *, K=1, dil=1, relu=True, add=None):
    """x: (B, Cin, H, W), w: (Cout, Cin, K, K) [torch OIHW layout].

    Computes relu(scale * conv(x) + bias) (+ add), stride 1, 'same' padding,
    dilation `dil`.  BatchNorm / conv-bias must already be folded into
    (scale, bias)."""
    B, Cin, H, W = x.shape
    Cout = w.shape[0]
    HW = H * W
    assert HW % 128 == 0, "spatial axis must be lane-dense (multiple of 128)"

    if K == 1:
        patches = x.reshape(B, Cin, HW)
        w2 = w.reshape(Cout, Cin)
    else:
        pad = dil * (K - 1) // 2
        xp = jnp.pad(x, ((0, 0), (0, 0), (pad, pad), (pad, pad)))
        taps = [xp[:, :, kh * dil:kh * dil + H, kw * dil:kw * dil + W]
                for kh in range(K) for kw in range(K)]
        # contraction index order = (kh, kw, cin)
        patches = jnp.stack(taps, axis=1).reshape(B, K * K * Cin, HW)
        w2 = jnp.transpose(w, (0, 2, 3, 1)).reshape(Cout, K * K * Cin)

    CK = patches.shape[1]
    scale2 = scale.reshape(Cout, 1).astype(jnp.float32)
    bias2 = bias.reshape(Cout, 1).astype(jnp.float32)

    in_specs = [
        pl.BlockSpec((1, CK, HW), lambda b: (b, 0, 0)),      # patches (per batch)
        pl.BlockSpec((Cout, CK), lambda b: (0, 0)),          # weight
        pl.BlockSpec((Cout, 1), lambda b: (0, 0)),           # folded BN scale
        pl.BlockSpec((Cout, 1), lambda b: (0, 0)),           # folded BN bias
    ]
    args = [patches, w2, scale2, bias2]
    if add is not None:
        in_specs.append(pl.BlockSpec((1, Cout, HW), lambda b: (b, 0, 0)))
        args.append(add.reshape(B, Cout, HW))

    out = pl.pallas_call(
        _make_conv_kernel(relu, add is not None),
        out_shape=jax.ShapeDtypeStruct((B, Cout, HW), x.dtype),
        grid_spec=pltpu.PrefetchScalarGridSpec(
            num_scalar_prefetch=0,
            grid=(B,),
            in_specs=in_specs,
            out_specs=pl.BlockSpec((1, Cout, HW), lambda b: (b, 0, 0)),
        ),
        compiler_params=pltpu.CompilerParams(
            dimension_semantics=("parallel",),
        ),
        cost_estimate=pl.CostEstimate(
            flops=2 * B * Cout * CK * HW,
            transcendentals=0,
            bytes_accessed=4 * B * (CK * HW + 2 * Cout * HW) + 4 * Cout * CK,
        ),
    )(*args)
    return out.reshape(B, Cout, H, W)


# ---------------------------------------------------------------------------
# Sigmoid foreground / background split:  fg = x*sigmoid(m), bg = x*(1-sigmoid(m))
# ---------------------------------------------------------------------------

def _mask_split_kernel(x_ref, m_ref, fg_ref, bg_ref):
    x = x_ref[0].astype(jnp.float32)                 # (C, HW)
    m = m_ref[0].astype(jnp.float32)                 # (1, HW)
    s = 1.0 / (1.0 + jnp.exp(-m))                    # sigmoid (EUP exp)
    fg_ref[0] = (x * s).astype(fg_ref.dtype)
    bg_ref[0] = (x * (1.0 - s)).astype(bg_ref.dtype)


def mask_split(x, m):
    B, C, H, W = x.shape
    HW = H * W
    fg, bg = pl.pallas_call(
        _mask_split_kernel,
        out_shape=(jax.ShapeDtypeStruct((B, C, HW), x.dtype),
                   jax.ShapeDtypeStruct((B, C, HW), x.dtype)),
        grid_spec=pltpu.PrefetchScalarGridSpec(
            num_scalar_prefetch=0,
            grid=(B,),
            in_specs=[pl.BlockSpec((1, C, HW), lambda b: (b, 0, 0)),
                      pl.BlockSpec((1, 1, HW), lambda b: (b, 0, 0))],
            out_specs=(pl.BlockSpec((1, C, HW), lambda b: (b, 0, 0)),
                       pl.BlockSpec((1, C, HW), lambda b: (b, 0, 0))),
        ),
        compiler_params=pltpu.CompilerParams(dimension_semantics=("parallel",)),
    )(x.reshape(B, C, HW), m.reshape(B, 1, HW))
    return fg.reshape(B, C, H, W), bg.reshape(B, C, H, W)


# ---------------------------------------------------------------------------
# Fused refinement:  refine2 = relu(bn2(relu(bn1(y - alpha*fp)) + beta*fn))
# ---------------------------------------------------------------------------

def _refine_kernel(alpha_ref, beta_ref, y_ref, fp_ref, fn_ref,
                   s1_ref, b1_ref, s2_ref, b2_ref, o_ref):
    alpha = alpha_ref[0]
    beta = beta_ref[0]
    y = y_ref[0].astype(jnp.float32)
    fp = fp_ref[0].astype(jnp.float32)
    fn = fn_ref[0].astype(jnp.float32)
    r1 = jnp.maximum(s1_ref[...] * (y - alpha * fp) + b1_ref[...], 0.0)
    r2 = jnp.maximum(s2_ref[...] * (r1 + beta * fn) + b2_ref[...], 0.0)
    o_ref[0] = r2.astype(o_ref.dtype)


def refine_fuse(y, fp, fn, alpha, beta, s1, b1, s2, b2):
    B, C, H, W = y.shape
    HW = H * W
    chan_spec = pl.BlockSpec((C, 1), lambda b: (0, 0))
    big_spec = pl.BlockSpec((1, C, HW), lambda b: (b, 0, 0))
    out = pl.pallas_call(
        _refine_kernel,
        out_shape=jax.ShapeDtypeStruct((B, C, HW), y.dtype),
        grid_spec=pltpu.PrefetchScalarGridSpec(
            num_scalar_prefetch=0,
            grid=(B,),
            in_specs=[
                pl.BlockSpec(memory_space=pltpu.SMEM),   # alpha (1,)
                pl.BlockSpec(memory_space=pltpu.SMEM),   # beta  (1,)
                big_spec, big_spec, big_spec,            # y, fp, fn
                chan_spec, chan_spec, chan_spec, chan_spec,   # bn1/bn2 scale,bias
            ],
            out_specs=big_spec,
        ),
        compiler_params=pltpu.CompilerParams(dimension_semantics=("parallel",)),
    )(alpha, beta,
      y.reshape(B, C, HW), fp.reshape(B, C, HW), fn.reshape(B, C, HW),
      s1.reshape(C, 1), b1.reshape(C, 1), s2.reshape(C, 1), b2.reshape(C, 1))
    return out.reshape(B, C, H, W)


# ---------------------------------------------------------------------------
# Context_Exploration_Block / Focus wiring (shared between Pallas and reference)
# ---------------------------------------------------------------------------

CE_LAYERS = [
    ("p1_channel_reduction", "C", "Cs", 1, 1),
    ("p2_channel_reduction", "C", "Cs", 1, 1),
    ("p3_channel_reduction", "C", "Cs", 1, 1),
    ("p4_channel_reduction", "C", "Cs", 1, 1),
    ("p1",    "Cs", "Cs", 1, 1),
    ("p1_dc", "Cs", "Cs", 3, 1),
    ("p2",    "Cs", "Cs", 3, 1),
    ("p2_dc", "Cs", "Cs", 3, 2),
    ("p3",    "Cs", "Cs", 5, 1),
    ("p3_dc", "Cs", "Cs", 3, 4),
    ("p4",    "Cs", "Cs", 7, 1),
    ("p4_dc", "Cs", "Cs", 3, 8),
    ("fusion", "C", "C", 1, 1),
]


def ce_block(x, cp, conv_fn):
    def c(name, inp, add=None):
        lp = cp[name]
        return conv_fn(inp, lp["w"], lp["scale"], lp["bias"],
                       K=lp["K"], dil=lp["dil"], relu=True, add=add)
    p1_input = c("p1_channel_reduction", x)
    p1 = c("p1", p1_input)
    p1_dc = c("p1_dc", p1)
    p2_input = c("p2_channel_reduction", x, add=p1_dc)
    p2 = c("p2", p2_input)
    p2_dc = c("p2_dc", p2)
    p3_input = c("p3_channel_reduction", x, add=p2_dc)
    p3 = c("p3", p3_input)
    p3_dc = c("p3_dc", p3)
    p4_input = c("p4_channel_reduction", x, add=p3_dc)
    p4 = c("p4", p4_input)
    p4_dc = c("p4_dc", p4)
    return c("fusion", jnp.concatenate([p1_dc, p2_dc, p3_dc, p4_dc], axis=1))


def focus_forward(params, x, in_map, y=None):
    """Pallas implementation of Focus.forward (do_up=False)."""
    if y is None:
        y = x
    C = x.shape[1]
    fg, bg = mask_split(x, in_map)                          # sigmoid split (Pallas)
    fp = ce_block(fg, params["fp"], conv_bn_act)            # Context_Exploration_Block
    fn = ce_block(bg, params["fn"], conv_bn_act)
    refine2 = refine_fuse(
        y, fp, fn, params["alpha"], params["beta"],
        params["bn1"]["scale"], params["bn1"]["bias"],
        params["bn2"]["scale"], params["bn2"]["bias"])
    om = params["output_map"]
    output_map = conv_bn_act(refine2, om["w"], om["scale"], om["bias"],
                             K=om["K"], dil=om["dil"], relu=False)
    sh = params["segment_head"]
    segment_out = conv_bn_act(refine2, sh["w"], sh["scale"], sh["bias"],
                              K=sh["K"], dil=sh["dil"], relu=False)
    return segment_out, refine2, output_map


# ---------------------------------------------------------------------------
# Pure-JAX reference (lax.conv_general_dilated) mirroring the PyTorch forward
# ---------------------------------------------------------------------------

def conv_bn_act_ref(x, w, scale, bias, *, K=1, dil=1, relu=True, add=None):
    pad = dil * (K - 1) // 2
    out = jax.lax.conv_general_dilated(
        x, w, window_strides=(1, 1), padding=[(pad, pad), (pad, pad)],
        rhs_dilation=(dil, dil), dimension_numbers=("NCHW", "OIHW", "NCHW"),
        precision=jax.lax.Precision.HIGHEST)
    out = out * scale.reshape(1, -1, 1, 1) + bias.reshape(1, -1, 1, 1)
    if relu:
        out = jnp.maximum(out, 0.0)
    if add is not None:
        out = out + add
    return out


def focus_forward_ref(params, x, in_map, y=None):
    if y is None:
        y = x
    C = x.shape[1]
    s = jax.nn.sigmoid(in_map)
    fp = ce_block(x * s, params["fp"], conv_bn_act_ref)
    fn = ce_block(x * (1.0 - s), params["fn"], conv_bn_act_ref)
    s1 = params["bn1"]["scale"].reshape(1, C, 1, 1)
    b1 = params["bn1"]["bias"].reshape(1, C, 1, 1)
    s2 = params["bn2"]["scale"].reshape(1, C, 1, 1)
    b2 = params["bn2"]["bias"].reshape(1, C, 1, 1)
    r1 = jnp.maximum(s1 * (y - params["alpha"][0] * fp) + b1, 0.0)
    refine2 = jnp.maximum(s2 * (r1 + params["beta"][0] * fn) + b2, 0.0)
    om = params["output_map"]
    output_map = conv_bn_act_ref(refine2, om["w"], om["scale"], om["bias"],
                                 K=om["K"], dil=om["dil"], relu=False)
    sh = params["segment_head"]
    segment_out = conv_bn_act_ref(refine2, sh["w"], sh["scale"], sh["bias"],
                                  K=sh["K"], dil=sh["dil"], relu=False)
    return segment_out, refine2, output_map


# ---------------------------------------------------------------------------
# Deterministic parameter construction (BN folded into per-channel scale/bias)
# ---------------------------------------------------------------------------

def _make_conv_bn_params(key, cin, cout, k, dil):
    kw, kb, kg, kbe, km, kv = jax.random.split(key, 6)
    fan_in = cin * k * k
    w = jax.random.normal(kw, (cout, cin, k, k), jnp.float32) / jnp.sqrt(fan_in)
    b = 0.1 * jax.random.normal(kb, (cout,), jnp.float32)
    gamma = 1.0 + 0.1 * jax.random.normal(kg, (cout,), jnp.float32)
    beta = 0.1 * jax.random.normal(kbe, (cout,), jnp.float32)
    mean = 0.1 * jax.random.normal(km, (cout,), jnp.float32)
    var = 1.0 + 0.1 * jnp.abs(jax.random.normal(kv, (cout,), jnp.float32))
    inv = gamma / jnp.sqrt(var + 1e-5)
    # bn(conv(x)+b) == inv*conv(x) + (inv*(b-mean)+beta)
    return {"w": w, "scale": inv, "bias": beta + inv * (b - mean), "K": k, "dil": dil}


def _make_conv_params(key, cin, cout, k, dil=1):
    kw, kb = jax.random.split(key)
    fan_in = cin * k * k
    w = jax.random.normal(kw, (cout, cin, k, k), jnp.float32) / jnp.sqrt(fan_in)
    b = 0.1 * jax.random.normal(kb, (cout,), jnp.float32)
    return {"w": w, "scale": jnp.ones((cout,), jnp.float32), "bias": b, "K": k, "dil": dil}


def _make_ce_params(key, C):
    dims = {"C": C, "Cs": C // 4}
    keys = jax.random.split(key, len(CE_LAYERS))
    return {name: _make_conv_bn_params(k, dims[ci], dims[co], K, d)
            for k, (name, ci, co, K, d) in zip(keys, CE_LAYERS)}


def _make_bn_params(key, C):
    kg, kb, km, kv = jax.random.split(key, 4)
    gamma = 1.0 + 0.1 * jax.random.normal(kg, (C,), jnp.float32)
    beta = 0.1 * jax.random.normal(kb, (C,), jnp.float32)
    mean = 0.1 * jax.random.normal(km, (C,), jnp.float32)
    var = 1.0 + 0.1 * jnp.abs(jax.random.normal(kv, (C,), jnp.float32))
    inv = gamma / jnp.sqrt(var + 1e-5)
    return {"scale": inv, "bias": beta - inv * mean}


def make_focus_params(key, C, n_classes):
    k1, k2, k3, k4, k5, k6 = jax.random.split(key, 6)
    return {
        "fp": _make_ce_params(k1, C),
        "fn": _make_ce_params(k2, C),
        "alpha": jnp.ones((1,), jnp.float32),      # nn.Parameter(torch.ones(1))
        "beta": jnp.ones((1,), jnp.float32),
        "bn1": _make_bn_params(k3, C),
        "bn2": _make_bn_params(k4, C),
        "output_map": _make_conv_params(k5, C, 1, 7),
        "segment_head": _make_conv_params(k6, C, n_classes, 1),
    }


# ---------------------------------------------------------------------------

if __name__ == "__main__":
    key = jax.random.PRNGKey(0)
    B, C, H, W = 2, 16, 16, 16          # channel1 == channel2 == 16
    n_classes = 3
    kx, km, kp = jax.random.split(key, 3)
    x = jax.random.normal(kx, (B, C, H, W), dtype=jnp.float32)
    in_map = jax.random.normal(km, (B, 1, H, W), dtype=jnp.float32)
    params = make_focus_params(kp, C, n_classes)

    fwd = jax.jit(lambda xx, mm: focus_forward(params, xx, mm, y=None))
    seg, ref2, omap = fwd(x, in_map)
    (seg, ref2, omap) = jax.block_until_ready((seg, ref2, omap))

    seg_r, ref2_r, omap_r = jax.jit(
        lambda xx, mm: focus_forward_ref(params, xx, mm, y=None))(x, in_map)

    assert seg.shape == (B, n_classes, H, W)
    assert ref2.shape == (B, C, H, W)
    assert omap.shape == (B, 1, H, W)
    for a, b, name in ((seg, seg_r, "segment_out"),
                       (ref2, ref2_r, "refine2"),
                       (omap, omap_r, "output_map")):
        assert jnp.allclose(a, b, atol=2e-2, rtol=2e-2), f"mismatch vs reference: {name}"

    print("KERNEL_OK")
</pallas_src>

<mosaic_0001>
module attributes {stable_mosaic.version = 11 : i64} {
  func.func @kernel(%arg0: i32, %arg1: memref<1x16x256xf32, #tpu.memory_space<vmem>>, %arg2: memref<4x16xf32, #tpu.memory_space<vmem>>, %arg3: memref<4x1xf32, #tpu.memory_space<vmem>>, %arg4: memref<4x1xf32, #tpu.memory_space<vmem>>, %arg5: memref<1x4x256xf32, #tpu.memory_space<vmem>>) attributes {dimension_semantics = [#tpu.dimension_semantics<parallel>], iteration_bounds = array<i64: 2>, scalar_prefetch = 0 : i64, scratch_operands = 0 : i64, tpu.core_type = #tpu.core_type<tc>, window_params = [{transform_indices = @transform_0, window_bounds = array<i64: 1, 16, 256>}, {pipeline_mode = #tpu.pipeline_mode<synchronous>, transform_indices = @transform_1, window_bounds = array<i64: 4, 16>}, {pipeline_mode = #tpu.pipeline_mode<synchronous>, transform_indices = @transform_2, window_bounds = array<i64: 4, 1>}, {pipeline_mode = #tpu.pipeline_mode<synchronous>, transform_indices = @transform_3, window_bounds = array<i64: 4, 1>}, {transform_indices = @transform_4, window_bounds = array<i64: 1, 4, 256>}]} {
    %c0 = arith.constant 0 : index
    %c0_0 = arith.constant 0 : index
    %c0_1 = arith.constant 0 : index
    %0 = vector.load %arg1[%c0, %c0_0, %c0_1] : memref<1x16x256xf32, #tpu.memory_space<vmem>>, vector<1x16x256xf32>
    %1 = vector.shape_cast %0 : vector<1x16x256xf32> to vector<16x256xf32>
    %c0_2 = arith.constant 0 : index
    %c0_3 = arith.constant 0 : index
    %2 = vector.load %arg2[%c0_2, %c0_3] : memref<4x16xf32, #tpu.memory_space<vmem>>, vector<4x16xf32>
    %cst = arith.constant dense<0.000000e+00> : vector<4x256xf32>
    %3 = tpu.matmul %2, %1, %cst {dimension_numbers = #tpu.dot_dimension_numbers<[1], [0], [0], [1], [0, 0, 1, 1], [], []>} : vector<4x16xf32>, vector<16x256xf32>, vector<4x256xf32> -> vector<4x256xf32>
    %c0_4 = arith.constant 0 : index
    %c0_5 = arith.constant 0 : index
    %4 = vector.load %arg3[%c0_4, %c0_5] : memref<4x1xf32, #tpu.memory_space<vmem>>, vector<4x1xf32>
    %5 = vector.broadcast %4 : vector<4x1xf32> to vector<4x256xf32>
    %6 = arith.mulf %3, %5 : vector<4x256xf32>
    %c0_6 = arith.constant 0 : index
    %c0_7 = arith.constant 0 : index
    %7 = vector.load %arg4[%c0_6, %c0_7] : memref<4x1xf32, #tpu.memory_space<vmem>>, vector<4x1xf32>
    %8 = vector.broadcast %7 : vector<4x1xf32> to vector<4x256xf32>
    %9 = arith.addf %6, %8 : vector<4x256xf32>
    %cst_8 = arith.constant 0.000000e+00 : f32
    %10 = vector.broadcast %cst_8 : f32 to vector<4x256xf32>
    %11 = arith.maximumf %9, %10 : vector<4x256xf32>
    %c0_9 = arith.constant 0 : index
    %c0_10 = arith.constant 0 : index
    %c0_11 = arith.constant 0 : index
    %12 = vector.load %arg5[%c0_9, %c0_10, %c0_11] : memref<1x4x256xf32, #tpu.memory_space<vmem>>, vector<1x4x256xf32>
    %13 = vector.shape_cast %12 : vector<1x4x256xf32> to vector<4x256xf32>
    %14 = vector.shape_cast %11 : vector<4x256xf32> to vector<1x4x256xf32>
    tpu.vector_store %arg5[%c0_9, %c0_10, %c0_11], %14 {strides = array<i32>} : memref<1x4x256xf32, #tpu.memory_space<vmem>>, vector<1x4x256xf32>,
    return
  }
  func.func @transform_0(%arg0: i32) -> (i32, i32, i32) {
    %c0_i32 = arith.constant 0 : i32
    %c0_i32_0 = arith.constant 0 : i32
    %c0_i32_1 = arith.constant 0 : i32
    return %arg0, %c0_i32, %c0_i32_0 : i32, i32, i32
  }
  func.func @transform_1(%arg0: i32) -> (i32, i32) {
    %c0_i32 = arith.constant 0 : i32
    %c0_i32_0 = arith.constant 0 : i32
    %c0_i32_1 = arith.constant 0 : i32
    return %c0_i32, %c0_i32_0 : i32, i32
  }
  func.func @transform_2(%arg0: i32) -> (i32, i32) {
    %c0_i32 = arith.constant 0 : i32
    %c0_i32_0 = arith.constant 0 : i32
    %c0_i32_1 = arith.constant 0 : i32
    return %c0_i32, %c0_i32_0 : i32, i32
  }
  func.func @transform_3(%arg0: i32) -> (i32, i32) {
    %c0_i32 = arith.constant 0 : i32
    %c0_i32_0 = arith.constant 0 : i32
    %c0_i32_1 = arith.constant 0 : i32
    return %c0_i32, %c0_i32_0 : i32, i32
  }
  func.func @transform_4(%arg0: i32) -> (i32, i32, i32) {
    %c0_i32 = arith.constant 0 : i32
    %c0_i32_0 = arith.constant 0 : i32
    %c0_i32_1 = arith.constant 0 : i32
    return %arg0, %c0_i32, %c0_i32_0 : i32, i32, i32
  }
}

module attributes {stable_mosaic.version = 11 : i64} {
  func.func @_mask_split_kernel(%arg0: i32, %arg1: memref<1x16x256xf32, #tpu.memory_space<vmem>>, %arg2: memref<1x1x256xf32, #tpu.memory_space<vmem>>, %arg3: memref<1x16x256xf32, #tpu.memory_space<vmem>>, %arg4: memref<1x16x256xf32, #tpu.memory_space<vmem>>) attributes {dimension_semantics = [#tpu.dimension_semantics<parallel>], iteration_bounds = array<i64: 2>, scalar_prefetch = 0 : i64, scratch_operands = 0 : i64, tpu.core_type = #tpu.core_type<tc>, window_params = [{transform_indices = @transform_0, window_bounds = array<i64: 1, 16, 256>}, {transform_indices = @transform_1, window_bounds = array<i64: 1, 1, 256>}, {transform_indices = @transform_2, window_bounds = array<i64: 1, 16, 256>}, {transform_indices = @transform_3, window_bounds = array<i64: 1, 16, 256>}]} {
    %c0 = arith.constant 0 : index
    %c0_0 = arith.constant 0 : index
    %c0_1 = arith.constant 0 : index
    %0 = vector.load %arg1[%c0, %c0_0, %c0_1] : memref<1x16x256xf32, #tpu.memory_space<vmem>>, vector<1x16x256xf32>
    %1 = vector.shape_cast %0 : vector<1x16x256xf32> to vector<16x256xf32>
    %c0_2 = arith.constant 0 : index
    %c0_3 = arith.constant 0 : index
    %c0_4 = arith.constant 0 : index
    %2 = vector.load %arg2[%c0_2, %c0_3, %c0_4] : memref<1x1x256xf32, #tpu.memory_space<vmem>>, vector<1x1x256xf32>
    %3 = vector.shape_cast %2 : vector<1x1x256xf32> to vector<1x256xf32>
    %cst = arith.constant 0.000000e+00 : f32
    %4 = vector.broadcast %cst : f32 to vector<1x256xf32>
    %5 = arith.subf %4, %3 : vector<1x256xf32>
    %6 = math.exp %5 : vector<1x256xf32>
    %cst_5 = arith.constant 1.000000e+00 : f32
    %7 = vector.broadcast %cst_5 : f32 to vector<1x256xf32>
    %8 = arith.addf %7, %6 : vector<1x256xf32>
    %cst_6 = arith.constant 1.000000e+00 : f32
    %9 = vector.broadcast %cst_6 : f32 to vector<1x256xf32>
    %10 = arith.divf %9, %8 : vector<1x256xf32>
    %11 = vector.broadcast %10 : vector<1x256xf32> to vector<16x256xf32>
    %12 = arith.mulf %1, %11 : vector<16x256xf32>
    %c0_7 = arith.constant 0 : index
    %c0_8 = arith.constant 0 : index
    %c0_9 = arith.constant 0 : index
    %13 = vector.load %arg3[%c0_7, %c0_8, %c0_9] : memref<1x16x256xf32, #tpu.memory_space<vmem>>, vector<1x16x256xf32>
    %14 = vector.shape_cast %13 : vector<1x16x256xf32> to vector<16x256xf32>
    %15 = vector.shape_cast %12 : vector<16x256xf32> to vector<1x16x256xf32>
    tpu.vector_store %arg3[%c0_7, %c0_8, %c0_9], %15 {strides = array<i32>} : memref<1x16x256xf32, #tpu.memory_space<vmem>>, vector<1x16x256xf32>,
    %cst_10 = arith.constant 1.000000e+00 : f32
    %16 = vector.broadcast %cst_10 : f32 to vector<1x256xf32>
    %17 = arith.subf %16, %10 : vector<1x256xf32>
    %18 = vector.broadcast %17 : vector<1x256xf32> to vector<16x256xf32>
    %19 = arith.mulf %1, %18 : vector<16x256xf32>
    %c0_11 = arith.constant 0 : index
    %c0_12 = arith.constant 0 : index
    %c0_13 = arith.constant 0 : index
    %20 = vector.load %arg4[%c0_11, %c0_12, %c0_13] : memref<1x16x256xf32, #tpu.memory_space<vmem>>, vector<1x16x256xf32>
    %21 = vector.shape_cast %20 : vector<1x16x256xf32> to vector<16x256xf32>
    %22 = vector.shape_cast %19 : vector<16x256xf32> to vector<1x16x256xf32>
    tpu.vector_store %arg4[%c0_11, %c0_12, %c0_13], %22 {strides = array<i32>} : memref<1x16x256xf32, #tpu.memory_space<vmem>>, vector<1x16x256xf32>,
    return
  }
  func.func @transform_0(%arg0: i32) -> (i32, i32, i32) {
    %c0_i32 = arith.constant 0 : i32
    %c0_i32_0 = arith.constant 0 : i32
    %c0_i32_1 = arith.constant 0 : i32
    return %arg0, %c0_i32, %c0_i32_0 : i32, i32, i32
  }
  func.func @transform_1(%arg0: i32) -> (i32, i32, i32) {
    %c0_i32 = arith.constant 0 : i32
    %c0_i32_0 = arith.constant 0 : i32
    %c0_i32_1 = arith.constant 0 : i32
    return %arg0, %c0_i32, %c0_i32_0 : i32, i32, i32
  }
  func.func @transform_2(%arg0: i32) -> (i32, i32, i32) {
    %c0_i32 = arith.constant 0 : i32
    %c0_i32_0 = arith.constant 0 : i32
    %c0_i32_1 = arith.constant 0 : i32
    return %arg0, %c0_i32, %c0_i32_0 : i32, i32, i32
  }
  func.func @transform_3(%arg0: i32) -> (i32, i32, i32) {
    %c0_i32 = arith.constant 0 : i32
    %c0_i32_0 = arith.constant 0 : i32
    %c0_i32_1 = arith.constant 0 : i32
    return %arg0, %c0_i32, %c0_i32_0 : i32, i32, i32
  }
}

module attributes {stable_mosaic.version = 11 : i64} {
  func.func @kernel(%arg0: i32, %arg1: memref<1x4x256xf32, #tpu.memory_space<vmem>>, %arg2: memref<4x4xf32, #tpu.memory_space<vmem>>, %arg3: memref<4x1xf32, #tpu.memory_space<vmem>>, %arg4: memref<4x1xf32, #tpu.memory_space<vmem>>, %arg5: memref<1x4x256xf32, #tpu.memory_space<vmem>>) attributes {dimension_semantics = [#tpu.dimension_semantics<parallel>], iteration_bounds = array<i64: 2>, scalar_prefetch = 0 : i64, scratch_operands = 0 : i64, tpu.core_type = #tpu.core_type<tc>, window_params = [{transform_indices = @transform_0, window_bounds = array<i64: 1, 4, 256>}, {pipeline_mode = #tpu.pipeline_mode<synchronous>, transform_indices = @transform_1, window_bounds = array<i64: 4, 4>}, {pipeline_mode = #tpu.pipeline_mode<synchronous>, transform_indices = @transform_2, window_bounds = array<i64: 4, 1>}, {pipeline_mode = #tpu.pipeline_mode<synchronous>, transform_indices = @transform_3, window_bounds = array<i64: 4, 1>}, {transform_indices = @transform_4, window_bounds = array<i64: 1, 4, 256>}]} {
    %c0 = arith.constant 0 : index
    %c0_0 = arith.constant 0 : index
    %c0_1 = arith.constant 0 : index
    %0 = vector.load %arg1[%c0, %c0_0, %c0_1] : memref<1x4x256xf32, #tpu.memory_space<vmem>>, vector<1x4x256xf32>
    %1 = vector.shape_cast %0 : vector<1x4x256xf32> to vector<4x256xf32>
    %c0_2 = arith.constant 0 : index
    %c0_3 = arith.constant 0 : index
    %2 = vector.load %arg2[%c0_2, %c0_3] : memref<4x4xf32, #tpu.memory_space<vmem>>, vector<4x4xf32>
    %cst = arith.constant dense<0.000000e+00> : vector<4x256xf32>
    %3 = tpu.matmul %2, %1, %cst {dimension_numbers = #tpu.dot_dimension_numbers<[1], [0], [0], [1], [0, 0, 1, 1], [], []>} : vector<4x4xf32>, vector<4x256xf32>, vector<4x256xf32> -> vector<4x256xf32>
    %c0_4 = arith.constant 0 : index
    %c0_5 = arith.constant 0 : index
    %4 = vector.load %arg3[%c0_4, %c0_5] : memref<4x1xf32, #tpu.memory_space<vmem>>, vector<4x1xf32>
    %5 = vector.broadcast %4 : vector<4x1xf32> to vector<4x256xf32>
    %6 = arith.mulf %3, %5 : vector<4x256xf32>
    %c0_6 = arith.constant 0 : index
    %c0_7 = arith.constant 0 : index
    %7 = vector.load %arg4[%c0_6, %c0_7] : memref<4x1xf32, #tpu.memory_space<vmem>>, vector<4x1xf32>
    %8 = vector.broadcast %7 : vector<4x1xf32> to vector<4x256xf32>
    %9 = arith.addf %6, %8 : vector<4x256xf32>
    %cst_8 = arith.constant 0.000000e+00 : f32
    %10 = vector.broadcast %cst_8 : f32 to vector<4x256xf32>
    %11 = arith.maximumf %9, %10 : vector<4x256xf32>
    %c0_9 = arith.constant 0 : index
    %c0_10 = arith.constant 0 : index
    %c0_11 = arith.constant 0 : index
    %12 = vector.load %arg5[%c0_9, %c0_10, %c0_11] : memref<1x4x256xf32, #tpu.memory_space<vmem>>, vector<1x4x256xf32>
    %13 = vector.shape_cast %12 : vector<1x4x256xf32> to vector<4x256xf32>
    %14 = vector.shape_cast %11 : vector<4x256xf32> to vector<1x4x256xf32>
    tpu.vector_store %arg5[%c0_9, %c0_10, %c0_11], %14 {strides = array<i32>} : memref<1x4x256xf32, #tpu.memory_space<vmem>>, vector<1x4x256xf32>,
    return
  }
  func.func @transform_0(%arg0: i32) -> (i32, i32, i32) {
    %c0_i32 = arith.constant 0 : i32
    %c0_i32_0 = arith.constant 0 : i32
    %c0_i32_1 = arith.constant 0 : i32
    return %arg0, %c0_i32, %c0_i32_0 : i32, i32, i32
  }
  func.func @transform_1(%arg0: i32) -> (i32, i32) {
    %c0_i32 = arith.constant 0 : i32
    %c0_i32_0 = arith.constant 0 : i32
    %c0_i32_1 = arith.constant 0 : i32
    return %c0_i32, %c0_i32_0 : i32, i32
  }
  func.func @transform_2(%arg0: i32) -> (i32, i32) {
    %c0_i32 = arith.constant 0 : i32
    %c0_i32_0 = arith.constant 0 : i32
    %c0_i32_1 = arith.constant 0 : i32
    return %c0_i32, %c0_i32_0 : i32, i32
  }
  func.func @transform_3(%arg0: i32) -> (i32, i32) {
    %c0_i32 = arith.constant 0 : i32
    %c0_i32_0 = arith.constant 0 : i32
    %c0_i32_1 = arith.constant 0 : i32
    return %c0_i32, %c0_i32_0 : i32, i32
  }
  func.func @transform_4(%arg0: i32) -> (i32, i32, i32) {
    %c0_i32 = arith.constant 0 : i32
    %c0_i32_0 = arith.constant 0 : i32
    %c0_i32_1 = arith.constant 0 : i32
    return %arg0, %c0_i32, %c0_i32_0 : i32, i32, i32
  }
}

module attributes {stable_mosaic.version = 11 : i64} {
  func.func @kernel(%arg0: i32, %arg1: memref<1x36x256xf32, #tpu.memory_space<vmem>>, %arg2: memref<4x36xf32, #tpu.memory_space<vmem>>, %arg3: memref<4x1xf32, #tpu.memory_space<vmem>>, %arg4: memref<4x1xf32, #tpu.memory_space<vmem>>, %arg5: memref<1x4x256xf32, #tpu.memory_space<vmem>>) attributes {dimension_semantics = [#tpu.dimension_semantics<parallel>], iteration_bounds = array<i64: 2>, scalar_prefetch = 0 : i64, scratch_operands = 0 : i64, tpu.core_type = #tpu.core_type<tc>, window_params = [{transform_indices = @transform_0, window_bounds = array<i64: 1, 36, 256>}, {pipeline_mode = #tpu.pipeline_mode<synchronous>, transform_indices = @transform_1, window_bounds = array<i64: 4, 36>}, {pipeline_mode = #tpu.pipeline_mode<synchronous>, transform_indices = @transform_2, window_bounds = array<i64: 4, 1>}, {pipeline_mode = #tpu.pipeline_mode<synchronous>, transform_indices = @transform_3, window_bounds = array<i64: 4, 1>}, {transform_indices = @transform_4, window_bounds = array<i64: 1, 4, 256>}]} {
    %c0 = arith.constant 0 : index
    %c0_0 = arith.constant 0 : index
    %c0_1 = arith.constant 0 : index
    %0 = vector.load %arg1[%c0, %c0_0, %c0_1] : memref<1x36x256xf32, #tpu.memory_space<vmem>>, vector<1x36x256xf32>
    %1 = vector.shape_cast %0 : vector<1x36x256xf32> to vector<36x256xf32>
    %c0_2 = arith.constant 0 : index
    %c0_3 = arith.constant 0 : index
    %2 = vector.load %arg2[%c0_2, %c0_3] : memref<4x36xf32, #tpu.memory_space<vmem>>, vector<4x36xf32>
    %cst = arith.constant dense<0.000000e+00> : vector<4x256xf32>
    %3 = tpu.matmul %2, %1, %cst {dimension_numbers = #tpu.dot_dimension_numbers<[1], [0], [0], [1], [0, 0, 1, 1], [], []>} : vector<4x36xf32>, vector<36x256xf32>, vector<4x256xf32> -> vector<4x256xf32>
    %c0_4 = arith.constant 0 : index
    %c0_5 = arith.constant 0 : index
    %4 = vector.load %arg3[%c0_4, %c0_5] : memref<4x1xf32, #tpu.memory_space<vmem>>, vector<4x1xf32>
    %5 = vector.broadcast %4 : vector<4x1xf32> to vector<4x256xf32>
    %6 = arith.mulf %3, %5 : vector<4x256xf32>
    %c0_6 = arith.constant 0 : index
    %c0_7 = arith.constant 0 : index
    %7 = vector.load %arg4[%c0_6, %c0_7] : memref<4x1xf32, #tpu.memory_space<vmem>>, vector<4x1xf32>
    %8 = vector.broadcast %7 : vector<4x1xf32> to vector<4x256xf32>
    %9 = arith.addf %6, %8 : vector<4x256xf32>
    %cst_8 = arith.constant 0.000000e+00 : f32
    %10 = vector.broadcast %cst_8 : f32 to vector<4x256xf32>
    %11 = arith.maximumf %9, %10 : vector<4x256xf32>
    %c0_9 = arith.constant 0 : index
    %c0_10 = arith.constant 0 : index
    %c0_11 = arith.constant 0 : index
    %12 = vector.load %arg5[%c0_9, %c0_10, %c0_11] : memref<1x4x256xf32, #tpu.memory_space<vmem>>, vector<1x4x256xf32>
    %13 = vector.shape_cast %12 : vector<1x4x256xf32> to vector<4x256xf32>
    %14 = vector.shape_cast %11 : vector<4x256xf32> to vector<1x4x256xf32>
    tpu.vector_store %arg5[%c0_9, %c0_10, %c0_11], %14 {strides = array<i32>} : memref<1x4x256xf32, #tpu.memory_space<vmem>>, vector<1x4x256xf32>,
    return
  }
  func.func @transform_0(%arg0: i32) -> (i32, i32, i32) {
    %c0_i32 = arith.constant 0 : i32
    %c0_i32_0 = arith.constant 0 : i32
    %c0_i32_1 = arith.constant 0 : i32
    return %arg0, %c0_i32, %c0_i32_0 : i32, i32, i32
  }
  func.func @transform_1(%arg0: i32) -> (i32, i32) {
    %c0_i32 = arith.constant 0 : i32
    %c0_i32_0 = arith.constant 0 : i32
    %c0_i32_1 = arith.constant 0 : i32
    return %c0_i32, %c0_i32_0 : i32, i32
  }
  func.func @transform_2(%arg0: i32) -> (i32, i32) {
    %c0_i32 = arith.constant 0 : i32
    %c0_i32_0 = arith.constant 0 : i32
    %c0_i32_1 = arith.constant 0 : i32
    return %c0_i32, %c0_i32_0 : i32, i32
  }
  func.func @transform_3(%arg0: i32) -> (i32, i32) {
    %c0_i32 = arith.constant 0 : i32
    %c0_i32_0 = arith.constant 0 : i32
    %c0_i32_1 = arith.constant 0 : i32
    return %c0_i32, %c0_i32_0 : i32, i32
  }
  func.func @transform_4(%arg0: i32) -> (i32, i32, i32) {
    %c0_i32 = arith.constant 0 : i32
    %c0_i32_0 = arith.constant 0 : i32
    %c0_i32_1 = arith.constant 0 : i32
    return %arg0, %c0_i32, %c0_i32_0 : i32, i32, i32
  }
}

module attributes {stable_mosaic.version = 11 : i64} {
  func.func @kernel(%arg0: i32, %arg1: memref<1x36x256xf32, #tpu.memory_space<vmem>>, %arg2: memref<4x36xf32, #tpu.memory_space<vmem>>, %arg3: memref<4x1xf32, #tpu.memory_space<vmem>>, %arg4: memref<4x1xf32, #tpu.memory_space<vmem>>, %arg5: memref<1x4x256xf32, #tpu.memory_space<vmem>>) attributes {dimension_semantics = [#tpu.dimension_semantics<parallel>], iteration_bounds = array<i64: 2>, scalar_prefetch = 0 : i64, scratch_operands = 0 : i64, tpu.core_type = #tpu.core_type<tc>, window_params = [{transform_indices = @transform_0, window_bounds = array<i64: 1, 36, 256>}, {pipeline_mode = #tpu.pipeline_mode<synchronous>, transform_indices = @transform_1, window_bounds = array<i64: 4, 36>}, {pipeline_mode = #tpu.pipeline_mode<synchronous>, transform_indices = @transform_2, window_bounds = array<i64: 4, 1>}, {pipeline_mode = #tpu.pipeline_mode<synchronous>, transform_indices = @transform_3, window_bounds = array<i64: 4, 1>}, {transform_indices = @transform_4, window_bounds = array<i64: 1, 4, 256>}]} {
    %c0 = arith.constant 0 : index
    %c0_0 = arith.constant 0 : index
    %c0_1 = arith.constant 0 : index
    %0 = vector.load %arg1[%c0, %c0_0, %c0_1] : memref<1x36x256xf32, #tpu.memory_space<vmem>>, vector<1x36x256xf32>
    %1 = vector.shape_cast %0 : vector<1x36x256xf32> to vector<36x256xf32>
    %c0_2 = arith.constant 0 : index
    %c0_3 = arith.constant 0 : index
    %2 = vector.load %arg2[%c0_2, %c0_3] : memref<4x36xf32, #tpu.memory_space<vmem>>, vector<4x36xf32>
    %cst = arith.constant dense<0.000000e+00> : vector<4x256xf32>
    %3 = tpu.matmul %2, %1, %cst {dimension_numbers = #tpu.dot_dimension_numbers<[1], [0], [0], [1], [0, 0, 1, 1], [], []>} : vector<4x36xf32>, vector<36x256xf32>, vector<4x256xf32> -> vector<4x256xf32>
    %c0_4 = arith.constant 0 : index
    %c0_5 = arith.constant 0 : index
    %4 = vector.load %arg3[%c0_4, %c0_5] : memref<4x1xf32, #tpu.memory_space<vmem>>, vector<4x1xf32>
    %5 = vector.broadcast %4 : vector<4x1xf32> to vector<4x256xf32>
    %6 = arith.mulf %3, %5 : vector<4x256xf32>
    %c0_6 = arith.constant 0 : index
    %c0_7 = arith.constant 0 : index
    %7 = vector.load %arg4[%c0_6, %c0_7] : memref<4x1xf32, #tpu.memory_space<vmem>>, vector<4x1xf32>
    %8 = vector.broadcast %7 : vector<4x1xf32> to vector<4x256xf32>
    %9 = arith.addf %6, %8 : vector<4x256xf32>
    %cst_8 = arith.constant 0.000000e+00 : f32
    %10 = vector.broadcast %cst_8 : f32 to vector<4x256xf32>
    %11 = arith.maximumf %9, %10 : vector<4x256xf32>
    %c0_9 = arith.constant 0 : index
    %c0_10 = arith.constant 0 : index
    %c0_11 = arith.constant 0 : index
    %12 = vector.load %arg5[%c0_9, %c0_10, %c0_11] : memref<1x4x256xf32, #tpu.memory_space<vmem>>, vector<1x4x256xf32>
    %13 = vector.shape_cast %12 : vector<1x4x256xf32> to vector<4x256xf32>
    %14 = vector.shape_cast %11 : vector<4x256xf32> to vector<1x4x256xf32>
    tpu.vector_store %arg5[%c0_9, %c0_10, %c0_11], %14 {strides = array<i32>} : memref<1x4x256xf32, #tpu.memory_space<vmem>>, vector<1x4x256xf32>,
    return
  }
  func.func @transform_0(%arg0: i32) -> (i32, i32, i32) {
    %c0_i32 = arith.constant 0 : i32
    %c0_i32_0 = arith.constant 0 : i32
    %c0_i32_1 = arith.constant 0 : i32
    return %arg0, %c0_i32, %c0_i32_0 : i32, i32, i32
  }
  func.func @transform_1(%arg0: i32) -> (i32, i32) {
    %c0_i32 = arith.constant 0 : i32
    %c0_i32_0 = arith.constant 0 : i32
    %c0_i32_1 = arith.constant 0 : i32
    return %c0_i32, %c0_i32_0 : i32, i32
  }
  func.func @transform_2(%arg0: i32) -> (i32, i32) {
    %c0_i32 = arith.constant 0 : i32
    %c0_i32_0 = arith.constant 0 : i32
    %c0_i32_1 = arith.constant 0 : i32
    return %c0_i32, %c0_i32_0 : i32, i32
  }
  func.func @transform_3(%arg0: i32) -> (i32, i32) {
    %c0_i32 = arith.constant 0 : i32
    %c0_i32_0 = arith.constant 0 : i32
    %c0_i32_1 = arith.constant 0 : i32
    return %c0_i32, %c0_i32_0 : i32, i32
  }
  func.func @transform_4(%arg0: i32) -> (i32, i32, i32) {
    %c0_i32 = arith.constant 0 : i32
    %c0_i32_0 = arith.constant 0 : i32
    %c0_i32_1 = arith.constant 0 : i32
    return %arg0, %c0_i32, %c0_i32_0 : i32, i32, i32
  }
}

module attributes {stable_mosaic.version = 11 : i64} {
  func.func @kernel(%arg0: i32, %arg1: memref<1x16x256xf32, #tpu.memory_space<vmem>>, %arg2: memref<4x16xf32, #tpu.memory_space<vmem>>, %arg3: memref<4x1xf32, #tpu.memory_space<vmem>>, %arg4: memref<4x1xf32, #tpu.memory_space<vmem>>, %arg5: memref<1x4x256xf32, #tpu.memory_space<vmem>>, %arg6: memref<1x4x256xf32, #tpu.memory_space<vmem>>) attributes {dimension_semantics = [#tpu.dimension_semantics<parallel>], iteration_bounds = array<i64: 2>, scalar_prefetch = 0 : i64, scratch_operands = 0 : i64, tpu.core_type = #tpu.core_type<tc>, window_params = [{transform_indices = @transform_0, window_bounds = array<i64: 1, 16, 256>}, {pipeline_mode = #tpu.pipeline_mode<synchronous>, transform_indices = @transform_1, window_bounds = array<i64: 4, 16>}, {pipeline_mode = #tpu.pipeline_mode<synchronous>, transform_indices = @transform_2, window_bounds = array<i64: 4, 1>}, {pipeline_mode = #tpu.pipeline_mode<synchronous>, transform_indices = @transform_3, window_bounds = array<i64: 4, 1>}, {transform_indices = @transform_4, window_bounds = array<i64: 1, 4, 256>}, {transform_indices = @transform_5, window_bounds = array<i64: 1, 4, 256>}]} {
    %c0 = arith.constant 0 : index
    %c0_0 = arith.constant 0 : index
    %c0_1 = arith.constant 0 : index
    %0 = vector.load %arg1[%c0, %c0_0, %c0_1] : memref<1x16x256xf32, #tpu.memory_space<vmem>>, vector<1x16x256xf32>
    %1 = vector.shape_cast %0 : vector<1x16x256xf32> to vector<16x256xf32>
    %c0_2 = arith.constant 0 : index
    %c0_3 = arith.constant 0 : index
    %2 = vector.load %arg2[%c0_2, %c0_3] : memref<4x16xf32, #tpu.memory_space<vmem>>, vector<4x16xf32>
    %cst = arith.constant dense<0.000000e+00> : vector<4x256xf32>
    %3 = tpu.matmul %2, %1, %cst {dimension_numbers = #tpu.dot_dimension_numbers<[1], [0], [0], [1], [0, 0, 1, 1], [], []>} : vector<4x16xf32>, vector<16x256xf32>, vector<4x256xf32> -> vector<4x256xf32>
    %c0_4 = arith.constant 0 : index
    %c0_5 = arith.constant 0 : index
    %4 = vector.load %arg3[%c0_4, %c0_5] : memref<4x1xf32, #tpu.memory_space<vmem>>, vector<4x1xf32>
    %5 = vector.broadcast %4 : vector<4x1xf32> to vector<4x256xf32>
    %6 = arith.mulf %3, %5 : vector<4x256xf32>
    %c0_6 = arith.constant 0 : index
    %c0_7 = arith.constant 0 : index
    %7 = vector.load %arg4[%c0_6, %c0_7] : memref<4x1xf32, #tpu.memory_space<vmem>>, vector<4x1xf32>
    %8 = vector.broadcast %7 : vector<4x1xf32> to vector<4x256xf32>
    %9 = arith.addf %6, %8 : vector<4x256xf32>
    %cst_8 = arith.constant 0.000000e+00 : f32
    %10 = vector.broadcast %cst_8 : f32 to vector<4x256xf32>
    %11 = arith.maximumf %9, %10 : vector<4x256xf32>
    %c0_9 = arith.constant 0 : index
    %c0_10 = arith.constant 0 : index
    %c0_11 = arith.constant 0 : index
    %12 = vector.load %arg5[%c0_9, %c0_10, %c0_11] : memref<1x4x256xf32, #tpu.memory_space<vmem>>, vector<1x4x256xf32>
    %13 = vector.shape_cast %12 : vector<1x4x256xf32> to vector<4x256xf32>
    %14 = arith.addf %11, %13 : vector<4x256xf32>
    %c0_12 = arith.constant 0 : index
    %c0_13 = arith.constant 0 : index
    %c0_14 = arith.constant 0 : index
    %15 = vector.load %arg6[%c0_12, %c0_13, %c0_14] : memref<1x4x256xf32, #tpu.memory_space<vmem>>, vector<1x4x256xf32>
    %16 = vector.shape_cast %15 : vector<1x4x256xf32> to vector<4x256xf32>
    %17 = vector.shape_cast %14 : vector<4x256xf32> to vector<1x4x256xf32>
    tpu.vector_store %arg6[%c0_12, %c0_13, %c0_14], %17 {strides = array<i32>} : memref<1x4x256xf32, #tpu.memory_space<vmem>>, vector<1x4x256xf32>,
    return
  }
  func.func @transform_0(%arg0: i32) -> (i32, i32, i32) {
    %c0_i32 = arith.constant 0 : i32
    %c0_i32_0 = arith.constant 0 : i32
    %c0_i32_1 = arith.constant 0 : i32
    return %arg0, %c0_i32, %c0_i32_0 : i32, i32, i32
  }
  func.func @transform_1(%arg0: i32) -> (i32, i32) {
    %c0_i32 = arith.constant 0 : i32
    %c0_i32_0 = arith.constant 0 : i32
    %c0_i32_1 = arith.constant 0 : i32
    return %c0_i32, %c0_i32_0 : i32, i32
  }
  func.func @transform_2(%arg0: i32) -> (i32, i32) {
    %c0_i32 = arith.constant 0 : i32
    %c0_i32_0 = arith.constant 0 : i32
    %c0_i32_1 = arith.constant 0 : i32
    return %c0_i32, %c0_i32_0 : i32, i32
  }
  func.func @transform_3(%arg0: i32) -> (i32, i32) {
    %c0_i32 = arith.constant 0 : i32
    %c0_i32_0 = arith.constant 0 : i32
    %c0_i32_1 = arith.constant 0 : i32
    return %c0_i32, %c0_i32_0 : i32, i32
  }
  func.func @transform_4(%arg0: i32) -> (i32, i32, i32) {
    %c0_i32 = arith.constant 0 : i32
    %c0_i32_0 = arith.constant 0 : i32
    %c0_i32_1 = arith.constant 0 : i32
    return %arg0, %c0_i32, %c0_i32_0 : i32, i32, i32
  }
  func.func @transform_5(%arg0: i32) -> (i32, i32, i32) {
    %c0_i32 = arith.constant 0 : i32
    %c0_i32_0 = arith.constant 0 : i32
    %c0_i32_1 = arith.constant 0 : i32
    return %arg0, %c0_i32, %c0_i32_0 : i32, i32, i32
  }
}

module attributes {stable_mosaic.version = 11 : i64} {
  func.func @kernel(%arg0: i32, %arg1: memref<1x16x256xf32, #tpu.memory_space<vmem>>, %arg2: memref<4x16xf32, #tpu.memory_space<vmem>>, %arg3: memref<4x1xf32, #tpu.memory_space<vmem>>, %arg4: memref<4x1xf32, #tpu.memory_space<vmem>>, %arg5: memref<1x4x256xf32, #tpu.memory_space<vmem>>, %arg6: memref<1x4x256xf32, #tpu.memory_space<vmem>>) attributes {dimension_semantics = [#tpu.dimension_semantics<parallel>], iteration_bounds = array<i64: 2>, scalar_prefetch = 0 : i64, scratch_operands = 0 : i64, tpu.core_type = #tpu.core_type<tc>, window_params = [{transform_indices = @transform_0, window_bounds = array<i64: 1, 16, 256>}, {pipeline_mode = #tpu.pipeline_mode<synchronous>, transform_indices = @transform_1, window_bounds = array<i64: 4, 16>}, {pipeline_mode = #tpu.pipeline_mode<synchronous>, transform_indices = @transform_2, window_bounds = array<i64: 4, 1>}, {pipeline_mode = #tpu.pipeline_mode<synchronous>, transform_indices = @transform_3, window_bounds = array<i64: 4, 1>}, {transform_indices = @transform_4, window_bounds = array<i64: 1, 4, 256>}, {transform_indices = @transform_5, window_bounds = array<i64: 1, 4, 256>}]} {
    %c0 = arith.constant 0 : index
    %c0_0 = arith.constant 0 : index
    %c0_1 = arith.constant 0 : index
    %0 = vector.load %arg1[%c0, %c0_0, %c0_1] : memref<1x16x256xf32, #tpu.memory_space<vmem>>, vector<1x16x256xf32>
    %1 = vector.shape_cast %0 : vector<1x16x256xf32> to vector<16x256xf32>
    %c0_2 = arith.constant 0 : index
    %c0_3 = arith.constant 0 : index
    %2 = vector.load %arg2[%c0_2, %c0_3] : memref<4x16xf32, #tpu.memory_space<vmem>>, vector<4x16xf32>
    %cst = arith.constant dense<0.000000e+00> : vector<4x256xf32>
    %3 = tpu.matmul %2, %1, %cst {dimension_numbers = #tpu.dot_dimension_numbers<[1], [0], [0], [1], [0, 0, 1, 1], [], []>} : vector<4x16xf32>, vector<16x256xf32>, vector<4x256xf32> -> vector<4x256xf32>
    %c0_4 = arith.constant 0 : index
    %c0_5 = arith.constant 0 : index
    %4 = vector.load %arg3[%c0_4, %c0_5] : memref<4x1xf32, #tpu.memory_space<vmem>>, vector<4x1xf32>
    %5 = vector.broadcast %4 : vector<4x1xf32> to vector<4x256xf32>
    %6 = arith.mulf %3, %5 : vector<4x256xf32>
    %c0_6 = arith.constant 0 : index
    %c0_7 = arith.constant 0 : index
    %7 = vector.load %arg4[%c0_6, %c0_7] : memref<4x1xf32, #tpu.memory_space<vmem>>, vector<4x1xf32>
    %8 = vector.broadcast %7 : vector<4x1xf32> to vector<4x256xf32>
    %9 = arith.addf %6, %8 : vector<4x256xf32>
    %cst_8 = arith.constant 0.000000e+00 : f32
    %10 = vector.broadcast %cst_8 : f32 to vector<4x256xf32>
    %11 = arith.maximumf %9, %10 : vector<4x256xf32>
    %c0_9 = arith.constant 0 : index
    %c0_10 = arith.constant 0 : index
    %c0_11 = arith.constant 0 : index
    %12 = vector.load %arg5[%c0_9, %c0_10, %c0_11] : memref<1x4x256xf32, #tpu.memory_space<vmem>>, vector<1x4x256xf32>
    %13 = vector.shape_cast %12 : vector<1x4x256xf32> to vector<4x256xf32>
    %14 = arith.addf %11, %13 : vector<4x256xf32>
    %c0_12 = arith.constant 0 : index
    %c0_13 = arith.constant 0 : index
    %c0_14 = arith.constant 0 : index
    %15 = vector.load %arg6[%c0_12, %c0_13, %c0_14] : memref<1x4x256xf32, #tpu.memory_space<vmem>>, vector<1x4x256xf32>
    %16 = vector.shape_cast %15 : vector<1x4x256xf32> to vector<4x256xf32>
    %17 = vector.shape_cast %14 : vector<4x256xf32> to vector<1x4x256xf32>
    tpu.vector_store %arg6[%c0_12, %c0_13, %c0_14], %17 {strides = array<i32>} : memref<1x4x256xf32, #tpu.memory_space<vmem>>, vector<1x4x256xf32>,
    return
  }
  func.func @transform_0(%arg0: i32) -> (i32, i32, i32) {
    %c0_i32 = arith.constant 0 : i32
    %c0_i32_0 = arith.constant 0 : i32
    %c0_i32_1 = arith.constant 0 : i32
    return %arg0, %c0_i32, %c0_i32_0 : i32, i32, i32
  }
  func.func @transform_1(%arg0: i32) -> (i32, i32) {
    %c0_i32 = arith.constant 0 : i32
    %c0_i32_0 = arith.constant 0 : i32
    %c0_i32_1 = arith.constant 0 : i32
    return %c0_i32, %c0_i32_0 : i32, i32
  }
  func.func @transform_2(%arg0: i32) -> (i32, i32) {
    %c0_i32 = arith.constant 0 : i32
    %c0_i32_0 = arith.constant 0 : i32
    %c0_i32_1 = arith.constant 0 : i32
    return %c0_i32, %c0_i32_0 : i32, i32
  }
  func.func @transform_3(%arg0: i32) -> (i32, i32) {
    %c0_i32 = arith.constant 0 : i32
    %c0_i32_0 = arith.constant 0 : i32
    %c0_i32_1 = arith.constant 0 : i32
    return %c0_i32, %c0_i32_0 : i32, i32
  }
  func.func @transform_4(%arg0: i32) -> (i32, i32, i32) {
    %c0_i32 = arith.constant 0 : i32
    %c0_i32_0 = arith.constant 0 : i32
    %c0_i32_1 = arith.constant 0 : i32
    return %arg0, %c0_i32, %c0_i32_0 : i32, i32, i32
  }
  func.func @transform_5(%arg0: i32) -> (i32, i32, i32) {
    %c0_i32 = arith.constant 0 : i32
    %c0_i32_0 = arith.constant 0 : i32
    %c0_i32_1 = arith.constant 0 : i32
    return %arg0, %c0_i32, %c0_i32_0 : i32, i32, i32
  }
}

module attributes {stable_mosaic.version = 11 : i64} {
  func.func @kernel(%arg0: i32, %arg1: memref<1x100x256xf32, #tpu.memory_space<vmem>>, %arg2: memref<4x100xf32, #tpu.memory_space<vmem>>, %arg3: memref<4x1xf32, #tpu.memory_space<vmem>>, %arg4: memref<4x1xf32, #tpu.memory_space<vmem>>, %arg5: memref<1x4x256xf32, #tpu.memory_space<vmem>>) attributes {dimension_semantics = [#tpu.dimension_semantics<parallel>], iteration_bounds = array<i64: 2>, scalar_prefetch = 0 : i64, scratch_operands = 0 : i64, tpu.core_type = #tpu.core_type<tc>, window_params = [{transform_indices = @transform_0, window_bounds = array<i64: 1, 100, 256>}, {pipeline_mode = #tpu.pipeline_mode<synchronous>, transform_indices = @transform_1, window_bounds = array<i64: 4, 100>}, {pipeline_mode = #tpu.pipeline_mode<synchronous>, transform_indices = @transform_2, window_bounds = array<i64: 4, 1>}, {pipeline_mode = #tpu.pipeline_mode<synchronous>, transform_indices = @transform_3, window_bounds = array<i64: 4, 1>}, {transform_indices = @transform_4, window_bounds = array<i64: 1, 4, 256>}]} {
    %c0 = arith.constant 0 : index
    %c0_0 = arith.constant 0 : index
    %c0_1 = arith.constant 0 : index
    %0 = vector.load %arg1[%c0, %c0_0, %c0_1] : memref<1x100x256xf32, #tpu.memory_space<vmem>>, vector<1x100x256xf32>
    %1 = vector.shape_cast %0 : vector<1x100x256xf32> to vector<100x256xf32>
    %c0_2 = arith.constant 0 : index
    %c0_3 = arith.constant 0 : index
    %2 = vector.load %arg2[%c0_2, %c0_3] : memref<4x100xf32, #tpu.memory_space<vmem>>, vector<4x100xf32>
    %cst = arith.constant dense<0.000000e+00> : vector<4x256xf32>
    %3 = tpu.matmul %2, %1, %cst {dimension_numbers = #tpu.dot_dimension_numbers<[1], [0], [0], [1], [0, 0, 1, 1], [], []>} : vector<4x100xf32>, vector<100x256xf32>, vector<4x256xf32> -> vector<4x256xf32>
    %c0_4 = arith.constant 0 : index
    %c0_5 = arith.constant 0 : index
    %4 = vector.load %arg3[%c0_4, %c0_5] : memref<4x1xf32, #tpu.memory_space<vmem>>, vector<4x1xf32>
    %5 = vector.broadcast %4 : vector<4x1xf32> to vector<4x256xf32>
    %6 = arith.mulf %3, %5 : vector<4x256xf32>
    %c0_6 = arith.constant 0 : index
    %c0_7 = arith.constant 0 : index
    %7 = vector.load %arg4[%c0_6, %c0_7] : memref<4x1xf32, #tpu.memory_space<vmem>>, vector<4x1xf32>
    %8 = vector.broadcast %7 : vector<4x1xf32> to vector<4x256xf32>
    %9 = arith.addf %6, %8 : vector<4x256xf32>
    %cst_8 = arith.constant 0.000000e+00 : f32
    %10 = vector.broadcast %cst_8 : f32 to vector<4x256xf32>
    %11 = arith.maximumf %9, %10 : vector<4x256xf32>
    %c0_9 = arith.constant 0 : index
    %c0_10 = arith.constant 0 : index
    %c0_11 = arith.constant 0 : index
    %12 = vector.load %arg5[%c0_9, %c0_10, %c0_11] : memref<1x4x256xf32, #tpu.memory_space<vmem>>, vector<1x4x256xf32>
    %13 = vector.shape_cast %12 : vector<1x4x256xf32> to vector<4x256xf32>
    %14 = vector.shape_cast %11 : vector<4x256xf32> to vector<1x4x256xf32>
    tpu.vector_store %arg5[%c0_9, %c0_10, %c0_11], %14 {strides = array<i32>} : memref<1x4x256xf32, #tpu.memory_space<vmem>>, vector<1x4x256xf32>,
    return
  }
  func.func @transform_0(%arg0: i32) -> (i32, i32, i32) {
    %c0_i32 = arith.constant 0 : i32
    %c0_i32_0 = arith.constant 0 : i32
    %c0_i32_1 = arith.constant 0 : i32
    return %arg0, %c0_i32, %c0_i32_0 : i32, i32, i32
  }
  func.func @transform_1(%arg0: i32) -> (i32, i32) {
    %c0_i32 = arith.constant 0 : i32
    %c0_i32_0 = arith.constant 0 : i32
    %c0_i32_1 = arith.constant 0 : i32
    return %c0_i32, %c0_i32_0 : i32, i32
  }
  func.func @transform_2(%arg0: i32) -> (i32, i32) {
    %c0_i32 = arith.constant 0 : i32
    %c0_i32_0 = arith.constant 0 : i32
    %c0_i32_1 = arith.constant 0 : i32
    return %c0_i32, %c0_i32_0 : i32, i32
  }
  func.func @transform_3(%arg0: i32) -> (i32, i32) {
    %c0_i32 = arith.constant 0 : i32
    %c0_i32_0 = arith.constant 0 : i32
    %c0_i32_1 = arith.constant 0 : i32
    return %c0_i32, %c0_i32_0 : i32, i32
  }
  func.func @transform_4(%arg0: i32) -> (i32, i32, i32) {
    %c0_i32 = arith.constant 0 : i32
    %c0_i32_0 = arith.constant 0 : i32
    %c0_i32_1 = arith.constant 0 : i32
    return %arg0, %c0_i32, %c0_i32_0 : i32, i32, i32
  }
}

module attributes {stable_mosaic.version = 11 : i64} {
  func.func @kernel(%arg0: i32, %arg1: memref<1x196x256xf32, #tpu.memory_space<vmem>>, %arg2: memref<4x196xf32, #tpu.memory_space<vmem>>, %arg3: memref<4x1xf32, #tpu.memory_space<vmem>>, %arg4: memref<4x1xf32, #tpu.memory_space<vmem>>, %arg5: memref<1x4x256xf32, #tpu.memory_space<vmem>>) attributes {dimension_semantics = [#tpu.dimension_semantics<parallel>], iteration_bounds = array<i64: 2>, scalar_prefetch = 0 : i64, scratch_operands = 0 : i64, tpu.core_type = #tpu.core_type<tc>, window_params = [{transform_indices = @transform_0, window_bounds = array<i64: 1, 196, 256>}, {pipeline_mode = #tpu.pipeline_mode<synchronous>, transform_indices = @transform_1, window_bounds = array<i64: 4, 196>}, {pipeline_mode = #tpu.pipeline_mode<synchronous>, transform_indices = @transform_2, window_bounds = array<i64: 4, 1>}, {pipeline_mode = #tpu.pipeline_mode<synchronous>, transform_indices = @transform_3, window_bounds = array<i64: 4, 1>}, {transform_indices = @transform_4, window_bounds = array<i64: 1, 4, 256>}]} {
    %c0 = arith.constant 0 : index
    %c0_0 = arith.constant 0 : index
    %c0_1 = arith.constant 0 : index
    %0 = vector.load %arg1[%c0, %c0_0, %c0_1] : memref<1x196x256xf32, #tpu.memory_space<vmem>>, vector<1x196x256xf32>
    %1 = vector.shape_cast %0 : vector<1x196x256xf32> to vector<196x256xf32>
    %c0_2 = arith.constant 0 : index
    %c0_3 = arith.constant 0 : index
    %2 = vector.load %arg2[%c0_2, %c0_3] : memref<4x196xf32, #tpu.memory_space<vmem>>, vector<4x196xf32>
    %cst = arith.constant dense<0.000000e+00> : vector<4x256xf32>
    %3 = tpu.matmul %2, %1, %cst {dimension_numbers = #tpu.dot_dimension_numbers<[1], [0], [0], [1], [0, 0, 1, 1], [], []>} : vector<4x196xf32>, vector<196x256xf32>, vector<4x256xf32> -> vector<4x256xf32>
    %c0_4 = arith.constant 0 : index
    %c0_5 = arith.constant 0 : index
    %4 = vector.load %arg3[%c0_4, %c0_5] : memref<4x1xf32, #tpu.memory_space<vmem>>, vector<4x1xf32>
    %5 = vector.broadcast %4 : vector<4x1xf32> to vector<4x256xf32>
    %6 = arith.mulf %3, %5 : vector<4x256xf32>
    %c0_6 = arith.constant 0 : index
    %c0_7 = arith.constant 0 : index
    %7 = vector.load %arg4[%c0_6, %c0_7] : memref<4x1xf32, #tpu.memory_space<vmem>>, vector<4x1xf32>
    %8 = vector.broadcast %7 : vector<4x1xf32> to vector<4x256xf32>
    %9 = arith.addf %6, %8 : vector<4x256xf32>
    %cst_8 = arith.constant 0.000000e+00 : f32
    %10 = vector.broadcast %cst_8 : f32 to vector<4x256xf32>
    %11 = arith.maximumf %9, %10 : vector<4x256xf32>
    %c0_9 = arith.constant 0 : index
    %c0_10 = arith.constant 0 : index
    %c0_11 = arith.constant 0 : index
    %12 = vector.load %arg5[%c0_9, %c0_10, %c0_11] : memref<1x4x256xf32, #tpu.memory_space<vmem>>, vector<1x4x256xf32>
    %13 = vector.shape_cast %12 : vector<1x4x256xf32> to vector<4x256xf32>
    %14 = vector.shape_cast %11 : vector<4x256xf32> to vector<1x4x256xf32>
    tpu.vector_store %arg5[%c0_9, %c0_10, %c0_11], %14 {strides = array<i32>} : memref<1x4x256xf32, #tpu.memory_space<vmem>>, vector<1x4x256xf32>,
    return
  }
  func.func @transform_0(%arg0: i32) -> (i32, i32, i32) {
    %c0_i32 = arith.constant 0 : i32
    %c0_i32_0 = arith.constant 0 : i32
    %c0_i32_1 = arith.constant 0 : i32
    return %arg0, %c0_i32, %c0_i32_0 : i32, i32, i32
  }
  func.func @transform_1(%arg0: i32) -> (i32, i32) {
    %c0_i32 = arith.constant 0 : i32
    %c0_i32_0 = arith.constant 0 : i32
    %c0_i32_1 = arith.constant 0 : i32
    return %c0_i32, %c0_i32_0 : i32, i32
  }
  func.func @transform_2(%arg0: i32) -> (i32, i32) {
    %c0_i32 = arith.constant 0 : i32
    %c0_i32_0 = arith.constant 0 : i32
    %c0_i32_1 = arith.constant 0 : i32
    return %c0_i32, %c0_i32_0 : i32, i32
  }
  func.func @transform_3(%arg0: i32) -> (i32, i32) {
    %c0_i32 = arith.constant 0 : i32
    %c0_i32_0 = arith.constant 0 : i32
    %c0_i32_1 = arith.constant 0 : i32
    return %c0_i32, %c0_i32_0 : i32, i32
  }
  func.func @transform_4(%arg0: i32) -> (i32, i32, i32) {
    %c0_i32 = arith.constant 0 : i32
    %c0_i32_0 = arith.constant 0 : i32
    %c0_i32_1 = arith.constant 0 : i32
    return %arg0, %c0_i32, %c0_i32_0 : i32, i32, i32
  }
}

module attributes {stable_mosaic.version = 11 : i64} {
  func.func @kernel(%arg0: i32, %arg1: memref<1x16x256xf32, #tpu.memory_space<vmem>>, %arg2: memref<16x16xf32, #tpu.memory_space<vmem>>, %arg3: memref<16x1xf32, #tpu.memory_space<vmem>>, %arg4: memref<16x1xf32, #tpu.memory_space<vmem>>, %arg5: memref<1x16x256xf32, #tpu.memory_space<vmem>>) attributes {dimension_semantics = [#tpu.dimension_semantics<parallel>], iteration_bounds = array<i64: 2>, scalar_prefetch = 0 : i64, scratch_operands = 0 : i64, tpu.core_type = #tpu.core_type<tc>, window_params = [{transform_indices = @transform_0, window_bounds = array<i64: 1, 16, 256>}, {pipeline_mode = #tpu.pipeline_mode<synchronous>, transform_indices = @transform_1, window_bounds = array<i64: 16, 16>}, {pipeline_mode = #tpu.pipeline_mode<synchronous>, transform_indices = @transform_2, window_bounds = array<i64: 16, 1>}, {pipeline_mode = #tpu.pipeline_mode<synchronous>, transform_indices = @transform_3, window_bounds = array<i64: 16, 1>}, {transform_indices = @transform_4, window_bounds = array<i64: 1, 16, 256>}]} {
    %c0 = arith.constant 0 : index
    %c0_0 = arith.constant 0 : index
    %c0_1 = arith.constant 0 : index
    %0 = vector.load %arg1[%c0, %c0_0, %c0_1] : memref<1x16x256xf32, #tpu.memory_space<vmem>>, vector<1x16x256xf32>
    %1 = vector.shape_cast %0 : vector<1x16x256xf32> to vector<16x256xf32>
    %c0_2 = arith.constant 0 : index
    %c0_3 = arith.constant 0 : index
    %2 = vector.load %arg2[%c0_2, %c0_3] : memref<16x16xf32, #tpu.memory_space<vmem>>, vector<16x16xf32>
    %cst = arith.constant dense<0.000000e+00> : vector<16x256xf32>
    %3 = tpu.matmul %2, %1, %cst {dimension_numbers = #tpu.dot_dimension_numbers<[1], [0], [0], [1], [0, 0, 1, 1], [], []>} : vector<16x16xf32>, vector<16x256xf32>, vector<16x256xf32> -> vector<16x256xf32>
    %c0_4 = arith.constant 0 : index
    %c0_5 = arith.constant 0 : index
    %4 = vector.load %arg3[%c0_4, %c0_5] : memref<16x1xf32, #tpu.memory_space<vmem>>, vector<16x1xf32>
    %5 = vector.broadcast %4 : vector<16x1xf32> to vector<16x256xf32>
    %6 = arith.mulf %3, %5 : vector<16x256xf32>
    %c0_6 = arith.constant 0 : index
    %c0_7 = arith.constant 0 : index
    %7 = vector.load %arg4[%c0_6, %c0_7] : memref<16x1xf32, #tpu.memory_space<vmem>>, vector<16x1xf32>
    %8 = vector.broadcast %7 : vector<16x1xf32> to vector<16x256xf32>
    %9 = arith.addf %6, %8 : vector<16x256xf32>
    %cst_8 = arith.constant 0.000000e+00 : f32
    %10 = vector.broadcast %cst_8 : f32 to vector<16x256xf32>
    %11 = arith.maximumf %9, %10 : vector<16x256xf32>
    %c0_9 = arith.constant 0 : index
    %c0_10 = arith.constant 0 : index
    %c0_11 = arith.constant 0 : index
    %12 = vector.load %arg5[%c0_9, %c0_10, %c0_11] : memref<1x16x256xf32, #tpu.memory_space<vmem>>, vector<1x16x256xf32>
    %13 = vector.shape_cast %12 : vector<1x16x256xf32> to vector<16x256xf32>
    %14 = vector.shape_cast %11 : vector<16x256xf32> to vector<1x16x256xf32>
    tpu.vector_store %arg5[%c0_9, %c0_10, %c0_11], %14 {strides = array<i32>} : memref<1x16x256xf32, #tpu.memory_space<vmem>>, vector<1x16x256xf32>,
    return
  }
  func.func @transform_0(%arg0: i32) -> (i32, i32, i32) {
    %c0_i32 = arith.constant 0 : i32
    %c0_i32_0 = arith.constant 0 : i32
    %c0_i32_1 = arith.constant 0 : i32
    return %arg0, %c0_i32, %c0_i32_0 : i32, i32, i32
  }
  func.func @transform_1(%arg0: i32) -> (i32, i32) {
    %c0_i32 = arith.constant 0 : i32
    %c0_i32_0 = arith.constant 0 : i32
    %c0_i32_1 = arith.constant 0 : i32
    return %c0_i32, %c0_i32_0 : i32, i32
  }
  func.func @transform_2(%arg0: i32) -> (i32, i32) {
    %c0_i32 = arith.constant 0 : i32
    %c0_i32_0 = arith.constant 0 : i32
    %c0_i32_1 = arith.constant 0 : i32
    return %c0_i32, %c0_i32_0 : i32, i32
  }
  func.func @transform_3(%arg0: i32) -> (i32, i32) {
    %c0_i32 = arith.constant 0 : i32
    %c0_i32_0 = arith.constant 0 : i32
    %c0_i32_1 = arith.constant 0 : i32
    return %c0_i32, %c0_i32_0 : i32, i32
  }
  func.func @transform_4(%arg0: i32) -> (i32, i32, i32) {
    %c0_i32 = arith.constant 0 : i32
    %c0_i32_0 = arith.constant 0 : i32
    %c0_i32_1 = arith.constant 0 : i32
    return %arg0, %c0_i32, %c0_i32_0 : i32, i32, i32
  }
}

module attributes {stable_mosaic.version = 11 : i64} {
  func.func @kernel(%arg0: i32, %arg1: memref<1x16x256xf32, #tpu.memory_space<vmem>>, %arg2: memref<4x16xf32, #tpu.memory_space<vmem>>, %arg3: memref<4x1xf32, #tpu.memory_space<vmem>>, %arg4: memref<4x1xf32, #tpu.memory_space<vmem>>, %arg5: memref<1x4x256xf32, #tpu.memory_space<vmem>>) attributes {dimension_semantics = [#tpu.dimension_semantics<parallel>], iteration_bounds = array<i64: 2>, scalar_prefetch = 0 : i64, scratch_operands = 0 : i64, tpu.core_type = #tpu.core_type<tc>, window_params = [{transform_indices = @transform_0, window_bounds = array<i64: 1, 16, 256>}, {pipeline_mode = #tpu.pipeline_mode<synchronous>, transform_indices = @transform_1, window_bounds = array<i64: 4, 16>}, {pipeline_mode = #tpu.pipeline_mode<synchronous>, transform_indices = @transform_2, window_bounds = array<i64: 4, 1>}, {pipeline_mode = #tpu.pipeline_mode<synchronous>, transform_indices = @transform_3, window_bounds = array<i64: 4, 1>}, {transform_indices = @transform_4, window_bounds = array<i64: 1, 4, 256>}]} {
    %c0 = arith.constant 0 : index
    %c0_0 = arith.constant 0 : index
    %c0_1 = arith.constant 0 : index
    %0 = vector.load %arg1[%c0, %c0_0, %c0_1] : memref<1x16x256xf32, #tpu.memory_space<vmem>>, vector<1x16x256xf32>
    %1 = vector.shape_cast %0 : vector<1x16x256xf32> to vector<16x256xf32>
    %c0_2 = arith.constant 0 : index
    %c0_3 = arith.constant 0 : index
    %2 = vector.load %arg2[%c0_2, %c0_3] : memref<4x16xf32, #tpu.memory_space<vmem>>, vector<4x16xf32>
    %cst = arith.constant dense<0.000000e+00> : vector<4x256xf32>
    %3 = tpu.matmul %2, %1, %cst {dimension_numbers = #tpu.dot_dimension_numbers<[1], [0], [0], [1], [0, 0, 1, 1], [], []>} : vector<4x16xf32>, vector<16x256xf32>, vector<4x256xf32> -> vector<4x256xf32>
    %c0_4 = arith.constant 0 : index
    %c0_5 = arith.constant 0 : index
    %4 = vector.load %arg3[%c0_4, %c0_5] : memref<4x1xf32, #tpu.memory_space<vmem>>, vector<4x1xf32>
    %5 = vector.broadcast %4 : vector<4x1xf32> to vector<4x256xf32>
    %6 = arith.mulf %3, %5 : vector<4x256xf32>
    %c0_6 = arith.constant 0 : index
    %c0_7 = arith.constant 0 : index
    %7 = vector.load %arg4[%c0_6, %c0_7] : memref<4x1xf32, #tpu.memory_space<vmem>>, vector<4x1xf32>
    %8 = vector.broadcast %7 : vector<4x1xf32> to vector<4x256xf32>
    %9 = arith.addf %6, %8 : vector<4x256xf32>
    %cst_8 = arith.constant 0.000000e+00 : f32
    %10 = vector.broadcast %cst_8 : f32 to vector<4x256xf32>
    %11 = arith.maximumf %9, %10 : vector<4x256xf32>
    %c0_9 = arith.constant 0 : index
    %c0_10 = arith.constant 0 : index
    %c0_11 = arith.constant 0 : index
    %12 = vector.load %arg5[%c0_9, %c0_10, %c0_11] : memref<1x4x256xf32, #tpu.memory_space<vmem>>, vector<1x4x256xf32>
    %13 = vector.shape_cast %12 : vector<1x4x256xf32> to vector<4x256xf32>
    %14 = vector.shape_cast %11 : vector<4x256xf32> to vector<1x4x256xf32>
    tpu.vector_store %arg5[%c0_9, %c0_10, %c0_11], %14 {strides = array<i32>} : memref<1x4x256xf32, #tpu.memory_space<vmem>>, vector<1x4x256xf32>,
    return
  }
  func.func @transform_0(%arg0: i32) -> (i32, i32, i32) {
    %c0_i32 = arith.constant 0 : i32
    %c0_i32_0 = arith.constant 0 : i32
    %c0_i32_1 = arith.constant 0 : i32
    return %arg0, %c0_i32, %c0_i32_0 : i32, i32, i32
  }
  func.func @transform_1(%arg0: i32) -> (i32, i32) {
    %c0_i32 = arith.constant 0 : i32
    %c0_i32_0 = arith.constant 0 : i32
    %c0_i32_1 = arith.constant 0 : i32
    return %c0_i32, %c0_i32_0 : i32, i32
  }
  func.func @transform_2(%arg0: i32) -> (i32, i32) {
    %c0_i32 = arith.constant 0 : i32
    %c0_i32_0 = arith.constant 0 : i32
    %c0_i32_1 = arith.constant 0 : i32
    return %c0_i32, %c0_i32_0 : i32, i32
  }
  func.func @transform_3(%arg0: i32) -> (i32, i32) {
    %c0_i32 = arith.constant 0 : i32
    %c0_i32_0 = arith.constant 0 : i32
    %c0_i32_1 = arith.constant 0 : i32
    return %c0_i32, %c0_i32_0 : i32, i32
  }
  func.func @transform_4(%arg0: i32) -> (i32, i32, i32) {
    %c0_i32 = arith.constant 0 : i32
    %c0_i32_0 = arith.constant 0 : i32
    %c0_i32_1 = arith.constant 0 : i32
    return %arg0, %c0_i32, %c0_i32_0 : i32, i32, i32
  }
}

module attributes {stable_mosaic.version = 11 : i64} {
  func.func @kernel(%arg0: i32, %arg1: memref<1x4x256xf32, #tpu.memory_space<vmem>>, %arg2: memref<4x4xf32, #tpu.memory_space<vmem>>, %arg3: memref<4x1xf32, #tpu.memory_space<vmem>>, %arg4: memref<4x1xf32, #tpu.memory_space<vmem>>, %arg5: memref<1x4x256xf32, #tpu.memory_space<vmem>>) attributes {dimension_semantics = [#tpu.dimension_semantics<parallel>], iteration_bounds = array<i64: 2>, scalar_prefetch = 0 : i64, scratch_operands = 0 : i64, tpu.core_type = #tpu.core_type<tc>, window_params = [{transform_indices = @transform_0, window_bounds = array<i64: 1, 4, 256>}, {pipeline_mode = #tpu.pipeline_mode<synchronous>, transform_indices = @transform_1, window_bounds = array<i64: 4, 4>}, {pipeline_mode = #tpu.pipeline_mode<synchronous>, transform_indices = @transform_2, window_bounds = array<i64: 4, 1>}, {pipeline_mode = #tpu.pipeline_mode<synchronous>, transform_indices = @transform_3, window_bounds = array<i64: 4, 1>}, {transform_indices = @transform_4, window_bounds = array<i64: 1, 4, 256>}]} {
    %c0 = arith.constant 0 : index
    %c0_0 = arith.constant 0 : index
    %c0_1 = arith.constant 0 : index
    %0 = vector.load %arg1[%c0, %c0_0, %c0_1] : memref<1x4x256xf32, #tpu.memory_space<vmem>>, vector<1x4x256xf32>
    %1 = vector.shape_cast %0 : vector<1x4x256xf32> to vector<4x256xf32>
    %c0_2 = arith.constant 0 : index
    %c0_3 = arith.constant 0 : index
    %2 = vector.load %arg2[%c0_2, %c0_3] : memref<4x4xf32, #tpu.memory_space<vmem>>, vector<4x4xf32>
    %cst = arith.constant dense<0.000000e+00> : vector<4x256xf32>
    %3 = tpu.matmul %2, %1, %cst {dimension_numbers = #tpu.dot_dimension_numbers<[1], [0], [0], [1], [0, 0, 1, 1], [], []>} : vector<4x4xf32>, vector<4x256xf32>, vector<4x256xf32> -> vector<4x256xf32>
    %c0_4 = arith.constant 0 : index
    %c0_5 = arith.constant 0 : index
    %4 = vector.load %arg3[%c0_4, %c0_5] : memref<4x1xf32, #tpu.memory_space<vmem>>, vector<4x1xf32>
    %5 = vector.broadcast %4 : vector<4x1xf32> to vector<4x256xf32>
    %6 = arith.mulf %3, %5 : vector<4x256xf32>
    %c0_6 = arith.constant 0 : index
    %c0_7 = arith.constant 0 : index
    %7 = vector.load %arg4[%c0_6, %c0_7] : memref<4x1xf32, #tpu.memory_space<vmem>>, vector<4x1xf32>
    %8 = vector.broadcast %7 : vector<4x1xf32> to vector<4x256xf32>
    %9 = arith.addf %6, %8 : vector<4x256xf32>
    %cst_8 = arith.constant 0.000000e+00 : f32
    %10 = vector.broadcast %cst_8 : f32 to vector<4x256xf32>
    %11 = arith.maximumf %9, %10 : vector<4x256xf32>
    %c0_9 = arith.constant 0 : index
    %c0_10 = arith.constant 0 : index
    %c0_11 = arith.constant 0 : index
    %12 = vector.load %arg5[%c0_9, %c0_10, %c0_11] : memref<1x4x256xf32, #tpu.memory_space<vmem>>, vector<1x4x256xf32>
    %13 = vector.shape_cast %12 : vector<1x4x256xf32> to vector<4x256xf32>
    %14 = vector.shape_cast %11 : vector<4x256xf32> to vector<1x4x256xf32>
    tpu.vector_store %arg5[%c0_9, %c0_10, %c0_11], %14 {strides = array<i32>} : memref<1x4x256xf32, #tpu.memory_space<vmem>>, vector<1x4x256xf32>,
    return
  }
  func.func @transform_0(%arg0: i32) -> (i32, i32, i32) {
    %c0_i32 = arith.constant 0 : i32
    %c0_i32_0 = arith.constant 0 : i32
    %c0_i32_1 = arith.constant 0 : i32
    return %arg0, %c0_i32, %c0_i32_0 : i32, i32, i32
  }
  func.func @transform_1(%arg0: i32) -> (i32, i32) {
    %c0_i32 = arith.constant 0 : i32
    %c0_i32_0 = arith.constant 0 : i32
    %c0_i32_1 = arith.constant 0 : i32
    return %c0_i32, %c0_i32_0 : i32, i32
  }
  func.func @transform_2(%arg0: i32) -> (i32, i32) {
    %c0_i32 = arith.constant 0 : i32
    %c0_i32_0 = arith.constant 0 : i32
    %c0_i32_1 = arith.constant 0 : i32
    return %c0_i32, %c0_i32_0 : i32, i32
  }
  func.func @transform_3(%arg0: i32) -> (i32, i32) {
    %c0_i32 = arith.constant 0 : i32
    %c0_i32_0 = arith.constant 0 : i32
    %c0_i32_1 = arith.constant 0 : i32
    return %c0_i32, %c0_i32_0 : i32, i32
  }
  func.func @transform_4(%arg0: i32) -> (i32, i32, i32) {
    %c0_i32 = arith.constant 0 : i32
    %c0_i32_0 = arith.constant 0 : i32
    %c0_i32_1 = arith.constant 0 : i32
    return %arg0, %c0_i32, %c0_i32_0 : i32, i32, i32
  }
}

module attributes {stable_mosaic.version = 11 : i64} {
  func.func @_refine_kernel(%arg0: i32, %arg1: memref<1xf32, #tpu.memory_space<smem>>, %arg2: memref<1xf32, #tpu.memory_space<smem>>, %arg3: memref<1x16x256xf32, #tpu.memory_space<vmem>>, %arg4: memref<1x16x256xf32, #tpu.memory_space<vmem>>, %arg5: memref<1x16x256xf32, #tpu.memory_space<vmem>>, %arg6: memref<16x1xf32, #tpu.memory_space<vmem>>, %arg7: memref<16x1xf32, #tpu.memory_space<vmem>>, %arg8: memref<16x1xf32, #tpu.memory_space<vmem>>, %arg9: memref<16x1xf32, #tpu.memory_space<vmem>>, %arg10: memref<1x16x256xf32, #tpu.memory_space<vmem>>) attributes {dimension_semantics = [#tpu.dimension_semantics<parallel>], iteration_bounds = array<i64: 2>, scalar_prefetch = 0 : i64, scratch_operands = 0 : i64, tpu.core_type = #tpu.core_type<tc>, window_params = [{transform_indices = @transform_0, window_bounds = array<i64: 1>}, {transform_indices = @transform_1, window_bounds = array<i64: 1>}, {transform_indices = @transform_2, window_bounds = array<i64: 1, 16, 256>}, {transform_indices = @transform_3, window_bounds = array<i64: 1, 16, 256>}, {transform_indices = @transform_4, window_bounds = array<i64: 1, 16, 256>}, {pipeline_mode = #tpu.pipeline_mode<synchronous>, transform_indices = @transform_5, window_bounds = array<i64: 16, 1>}, {pipeline_mode = #tpu.pipeline_mode<synchronous>, transform_indices = @transform_6, window_bounds = array<i64: 16, 1>}, {pipeline_mode = #tpu.pipeline_mode<synchronous>, transform_indices = @transform_7, window_bounds = array<i64: 16, 1>}, {pipeline_mode = #tpu.pipeline_mode<synchronous>, transform_indices = @transform_8, window_bounds = array<i64: 16, 1>}, {transform_indices = @transform_9, window_bounds = array<i64: 1, 16, 256>}]} {
    %c0 = arith.constant 0 : index
    %0 = memref.load %arg1[%c0] : memref<1xf32, #tpu.memory_space<smem>>
    %c0_0 = arith.constant 0 : index
    %1 = memref.load %arg2[%c0_0] : memref<1xf32, #tpu.memory_space<smem>>
    %c0_1 = arith.constant 0 : index
    %c0_2 = arith.constant 0 : index
    %c0_3 = arith.constant 0 : index
    %2 = vector.load %arg3[%c0_1, %c0_2, %c0_3] : memref<1x16x256xf32, #tpu.memory_space<vmem>>, vector<1x16x256xf32>
    %3 = vector.shape_cast %2 : vector<1x16x256xf32> to vector<16x256xf32>
    %c0_4 = arith.constant 0 : index
    %c0_5 = arith.constant 0 : index
    %c0_6 = arith.constant 0 : index
    %4 = vector.load %arg4[%c0_4, %c0_5, %c0_6] : memref<1x16x256xf32, #tpu.memory_space<vmem>>, vector<1x16x256xf32>
    %5 = vector.shape_cast %4 : vector<1x16x256xf32> to vector<16x256xf32>
    %c0_7 = arith.constant 0 : index
    %c0_8 = arith.constant 0 : index
    %c0_9 = arith.constant 0 : index
    %6 = vector.load %arg5[%c0_7, %c0_8, %c0_9] : memref<1x16x256xf32, #tpu.memory_space<vmem>>, vector<1x16x256xf32>
    %7 = vector.shape_cast %6 : vector<1x16x256xf32> to vector<16x256xf32>
    %c0_10 = arith.constant 0 : index
    %c0_11 = arith.constant 0 : index
    %8 = vector.load %arg6[%c0_10, %c0_11] : memref<16x1xf32, #tpu.memory_space<vmem>>, vector<16x1xf32>
    %9 = vector.broadcast %0 : f32 to vector<16x256xf32>
    %10 = arith.mulf %9, %5 : vector<16x256xf32>
    %11 = arith.subf %3, %10 : vector<16x256xf32>
    %12 = vector.broadcast %8 : vector<16x1xf32> to vector<16x256xf32>
    %13 = arith.mulf %12, %11 : vector<16x256xf32>
    %c0_12 = arith.constant 0 : index
    %c0_13 = arith.constant 0 : index
    %14 = vector.load %arg7[%c0_12, %c0_13] : memref<16x1xf32, #tpu.memory_space<vmem>>, vector<16x1xf32>
    %15 = vector.broadcast %14 : vector<16x1xf32> to vector<16x256xf32>
    %16 = arith.addf %13, %15 : vector<16x256xf32>
    %cst = arith.constant 0.000000e+00 : f32
    %17 = vector.broadcast %cst : f32 to vector<16x256xf32>
    %18 = arith.maximumf %16, %17 : vector<16x256xf32>
    %c0_14 = arith.constant 0 : index
    %c0_15 = arith.constant 0 : index
    %19 = vector.load %arg8[%c0_14, %c0_15] : memref<16x1xf32, #tpu.memory_space<vmem>>, vector<16x1xf32>
    %20 = vector.broadcast %1 : f32 to vector<16x256xf32>
    %21 = arith.mulf %20, %7 : vector<16x256xf32>
    %22 = arith.addf %18, %21 : vector<16x256xf32>
    %23 = vector.broadcast %19 : vector<16x1xf32> to vector<16x256xf32>
    %24 = arith.mulf %23, %22 : vector<16x256xf32>
    %c0_16 = arith.constant 0 : index
    %c0_17 = arith.constant 0 : index
    %25 = vector.load %arg9[%c0_16, %c0_17] : memref<16x1xf32, #tpu.memory_space<vmem>>, vector<16x1xf32>
    %26 = vector.broadcast %25 : vector<16x1xf32> to vector<16x256xf32>
    %27 = arith.addf %24, %26 : vector<16x256xf32>
    %cst_18 = arith.constant 0.000000e+00 : f32
    %28 = vector.broadcast %cst_18 : f32 to vector<16x256xf32>
    %29 = arith.maximumf %27, %28 : vector<16x256xf32>
    %c0_19 = arith.constant 0 : index
    %c0_20 = arith.constant 0 : index
    %c0_21 = arith.constant 0 : index
    %30 = vector.load %arg10[%c0_19, %c0_20, %c0_21] : memref<1x16x256xf32, #tpu.memory_space<vmem>>, vector<1x16x256xf32>
    %31 = vector.shape_cast %30 : vector<1x16x256xf32> to vector<16x256xf32>
    %32 = vector.shape_cast %29 : vector<16x256xf32> to vector<1x16x256xf32>
    tpu.vector_store %arg10[%c0_19, %c0_20, %c0_21], %32 {strides = array<i32>} : memref<1x16x256xf32, #tpu.memory_space<vmem>>, vector<1x16x256xf32>,
    return
  }
  func.func @transform_0(%arg0: i32) -> i32 {
    %c0_i32 = arith.constant 0 : i32
    %c0_i32_0 = arith.constant 0 : i32
    return %c0_i32 : i32
  }
  func.func @transform_1(%arg0: i32) -> i32 {
    %c0_i32 = arith.constant 0 : i32
    %c0_i32_0 = arith.constant 0 : i32
    return %c0_i32 : i32
  }
  func.func @transform_2(%arg0: i32) -> (i32, i32, i32) {
    %c0_i32 = arith.constant 0 : i32
    %c0_i32_0 = arith.constant 0 : i32
    %c0_i32_1 = arith.constant 0 : i32
    return %arg0, %c0_i32, %c0_i32_0 : i32, i32, i32
  }
  func.func @transform_3(%arg0: i32) -> (i32, i32, i32) {
    %c0_i32 = arith.constant 0 : i32
    %c0_i32_0 = arith.constant 0 : i32
    %c0_i32_1 = arith.constant 0 : i32
    return %arg0, %c0_i32, %c0_i32_0 : i32, i32, i32
  }
  func.func @transform_4(%arg0: i32) -> (i32, i32, i32) {
    %c0_i32 = arith.constant 0 : i32
    %c0_i32_0 = arith.constant 0 : i32
    %c0_i32_1 = arith.constant 0 : i32
    return %arg0, %c0_i32, %c0_i32_0 : i32, i32, i32
  }
  func.func @transform_5(%arg0: i32) -> (i32, i32) {
    %c0_i32 = arith.constant 0 : i32
    %c0_i32_0 = arith.constant 0 : i32
    %c0_i32_1 = arith.constant 0 : i32
    return %c0_i32, %c0_i32_0 : i32, i32
  }
  func.func @transform_6(%arg0: i32) -> (i32, i32) {
    %c0_i32 = arith.constant 0 : i32
    %c0_i32_0 = arith.constant 0 : i32
    %c0_i32_1 = arith.constant 0 : i32
    return %c0_i32, %c0_i32_0 : i32, i32
  }
  func.func @transform_7(%arg0: i32) -> (i32, i32) {
    %c0_i32 = arith.constant 0 : i32
    %c0_i32_0 = arith.constant 0 : i32
    %c0_i32_1 = arith.constant 0 : i32
    return %c0_i32, %c0_i32_0 : i32, i32
  }
  func.func @transform_8(%arg0: i32) -> (i32, i32) {
    %c0_i32 = arith.constant 0 : i32
    %c0_i32_0 = arith.constant 0 : i32
    %c0_i32_1 = arith.constant 0 : i32
    return %c0_i32, %c0_i32_0 : i32, i32
  }
  func.func @transform_9(%arg0: i32) -> (i32, i32, i32) {
    %c0_i32 = arith.constant 0 : i32
    %c0_i32_0 = arith.constant 0 : i32
    %c0_i32_1 = arith.constant 0 : i32
    return %arg0, %c0_i32, %c0_i32_0 : i32, i32, i32
  }
}

module attributes {stable_mosaic.version = 11 : i64} {
  func.func @kernel(%arg0: i32, %arg1: memref<1x784x256xf32, #tpu.memory_space<vmem>>, %arg2: memref<1x784xf32, #tpu.memory_space<vmem>>, %arg3: memref<1x1xf32, #tpu.memory_space<vmem>>, %arg4: memref<1x1xf32, #tpu.memory_space<vmem>>, %arg5: memref<1x1x256xf32, #tpu.memory_space<vmem>>) attributes {dimension_semantics = [#tpu.dimension_semantics<parallel>], iteration_bounds = array<i64: 2>, scalar_prefetch = 0 : i64, scratch_operands = 0 : i64, tpu.core_type = #tpu.core_type<tc>, window_params = [{transform_indices = @transform_0, window_bounds = array<i64: 1, 784, 256>}, {pipeline_mode = #tpu.pipeline_mode<synchronous>, transform_indices = @transform_1, window_bounds = array<i64: 1, 784>}, {pipeline_mode = #tpu.pipeline_mode<synchronous>, transform_indices = @transform_2, window_bounds = array<i64: 1, 1>}, {pipeline_mode = #tpu.pipeline_mode<synchronous>, transform_indices = @transform_3, window_bounds = array<i64: 1, 1>}, {transform_indices = @transform_4, window_bounds = array<i64: 1, 1, 256>}]} {
    %c0 = arith.constant 0 : index
    %c0_0 = arith.constant 0 : index
    %c0_1 = arith.constant 0 : index
    %0 = vector.load %arg1[%c0, %c0_0, %c0_1] : memref<1x784x256xf32, #tpu.memory_space<vmem>>, vector<1x784x256xf32>
    %1 = vector.shape_cast %0 : vector<1x784x256xf32> to vector<784x256xf32>
    %c0_2 = arith.constant 0 : index
    %c0_3 = arith.constant 0 : index
    %2 = vector.load %arg2[%c0_2, %c0_3] : memref<1x784xf32, #tpu.memory_space<vmem>>, vector<1x784xf32>
    %cst = arith.constant dense<0.000000e+00> : vector<1x256xf32>
    %3 = tpu.matmul %2, %1, %cst {dimension_numbers = #tpu.dot_dimension_numbers<[1], [0], [0], [1], [0, 0, 1, 1], [], []>} : vector<1x784xf32>, vector<784x256xf32>, vector<1x256xf32> -> vector<1x256xf32>
    %c0_4 = arith.constant 0 : index
    %c0_5 = arith.constant 0 : index
    %4 = vector.load %arg3[%c0_4, %c0_5] : memref<1x1xf32, #tpu.memory_space<vmem>>, vector<1x1xf32>
    %5 = vector.broadcast %4 : vector<1x1xf32> to vector<1x256xf32>
    %6 = arith.mulf %3, %5 : vector<1x256xf32>
    %c0_6 = arith.constant 0 : index
    %c0_7 = arith.constant 0 : index
    %7 = vector.load %arg4[%c0_6, %c0_7] : memref<1x1xf32, #tpu.memory_space<vmem>>, vector<1x1xf32>
    %8 = vector.broadcast %7 : vector<1x1xf32> to vector<1x256xf32>
    %9 = arith.addf %6, %8 : vector<1x256xf32>
    %c0_8 = arith.constant 0 : index
    %c0_9 = arith.constant 0 : index
    %c0_10 = arith.constant 0 : index
    %10 = vector.load %arg5[%c0_8, %c0_9, %c0_10] : memref<1x1x256xf32, #tpu.memory_space<vmem>>, vector<1x1x256xf32>
    %11 = vector.shape_cast %10 : vector<1x1x256xf32> to vector<1x256xf32>
    %12 = vector.shape_cast %9 : vector<1x256xf32> to vector<1x1x256xf32>
    tpu.vector_store %arg5[%c0_8, %c0_9, %c0_10], %12 {strides = array<i32>} : memref<1x1x256xf32, #tpu.memory_space<vmem>>, vector<1x1x256xf32>,
    return
  }
  func.func @transform_0(%arg0: i32) -> (i32, i32, i32) {
    %c0_i32 = arith.constant 0 : i32
    %c0_i32_0 = arith.constant 0 : i32
    %c0_i32_1 = arith.constant 0 : i32
    return %arg0, %c0_i32, %c0_i32_0 : i32, i32, i32
  }
  func.func @transform_1(%arg0: i32) -> (i32, i32) {
    %c0_i32 = arith.constant 0 : i32
    %c0_i32_0 = arith.constant 0 : i32
    %c0_i32_1 = arith.constant 0 : i32
    return %c0_i32, %c0_i32_0 : i32, i32
  }
  func.func @transform_2(%arg0: i32) -> (i32, i32) {
    %c0_i32 = arith.constant 0 : i32
    %c0_i32_0 = arith.constant 0 : i32
    %c0_i32_1 = arith.constant 0 : i32
    return %c0_i32, %c0_i32_0 : i32, i32
  }
  func.func @transform_3(%arg0: i32) -> (i32, i32) {
    %c0_i32 = arith.constant 0 : i32
    %c0_i32_0 = arith.constant 0 : i32
    %c0_i32_1 = arith.constant 0 : i32
    return %c0_i32, %c0_i32_0 : i32, i32
  }
  func.func @transform_4(%arg0: i32) -> (i32, i32, i32) {
    %c0_i32 = arith.constant 0 : i32
    %c0_i32_0 = arith.constant 0 : i32
    %c0_i32_1 = arith.constant 0 : i32
    return %arg0, %c0_i32, %c0_i32_0 : i32, i32, i32
  }
}

module attributes {stable_mosaic.version = 11 : i64} {
  func.func @kernel(%arg0: i32, %arg1: memref<1x16x256xf32, #tpu.memory_space<vmem>>, %arg2: memref<3x16xf32, #tpu.memory_space<vmem>>, %arg3: memref<3x1xf32, #tpu.memory_space<vmem>>, %arg4: memref<3x1xf32, #tpu.memory_space<vmem>>, %arg5: memref<1x3x256xf32, #tpu.memory_space<vmem>>) attributes {dimension_semantics = [#tpu.dimension_semantics<parallel>], iteration_bounds = array<i64: 2>, scalar_prefetch = 0 : i64, scratch_operands = 0 : i64, tpu.core_type = #tpu.core_type<tc>, window_params = [{transform_indices = @transform_0, window_bounds = array<i64: 1, 16, 256>}, {pipeline_mode = #tpu.pipeline_mode<synchronous>, transform_indices = @transform_1, window_bounds = array<i64: 3, 16>}, {pipeline_mode = #tpu.pipeline_mode<synchronous>, transform_indices = @transform_2, window_bounds = array<i64: 3, 1>}, {pipeline_mode = #tpu.pipeline_mode<synchronous>, transform_indices = @transform_3, window_bounds = array<i64: 3, 1>}, {transform_indices = @transform_4, window_bounds = array<i64: 1, 3, 256>}]} {
    %c0 = arith.constant 0 : index
    %c0_0 = arith.constant 0 : index
    %c0_1 = arith.constant 0 : index
    %0 = vector.load %arg1[%c0, %c0_0, %c0_1] : memref<1x16x256xf32, #tpu.memory_space<vmem>>, vector<1x16x256xf32>
    %1 = vector.shape_cast %0 : vector<1x16x256xf32> to vector<16x256xf32>
    %c0_2 = arith.constant 0 : index
    %c0_3 = arith.constant 0 : index
    %2 = vector.load %arg2[%c0_2, %c0_3] : memref<3x16xf32, #tpu.memory_space<vmem>>, vector<3x16xf32>
    %cst = arith.constant dense<0.000000e+00> : vector<3x256xf32>
    %3 = tpu.matmul %2, %1, %cst {dimension_numbers = #tpu.dot_dimension_numbers<[1], [0], [0], [1], [0, 0, 1, 1], [], []>} : vector<3x16xf32>, vector<16x256xf32>, vector<3x256xf32> -> vector<3x256xf32>
    %c0_4 = arith.constant 0 : index
    %c0_5 = arith.constant 0 : index
    %4 = vector.load %arg3[%c0_4, %c0_5] : memref<3x1xf32, #tpu.memory_space<vmem>>, vector<3x1xf32>
    %5 = vector.broadcast %4 : vector<3x1xf32> to vector<3x256xf32>
    %6 = arith.mulf %3, %5 : vector<3x256xf32>
    %c0_6 = arith.constant 0 : index
    %c0_7 = arith.constant 0 : index
    %7 = vector.load %arg4[%c0_6, %c0_7] : memref<3x1xf32, #tpu.memory_space<vmem>>, vector<3x1xf32>
    %8 = vector.broadcast %7 : vector<3x1xf32> to vector<3x256xf32>
    %9 = arith.addf %6, %8 : vector<3x256xf32>
    %c0_8 = arith.constant 0 : index
    %c0_9 = arith.constant 0 : index
    %c0_10 = arith.constant 0 : index
    %10 = vector.load %arg5[%c0_8, %c0_9, %c0_10] : memref<1x3x256xf32, #tpu.memory_space<vmem>>, vector<1x3x256xf32>
    %11 = vector.shape_cast %10 : vector<1x3x256xf32> to vector<3x256xf32>
    %12 = vector.shape_cast %9 : vector<3x256xf32> to vector<1x3x256xf32>
    tpu.vector_store %arg5[%c0_8, %c0_9, %c0_10], %12 {strides = array<i32>} : memref<1x3x256xf32, #tpu.memory_space<vmem>>, vector<1x3x256xf32>,
    return
  }
  func.func @transform_0(%arg0: i32) -> (i32, i32, i32) {
    %c0_i32 = arith.constant 0 : i32
    %c0_i32_0 = arith.constant 0 : i32
    %c0_i32_1 = arith.constant 0 : i32
    return %arg0, %c0_i32, %c0_i32_0 : i32, i32, i32
  }
  func.func @transform_1(%arg0: i32) -> (i32, i32) {
    %c0_i32 = arith.constant 0 : i32
    %c0_i32_0 = arith.constant 0 : i32
    %c0_i32_1 = arith.constant 0 : i32
    return %c0_i32, %c0_i32_0 : i32, i32
  }
  func.func @transform_2(%arg0: i32) -> (i32, i32) {
    %c0_i32 = arith.constant 0 : i32
    %c0_i32_0 = arith.constant 0 : i32
    %c0_i32_1 = arith.constant 0 : i32
    return %c0_i32, %c0_i32_0 : i32, i32
  }
  func.func @transform_3(%arg0: i32) -> (i32, i32) {
    %c0_i32 = arith.constant 0 : i32
    %c0_i32_0 = arith.constant 0 : i32
    %c0_i32_1 = arith.constant 0 : i32
    return %c0_i32, %c0_i32_0 : i32, i32
  }
  func.func @transform_4(%arg0: i32) -> (i32, i32, i32) {
    %c0_i32 = arith.constant 0 : i32
    %c0_i32_0 = arith.constant 0 : i32
    %c0_i32_1 = arith.constant 0 : i32
    return %arg0, %c0_i32, %c0_i32_0 : i32, i32, i32
  }
}

</mosaic_0001>

<bundles_post_ra>
// kernel: _lambda_.44
= control target key start
LH: loop header
LB: loop body
LE: loop exit
PB: predicated region body
PF: predicated region fallthrough
CT: control target
= control target key end

     0   :  { %9 = vsyncpa [#allocation3], 0  ;;  %s692_s0 = inlined_call_operand.vmem [shape: f32[2,16,256], index: 0, kind: input, shape index: {}]   ;;  %s693_s1 = inlined_call_operand.hbm [shape: f32[4,16], index: 1, kind: input, shape index: {}]   ;;  %s694_s2 = inlined_call_operand.hbm [shape: f32[4,1], index: 2, kind: input, shape index: {}]   ;;  %s695_s3 = inlined_call_operand.hbm [shape: f32[4,1], index: 3, kind: input, shape index: {}]   ;;  %s696_s4 = inlined_call_operand.vmem [shape: f32[2,4,256], index: 4, kind: output, shape index: {}]  }
   0x1   :  { %10 = vsyncpa [#allocation5], 0  ;;  %s611_s15 = smov 0  }
   0x2 LB: > { %s617_s16 = sadd.s32 4294967295, %s579_s15   ;;  %p427_p0 = scmp.ge.s32.totalorder %s579_s15, 1  ;;  %s579_s15 = sphi %s611_s15, %s16_s15  }
   0x3   : > { %p136_p1 = scmp.lt.s32.totalorder %s579_s15, 3  ;;  %p697_p2 = scmp.eq.s32.totalorder %s617_s16, 0 }
   0x4   : > { %s581_s18 = smov [#allocation4]   ;;  %s582_s20 = smov [#allocation2]  }
   0x5   : > { %p622_p3 = pnand %p427_p0, %p136_p1  ;;  %s160_s19 = sshll.u32 %s581_s18, 4  ;;  %s161_s19 = int_to_ptr.vmem [resolvable:$true] %s160_s19 }
   0x6   : > { %s149_s21 = sshll.u32 %s582_s20, 4  ;;  %s583_s22 = smov [#allocation6]   ;;  %s150_s21 = int_to_ptr.vmem [resolvable:$true] %s149_s21 }
   0x7   : > { %s699_s17 = scalar_select %p622_p3, 1, 0 }
   0x8   : > { %p457_p4 = pneg %p622_p3  ;;  %s171_s23 = sshll.u32 %s583_s22, 4  ;;  %s634_s23 = int_to_ptr.vmem [resolvable:$true] %s171_s23 }
   0x9   : > { %s498_s25 = scalar_lea.vmem %s161_s19, 64  ;;  %p506_p10 = scmp.lt.s32.totalorder %s161_s19, %s161_s19 }
   0xa   : > { %p630_p5 = pnand %p697_p2, %p457_p4  ;;  %p499_p7 = scmp.ne.s32.totalorder %s161_s19, %s498_s25 }
   0xb   : > { %p507_p11 = scmp.lt.s32.totalorder %s498_s25, %s498_s25 }
   0xc   : > { %p489_p6 = pneg %p630_p5 }
   0xd   : > { %p508_p12 = por %p507_p11, %p506_p10 }
   0xe   : > { %p501_p8 = pnand %p499_p7, %p489_p6 }
  0x10   : > { %p502_p9 = pneg %p501_p8 }
  0x12   : > { %p509_p13 = pnand %p508_p12, %p502_p9 }
  0x14   : > { %512 = shalt.err (!%p509_p13)
}
  0x15   : > { %463 = dma.hbm_to_vmem [thread:$0]  (!%p630_p5), %s694_s2, 64, %s161_s19, [#allocation5]  }
  0x16   : > { %s524_s28 = scalar_lea.vmem %s150_s21, 64  ;;  %p532_p7 = scmp.lt.s32.totalorder %s150_s21, %s150_s21 }
  0x17   : > { %p525_p0 = scmp.ne.s32.totalorder %s150_s21, %s524_s28  ;;  %p533_p8 = scmp.lt.s32.totalorder %s524_s28, %s524_s28 }
  0x19   : > { %p527_p1 = pnand %p525_p0, %p489_p6  ;;  %p534_p2 = por %p533_p8, %p532_p7 }
  0x1b   : > { %p528_p4 = pneg %p527_p1 }
  0x1d   : > { %p535_p3 = pnand %p534_p2, %p528_p4 }
  0x1f   : > { %538 = shalt.err (!%p535_p3)
}
  0x20   : > { %460 = dma.hbm_to_vmem [thread:$0]  (!%p630_p5), %s693_s1, 64, %s150_s21, [#allocation3]  }
  0x21   : > { %s550_s5 = scalar_lea.vmem %s634_s23, 64  ;;  %p558_p12 = scmp.lt.s32.totalorder %s634_s23, %s634_s23 }
  0x22   : > { %p551_p9 = scmp.ne.s32.totalorder %s634_s23, %s550_s5  ;;  %p559_p2 = scmp.lt.s32.totalorder %s550_s5, %s550_s5 }
  0x24   : > { %p553_p10 = pnand %p551_p9, %p489_p6  ;;  %p560_p3 = por %p559_p2, %p558_p12 }
  0x26   : > { %p554_p11 = pneg %p553_p10 }
  0x28   : > { %p561_p13 = pnand %p560_p3, %p554_p11 }
  0x2a   : > { %564 = shalt.err (!%p561_p13)
}
  0x2b   : > { %466 = dma.hbm_to_vmem [thread:$0]  (!%p630_p5), %s695_s3, 64, %s634_s23, [#allocation5]  }
  0x2c   : > { %p701_p0 = scmp.ne.s32.totalorder %s699_s17, 0 }
  0x2d   : > { %p702_p1 = scmp.eq.s32.totalorder (!%p701_p0), %s617_s16, 0 }
  0x2e   : > { %192 = sbr.rel (%p701_p0) target bundleno = 269 (0x10d), region = 36 }
  0x33   : > { %570 = dma.done.wait (%p702_p1), [#allocation3], 64   ;;  %p703_p6 = pmov %p702_p1 }
  0x34   : > { %p704_p4 = pmov %p702_p1 }
  0x35   : > { %572 = vsyncadd (%p703_p6), [#allocation3], 4294967232 }
  0x36   : > { %574 = dma.done.wait (%p704_p4), [#allocation5], 128   ;;  %p705_p7 = pmov %p702_p1 }
  0x37   : > { %p226_p8 = scmp.lt.s32.totalorder %s617_s16, 1  ;;  %v584_v0 = vmov 0.0   ;;  %v585_v1 = vmov 0   ;;  %v316_v6 = vld [vmem:[#allocation4] sm:$0xf]  ;;  %vm241_vm0 = vcmask 130048  }
  0x38   : > { %576 = vsyncadd (%p705_p7), [#allocation5], 4294967168  ;;  %309 = vmatprep.mubr.f32.mxu0 %v584_v0  ;;  %486 = vset.pattern.permute.xlu0 %v585_v1  ;;  %v240_v7 = vld [vmem:[#allocation2] sm:$0xf]  ;;  %v324_v8 = vld [vmem:[#allocation6] sm:$0xf] }
  0x39   : > { %s707_s16 = smov (!%p226_p8, %s617_s16), 1  ;;  %319 = vperm.xlu0 %486, %v316_v6  }
  0x3a   : > { %s443_s8 = sshll.u32 %s707_s16, 5  ;;  %s444_s12 = sshll.u32 %s707_s16, 3 }
  0x3b   : > { %s230_s11 = scalar_lea.vmem %s692_s0, %s443_s8  ;;  %s235_s17 = scalar_lea.vmem %s696_s4, %s444_s12 }
  0x3c   : > { %v239_v2 = vld [vmem:[%s230_s11 + $0x18] sm:$0xff]  ;;  %v238_v3 = vld [vmem:[%s230_s11 + $0x10] sm:$0xff]  ;;  %v237_v4 = vld [vmem:[%s230_s11 + $0x8] sm:$0xff] }
  0x3d   : > { %273 = vmatprep.subr.mxu0 %v239_v2  ;;  %v236_v5 = vld [vmem:[%s230_s11] sm:$0xff]  ;;  %327 = vperm.xlu0 %486, %v324_v8  }
  0x3e   : > { %274 = vmatpush1.msra.mxu0 %v238_v3 }
  0x3f   : > { %275 = vmatprep.subr.mxu0 %v237_v4 }
  0x40   : > { %276 = vmatpush1.msra.mxu0 %v236_v5 }
  0x41   : > { %440 = vmatmul.mubr.msk.f32.vlgmr.msra.gmra.mxu0 %vm241_vm0, %v240_v7 }
  0xb4   : > { %v320_v9 = vpop.permute.xlu0 %319 }
  0xb8   : > { %v328_v12 = vpop.permute.xlu0 %327 }
 0x101   : > { %v311_v10 = vpop.f32.mrf.mxu0 }
 0x102   : > { %v322_v11 = vmul.f32 %v320_v9, %v311_v10 }
 0x103   : > { %v313_v13 = vpop.f32.mrf.mxu0 }
 0x104   : > { %v330_v14 = vadd.f32 %v328_v12, %v322_v11  ;;  %v323_v15 = vmul.f32 %v320_v9, %v313_v13 }
 0x106   : > { %v331_v16 = vadd.f32 %v328_v12, %v323_v15  ;;  %v332_v17 = vmax.f32 %v330_v14, 0.0 }
 0x108   : > { %v333_v18 = vmax.f32 %v331_v16, 0.0 }
 0x10a   : > { %v336_v19 = vcombine.low %v332_v17, %v333_v18 }
 0x10c   : > { %338 = vst [vmem:[%s235_s17] sm:$0xff] %v336_v19 }
 0x10d PF: > { %s16_s15 = sadd.s32 1, %s579_s15  }
 0x10e   : > { %p13_p5 = scmp.ge.s32.totalorder %s16_s15, 4  }
 0x110   :  { %15 = sbr.rel (!%p13_p5) target bundleno = 2 (0x2), region = 79 }
 0x115   :  { %360 = vsyncpa [#allocation3], 1 }
 0x116   :  { %362 = vsyncpa [#allocation3 + $0x1], 1 }
 0x117   :  { %363 = vsyncpa [#allocation5], 1 }

// kernel: _lambda_.30
= control target key start
LH: loop header
LB: loop body
LE: loop exit
PB: predicated region body
PF: predicated region fallthrough
CT: control target
= control target key end

     0   :  { %s408_s12 = smov 0   ;;  %s431_s0 = inlined_call_operand.vmem [shape: f32[2,16,256], index: 0, kind: input, shape index: {}]   ;;  %s432_s1 = inlined_call_operand.vmem [shape: f32[2,1,256], index: 1, kind: input, shape index: {}]   ;;  %s433_s2 = inlined_call_operand.vmem [shape: f32[2,16,256], index: 2, kind: output, shape index: {0}]   ;;  %s434_s3 = inlined_call_operand.vmem [shape: f32[2,16,256], index: 3, kind: output, shape index: {1}]  }
   0x1 LB: > { %s351_s13 = sadd.s32 4294967295, %s386_s12   ;;  %p355_p0 = scmp.ge.s32.totalorder %s386_s12, 1  ;;  %s386_s12 = sphi %s408_s12, %s14_s12  }
   0x2   : > { %p149_p1 = scmp.lt.s32.totalorder %s386_s12, 3 }
   0x4   : > { %p150_p2 = pnand %p355_p0, %p149_p1 }
   0x5   : > { %p182_p3 = scmp.lt.s32.totalorder (!%p150_p2), %s351_s13, 1 }
   0x6   : > { %153 = sbr.rel (%p150_p2) target bundleno = 58 (0x3a), region = 28 }
   0xb   : > { %s436_s13 = smov (!%p182_p3, %s351_s13), 1  ;;  %v213_v5 = vlaneseq }
   0xc   : > { %s358_s14 = sshll.u32 %s436_s13, 1  ;;  %s365_s18 = sshll.u32 %s436_s13, 5 }
   0xd   : > { %s190_s17 = scalar_lea.vmem %s432_s1, %s358_s14  ;;  %v214_v6 = vshrl.u32 %v213_v5, 7  ;;  %s186_s21 = scalar_lea.vmem %s431_s0, %s365_s18 }
   0xe   : > { %v205_v0 = vld [vmem:[%s190_s17] sm:$0x3]  ;;  %v202_v11 = vld [vmem:[%s186_s21 + $0x8] sm:$0xff]  ;;  %v203_v12 = vld [vmem:[%s186_s21 + $0x10] sm:$0xff]  ;;  %s195_s24 = scalar_lea.vmem %s433_s2, %s365_s18  ;;  %s200_s27 = scalar_lea.vmem %s434_s3, %s365_s18 }
   0xf   : > { %v206_v1 = vsub.f32 0.0, %v205_v0  ;;  %v215_v7 = vsub.s32 0, %v214_v6  ;;  %v219_v8 = vsub.s32 1, %v214_v6  ;;  %v201_v9 = vld [vmem:[%s186_s21] sm:$0xff]  ;;  %v204_v13 = vld [vmem:[%s186_s21 + $0x18] sm:$0xff] }
  0x11   : > { %v207_v2 = vmul.f32 1.442695, %v206_v1 }
  0x13   : > { %376 = vpow2.f32 %v207_v2 }
  0x20   : > { %v377_v3 = vpop.eup %376 }
  0x21   : > { %v209_v4 = vadd.f32 1.0, %v377_v3 }
  0x23   : > { %378 = vrcp.f32 %v209_v4 }
  0x30   : > { %v379_v10 = vpop.eup %378 }
  0x31   : > { %v216_v14 = vrot.slane %v379_v10, %v215_v7  ;;  %v220_v15 = vrot.slane %v379_v10, %v219_v8  ;;  %v231_v16 = vsub.f32 1.0, %v379_v10 }
  0x33   : > { %v223_v17 = vmul.f32 %v216_v14, %v201_v9  ;;  %v224_v18 = vmul.f32 %v220_v15, %v202_v11  ;;  %v225_v19 = vmul.f32 %v216_v14, %v203_v12  ;;  %v226_v20 = vmul.f32 %v220_v15, %v204_v13 }
  0x34   : > { %v236_v21 = vrot.slane %v231_v16, %v215_v7  ;;  %v240_v22 = vrot.slane %v231_v16, %v219_v8 }
  0x35   : > { %227 = vst [vmem:[%s195_s24] sm:$0xff] %v223_v17  ;;  %228 = vst [vmem:[%s195_s24 + $0x8] sm:$0xff] %v224_v18 }
  0x36   : > { %229 = vst [vmem:[%s195_s24 + $0x10] sm:$0xff] %v225_v19  ;;  %230 = vst [vmem:[%s195_s24 + $0x18] sm:$0xff] %v226_v20  ;;  %v243_v23 = vmul.f32 %v236_v21, %v201_v9  ;;  %v244_v24 = vmul.f32 %v240_v22, %v202_v11  ;;  %v245_v25 = vmul.f32 %v236_v21, %v203_v12 }
  0x37   : > { %v246_v26 = vmul.f32 %v240_v22, %v204_v13 }
  0x38   : > { %247 = vst [vmem:[%s200_s27] sm:$0xff] %v243_v23  ;;  %248 = vst [vmem:[%s200_s27 + $0x8] sm:$0xff] %v244_v24 }
  0x39   : > { %249 = vst [vmem:[%s200_s27 + $0x10] sm:$0xff] %v245_v25  ;;  %250 = vst [vmem:[%s200_s27 + $0x18] sm:$0xff] %v246_v26 }
  0x3a PF: > { %s14_s12 = sadd.s32 1, %s386_s12  }
  0x3b   : > { %p11_p4 = scmp.ge.s32.totalorder %s14_s12, 4  }
  0x3d   :  { %13 = sbr.rel (!%p11_p4) target bundleno = 1 (0x1), region = 73 }

// kernel: _lambda_.45
= control target key start
LH: loop header
LB: loop body
LE: loop exit
PB: predicated region body
PF: predicated region fallthrough
CT: control target
= control target key end

     0   :  { %9 = vsyncpa [#allocation3], 0  ;;  %s695_s0 = inlined_call_operand.vmem [shape: f32[2,4,256], index: 0, kind: input, shape index: {}]   ;;  %s696_s1 = inlined_call_operand.hbm [shape: f32[4,4], index: 1, kind: input, shape index: {}]   ;;  %s697_s2 = inlined_call_operand.hbm [shape: f32[4,1], index: 2, kind: input, shape index: {}]   ;;  %s698_s3 = inlined_call_operand.hbm [shape: f32[4,1], index: 3, kind: input, shape index: {}]   ;;  %s699_s4 = inlined_call_operand.vmem [shape: f32[2,4,256], index: 4, kind: output, shape index: {}]  }
   0x1   :  { %10 = vsyncpa [#allocation5], 0  ;;  %s618_s15 = smov 0  }
   0x2 LB: > { %s624_s16 = sadd.s32 4294967295, %s586_s15   ;;  %p431_p0 = scmp.ge.s32.totalorder %s586_s15, 1  ;;  %s586_s15 = sphi %s618_s15, %s16_s15  }
   0x3   : > { %p136_p1 = scmp.lt.s32.totalorder %s586_s15, 3  ;;  %p700_p2 = scmp.eq.s32.totalorder %s624_s16, 0 }
   0x4   : > { %s588_s18 = smov [#allocation4]   ;;  %s589_s20 = smov [#allocation2]  }
   0x5   : > { %p629_p3 = pnand %p431_p0, %p136_p1  ;;  %s160_s19 = sshll.u32 %s588_s18, 4  ;;  %s161_s19 = int_to_ptr.vmem [resolvable:$true] %s160_s19 }
   0x6   : > { %s149_s21 = sshll.u32 %s589_s20, 4  ;;  %s590_s22 = smov [#allocation6]   ;;  %s150_s21 = int_to_ptr.vmem [resolvable:$true] %s149_s21 }
   0x7   : > { %s702_s17 = scalar_select %p629_p3, 1, 0 }
   0x8   : > { %p463_p4 = pneg %p629_p3  ;;  %s171_s23 = sshll.u32 %s590_s22, 4  ;;  %s641_s23 = int_to_ptr.vmem [resolvable:$true] %s171_s23 }
   0x9   : > { %s505_s25 = scalar_lea.vmem %s161_s19, 64  ;;  %p513_p10 = scmp.lt.s32.totalorder %s161_s19, %s161_s19 }
   0xa   : > { %p637_p5 = pnand %p700_p2, %p463_p4  ;;  %p506_p7 = scmp.ne.s32.totalorder %s161_s19, %s505_s25 }
   0xb   : > { %p514_p11 = scmp.lt.s32.totalorder %s505_s25, %s505_s25 }
   0xc   : > { %p496_p6 = pneg %p637_p5 }
   0xd   : > { %p515_p12 = por %p514_p11, %p513_p10 }
   0xe   : > { %p508_p8 = pnand %p506_p7, %p496_p6 }
  0x10   : > { %p509_p9 = pneg %p508_p8 }
  0x12   : > { %p516_p13 = pnand %p515_p12, %p509_p9 }
  0x14   : > { %519 = shalt.err (!%p516_p13)
}
  0x15   : > { %469 = dma.hbm_to_vmem [thread:$0]  (!%p637_p5), %s697_s2, 64, %s161_s19, [#allocation5]  }
  0x16   : > { %s531_s28 = scalar_lea.vmem %s150_s21, 64  ;;  %p539_p7 = scmp.lt.s32.totalorder %s150_s21, %s150_s21 }
  0x17   : > { %p532_p0 = scmp.ne.s32.totalorder %s150_s21, %s531_s28  ;;  %p540_p8 = scmp.lt.s32.totalorder %s531_s28, %s531_s28 }
  0x19   : > { %p534_p1 = pnand %p532_p0, %p496_p6  ;;  %p541_p2 = por %p540_p8, %p539_p7 }
  0x1b   : > { %p535_p4 = pneg %p534_p1 }
  0x1d   : > { %p542_p3 = pnand %p541_p2, %p535_p4 }
  0x1f   : > { %545 = shalt.err (!%p542_p3)
}
  0x20   : > { %466 = dma.hbm_to_vmem [thread:$0]  (!%p637_p5), %s696_s1, 64, %s150_s21, [#allocation3]  }
  0x21   : > { %s557_s5 = scalar_lea.vmem %s641_s23, 64  ;;  %p565_p12 = scmp.lt.s32.totalorder %s641_s23, %s641_s23 }
  0x22   : > { %p558_p9 = scmp.ne.s32.totalorder %s641_s23, %s557_s5  ;;  %p566_p2 = scmp.lt.s32.totalorder %s557_s5, %s557_s5 }
  0x24   : > { %p560_p10 = pnand %p558_p9, %p496_p6  ;;  %p567_p3 = por %p566_p2, %p565_p12 }
  0x26   : > { %p561_p11 = pneg %p560_p10 }
  0x28   : > { %p568_p13 = pnand %p567_p3, %p561_p11 }
  0x2a   : > { %571 = shalt.err (!%p568_p13)
}
  0x2b   : > { %472 = dma.hbm_to_vmem [thread:$0]  (!%p637_p5), %s698_s3, 64, %s641_s23, [#allocation5]  }
  0x2c   : > { %p704_p0 = scmp.ne.s32.totalorder %s702_s17, 0 }
  0x2d   : > { %p705_p1 = scmp.eq.s32.totalorder (!%p704_p0), %s624_s16, 0 }
  0x2e   : > { %192 = sbr.rel (%p704_p0) target bundleno = 269 (0x10d), region = 36 }
  0x33   : > { %577 = dma.done.wait (%p705_p1), [#allocation3], 64   ;;  %p706_p6 = pmov %p705_p1 }
  0x34   : > { %p707_p4 = pmov %p705_p1 }
  0x35   : > { %579 = vsyncadd (%p706_p6), [#allocation3], 4294967232 }
  0x36   : > { %581 = dma.done.wait (%p707_p4), [#allocation5], 128   ;;  %p708_p7 = pmov %p705_p1 }
  0x37   : > { %p226_p8 = scmp.lt.s32.totalorder %s624_s16, 1  ;;  %v591_v0 = vmov 0.0   ;;  %v592_v1 = vmov 0   ;;  %vm244_vm0 = vcmask 1043456   ;;  %v320_v3 = vld [vmem:[#allocation4] sm:$0xf] }
  0x38   : > { %583 = vsyncadd (%p708_p7), [#allocation5], 4294967168  ;;  %313 = vmatprep.mubr.f32.mxu0 %v591_v0  ;;  %492 = vset.pattern.permute.xlu0 %v592_v1  ;;  %v237_v5 = vld [vmem:[#allocation2] sm:$0xf]  ;;  %vm240_vm1 = vcmask 31744  }
  0x39   : > { %s710_s16 = smov (!%p226_p8, %s624_s16), 1  ;;  %323 = vperm.xlu0 %492, %v320_v3   ;;  %v328_v6 = vld [vmem:[#allocation6] sm:$0xf] }
  0x3a   : > { %s449_s8 = sshll.u32 %s710_s16, 3 }
  0x3b   : > { %s230_s11 = scalar_lea.vmem %s695_s0, %s449_s8  ;;  %s235_s14 = scalar_lea.vmem %s699_s4, %s449_s8 }
  0x3c   : > { %v236_v2 = vld [vmem:[%s230_s11] sm:$0xff] }
  0x3d   : > { %v239_v4 = vcombine.high %v236_v2, %v236_v2  ;;  %331 = vperm.xlu0 %492, %v328_v6  }
  0x3f   : > { %444 = vmatprep.subr.msk.mxu0 %vm244_vm0, %v239_v4 }
  0x40   : > { %445 = vmatpush1.msk.msra.mxu0 %vm244_vm0, %v236_v2 }
  0x41   : > { %446 = vmatmul.mubr.msk.f32.vlgmr.msra.gmra.mxu0 %vm240_vm1, %v237_v5 }
  0xb4   : > { %v324_v7 = vpop.permute.xlu0 %323 }
  0xb8   : > { %v332_v10 = vpop.permute.xlu0 %331 }
 0x101   : > { %v315_v8 = vpop.f32.mrf.mxu0 }
 0x102   : > { %v326_v9 = vmul.f32 %v324_v7, %v315_v8 }
 0x103   : > { %v317_v11 = vpop.f32.mrf.mxu0 }
 0x104   : > { %v334_v12 = vadd.f32 %v332_v10, %v326_v9  ;;  %v327_v13 = vmul.f32 %v324_v7, %v317_v11 }
 0x106   : > { %v335_v14 = vadd.f32 %v332_v10, %v327_v13  ;;  %v336_v15 = vmax.f32 %v334_v12, 0.0 }
 0x108   : > { %v337_v16 = vmax.f32 %v335_v14, 0.0 }
 0x10a   : > { %v340_v17 = vcombine.low %v336_v15, %v337_v16 }
 0x10c   : > { %342 = vst [vmem:[%s235_s14] sm:$0xff] %v340_v17 }
 0x10d PF: > { %s16_s15 = sadd.s32 1, %s586_s15  }
 0x10e   : > { %p13_p5 = scmp.ge.s32.totalorder %s16_s15, 4  }
 0x110   :  { %15 = sbr.rel (!%p13_p5) target bundleno = 2 (0x2), region = 79 }
 0x115   :  { %364 = vsyncpa [#allocation3], 1 }
 0x116   :  { %366 = vsyncpa [#allocation3 + $0x1], 1 }
 0x117   :  { %367 = vsyncpa [#allocation5], 1 }

// kernel: _lambda_.46
= control target key start
LH: loop header
LB: loop body
LE: loop exit
PB: predicated region body
PF: predicated region fallthrough
CT: control target
= control target key end

     0   :  { %9 = vsyncpa [#allocation3], 0  ;;  %s706_s0 = inlined_call_operand.vmem [shape: f32[2,36,256], index: 0, kind: input, shape index: {}]   ;;  %s707_s1 = inlined_call_operand.hbm [shape: f32[4,36], index: 1, kind: input, shape index: {}]   ;;  %s708_s2 = inlined_call_operand.hbm [shape: f32[4,1], index: 2, kind: input, shape index: {}]   ;;  %s709_s3 = inlined_call_operand.hbm [shape: f32[4,1], index: 3, kind: input, shape index: {}]   ;;  %s710_s4 = inlined_call_operand.vmem [shape: f32[2,4,256], index: 4, kind: output, shape index: {}]  }
   0x1   :  { %10 = vsyncpa [#allocation5], 0  ;;  %s625_s15 = smov 0  }
   0x2 LB: > { %s631_s16 = sadd.s32 4294967295, %s593_s15   ;;  %p440_p0 = scmp.ge.s32.totalorder %s593_s15, 1  ;;  %s593_s15 = sphi %s625_s15, %s16_s15  }
   0x3   : > { %p136_p1 = scmp.lt.s32.totalorder %s593_s15, 3  ;;  %p711_p2 = scmp.eq.s32.totalorder %s631_s16, 0 }
   0x4   : > { %s595_s18 = smov [#allocation4]   ;;  %s596_s20 = smov [#allocation2]  }
   0x5   : > { %p636_p3 = pnand %p440_p0, %p136_p1  ;;  %s160_s19 = sshll.u32 %s595_s18, 4  ;;  %s161_s19 = int_to_ptr.vmem [resolvable:$true] %s160_s19 }
   0x6   : > { %s149_s21 = sshll.u32 %s596_s20, 4  ;;  %s597_s22 = smov [#allocation6]   ;;  %s150_s21 = int_to_ptr.vmem [resolvable:$true] %s149_s21 }
   0x7   : > { %s713_s17 = scalar_select %p636_p3, 1, 0 }
   0x8   : > { %p471_p4 = pneg %p636_p3  ;;  %s171_s23 = sshll.u32 %s597_s22, 4  ;;  %s648_s23 = int_to_ptr.vmem [resolvable:$true] %s171_s23 }
   0x9   : > { %s512_s25 = scalar_lea.vmem %s161_s19, 64  ;;  %p520_p10 = scmp.lt.s32.totalorder %s161_s19, %s161_s19 }
   0xa   : > { %p644_p5 = pnand %p711_p2, %p471_p4  ;;  %p513_p7 = scmp.ne.s32.totalorder %s161_s19, %s512_s25 }
   0xb   : > { %p521_p11 = scmp.lt.s32.totalorder %s512_s25, %s512_s25 }
   0xc   : > { %p503_p6 = pneg %p644_p5 }
   0xd   : > { %p522_p12 = por %p521_p11, %p520_p10 }
   0xe   : > { %p515_p8 = pnand %p513_p7, %p503_p6 }
  0x10   : > { %p516_p9 = pneg %p515_p8 }
  0x12   : > { %p523_p13 = pnand %p522_p12, %p516_p9 }
  0x14   : > { %526 = shalt.err (!%p523_p13)
}
  0x15   : > { %477 = dma.hbm_to_vmem [thread:$0]  (!%p644_p5), %s708_s2, 64, %s161_s19, [#allocation5]  }
  0x16   : > { %s538_s28 = scalar_lea.vmem %s150_s21, 64  ;;  %p546_p7 = scmp.lt.s32.totalorder %s150_s21, %s150_s21 }
  0x17   : > { %p539_p0 = scmp.ne.s32.totalorder %s150_s21, %s538_s28  ;;  %p547_p8 = scmp.lt.s32.totalorder %s538_s28, %s538_s28 }
  0x19   : > { %p541_p1 = pnand %p539_p0, %p503_p6  ;;  %p548_p2 = por %p547_p8, %p546_p7 }
  0x1b   : > { %p542_p4 = pneg %p541_p1 }
  0x1d   : > { %p549_p3 = pnand %p548_p2, %p542_p4 }
  0x1f   : > { %552 = shalt.err (!%p549_p3)
}
  0x20   : > { %474 = dma.hbm_to_vmem [thread:$0]  (!%p644_p5), %s707_s1, 64, %s150_s21, [#allocation3]  }
  0x21   : > { %s564_s5 = scalar_lea.vmem %s648_s23, 64  ;;  %p572_p12 = scmp.lt.s32.totalorder %s648_s23, %s648_s23 }
  0x22   : > { %p565_p9 = scmp.ne.s32.totalorder %s648_s23, %s564_s5  ;;  %p573_p2 = scmp.lt.s32.totalorder %s564_s5, %s564_s5 }
  0x24   : > { %p567_p10 = pnand %p565_p9, %p503_p6  ;;  %p574_p3 = por %p573_p2, %p572_p12 }
  0x26   : > { %p568_p11 = pneg %p567_p10 }
  0x28   : > { %p575_p13 = pnand %p574_p3, %p568_p11 }
  0x2a   : > { %578 = shalt.err (!%p575_p13)
}
  0x2b   : > { %480 = dma.hbm_to_vmem [thread:$0]  (!%p644_p5), %s709_s3, 64, %s648_s23, [#allocation5]  }
  0x2c   : > { %p715_p0 = scmp.ne.s32.totalorder %s713_s17, 0 }
  0x2d   : > { %p716_p1 = scmp.eq.s32.totalorder (!%p715_p0), %s631_s16, 0 }
  0x2e   : > { %192 = sbr.rel (%p715_p0) target bundleno = 276 (0x114), region = 36 }
  0x33   : > { %584 = dma.done.wait (%p716_p1), [#allocation3], 64   ;;  %p717_p6 = pmov %p716_p1 }
  0x34   : > { %p718_p4 = pmov %p716_p1 }
  0x35   : > { %586 = vsyncadd (%p717_p6), [#allocation3], 4294967232 }
  0x36   : > { %588 = dma.done.wait (%p718_p4), [#allocation5], 128   ;;  %p719_p7 = pmov %p716_p1 }
  0x37   : > { %p226_p8 = scmp.lt.s32.totalorder %s631_s16, 1  ;;  %v598_v0 = vmov 0.0   ;;  %v599_v1 = vmov 0   ;;  %vm251_vm0 = vcmask 1043456   ;;  %v329_v8 = vld [vmem:[#allocation4] sm:$0xf] }
  0x38   : > { %590 = vsyncadd (%p719_p7), [#allocation5], 4294967168  ;;  %322 = vmatprep.mubr.f32.mxu0 %v598_v0  ;;  %500 = vset.pattern.permute.xlu0 %v599_v1  ;;  %v337_v11 = vld [vmem:[#allocation6] sm:$0xf]  ;;  %v246_v14 = vld [vmem:[#allocation2] sm:$0xf] }
  0x39   : > { %s721_s16 = smov (!%p226_p8, %s631_s16), 1  ;;  %332 = vperm.xlu0 %500, %v329_v8   ;;  %vm247_vm1 = vcmask 293888  }
  0x3a   : > { %s458_s8 = smul.u32 80, %s721_s16  ;;  %s457_s12 = sshll.u32 %s721_s16, 3 }
  0x3b   : > { %s235_s17 = scalar_lea.vmem %s710_s4, %s457_s12 }
  0x3c   : > { %s230_s11 = scalar_lea.vmem %s706_s0, %s458_s8 }
  0x3d   : > { %v245_v2 = vld [vmem:[%s230_s11 + $0x48] sm:$0xf]  ;;  %v244_v3 = vld [vmem:[%s230_s11 + $0x40] sm:$0xf]  ;;  %v243_v4 = vld [vmem:[%s230_s11 + $0x38] sm:$0xff]  ;;  %340 = vperm.xlu0 %500, %v337_v11  }
  0x3e   : > { %452 = vmatprep.subr.msk.mxu0 %vm251_vm0, %v245_v2  ;;  %v242_v5 = vld [vmem:[%s230_s11 + $0x30] sm:$0xff]  ;;  %v241_v6 = vld [vmem:[%s230_s11 + $0x28] sm:$0xff]  ;;  %v240_v7 = vld [vmem:[%s230_s11 + $0x20] sm:$0xff] }
  0x3f   : > { %453 = vmatpush1.msk.msra.mxu0 %vm251_vm0, %v244_v3  ;;  %v239_v9 = vld [vmem:[%s230_s11 + $0x18] sm:$0xff]  ;;  %v238_v10 = vld [vmem:[%s230_s11 + $0x10] sm:$0xff]  ;;  %v237_v12 = vld [vmem:[%s230_s11 + $0x8] sm:$0xff] }
  0x40   : > { %282 = vmatprep.subr.mxu0 %v243_v4  ;;  %v236_v13 = vld [vmem:[%s230_s11] sm:$0xff] }
  0x41   : > { %283 = vmatpush1.msra.mxu0 %v242_v5 }
  0x42   : > { %284 = vmatprep.subr.mxu0 %v241_v6 }
  0x43   : > { %285 = vmatpush1.msra.mxu0 %v240_v7 }
  0x44   : > { %286 = vmatprep.subr.mxu0 %v239_v9 }
  0x45   : > { %287 = vmatpush1.msra.mxu0 %v238_v10 }
  0x46   : > { %288 = vmatprep.subr.mxu0 %v237_v12 }
  0x47   : > { %289 = vmatpush1.msra.mxu0 %v236_v13 }
  0x48   : > { %454 = vmatmul.mubr.msk.f32.vlgmr.msra.gmra.mxu0 %vm247_vm1, %v246_v14 }
  0xb4   : > { %v333_v15 = vpop.permute.xlu0 %332 }
  0xb8   : > { %v341_v18 = vpop.permute.xlu0 %340 }
 0x108   : > { %v324_v16 = vpop.f32.mrf.mxu0 }
 0x109   : > { %v335_v17 = vmul.f32 %v333_v15, %v324_v16 }
 0x10a   : > { %v326_v19 = vpop.f32.mrf.mxu0 }
 0x10b   : > { %v343_v20 = vadd.f32 %v341_v18, %v335_v17  ;;  %v336_v21 = vmul.f32 %v333_v15, %v326_v19 }
 0x10d   : > { %v344_v22 = vadd.f32 %v341_v18, %v336_v21  ;;  %v345_v23 = vmax.f32 %v343_v20, 0.0 }
 0x10f   : > { %v346_v24 = vmax.f32 %v344_v22, 0.0 }
 0x111   : > { %v349_v25 = vcombine.low %v345_v23, %v346_v24 }
 0x113   : > { %351 = vst [vmem:[%s235_s17] sm:$0xff] %v349_v25 }
 0x114 PF: > { %s16_s15 = sadd.s32 1, %s593_s15  }
 0x115   : > { %p13_p5 = scmp.ge.s32.totalorder %s16_s15, 4  }
 0x117   :  { %15 = sbr.rel (!%p13_p5) target bundleno = 2 (0x2), region = 79 }
 0x11c   :  { %373 = vsyncpa [#allocation3], 1 }
 0x11d   :  { %375 = vsyncpa [#allocation3 + $0x1], 1 }
 0x11e   :  { %376 = vsyncpa [#allocation5], 1 }

// kernel: _lambda_.48
= control target key start
LH: loop header
LB: loop body
LE: loop exit
PB: predicated region body
PF: predicated region fallthrough
CT: control target
= control target key end

     0   :  { %s430_s15 = smov 0   ;;  %s460_s0 = inlined_call_operand.vmem [shape: f32[2,36,256], index: 0, kind: input, shape index: {}]   ;;  %s461_s1 = inlined_call_operand.vmem [shape: f32[4,36], index: 1, kind: input, shape index: {}]   ;;  %s462_s2 = inlined_call_operand.vmem [shape: f32[4,1], index: 2, kind: input, shape index: {}]   ;;  %s463_s3 = inlined_call_operand.vmem [shape: f32[4,1], index: 3, kind: input, shape index: {}]   ;;  %s464_s4 = inlined_call_operand.vmem [shape: f32[2,4,256], index: 4, kind: output, shape index: {}]  }
   0x1 LB: > { %s369_s16 = sadd.s32 4294967295, %s401_s15   ;;  %p373_p0 = scmp.ge.s32.totalorder %s401_s15, 1  ;;  %s401_s15 = sphi %s430_s15, %s14_s15  }
   0x2   : > { %p162_p1 = scmp.lt.s32.totalorder %s401_s15, 3 }
   0x4   : > { %p163_p2 = pnand %p373_p0, %p162_p1 }
   0x5   : > { %p188_p3 = scmp.lt.s32.totalorder (!%p163_p2), %s369_s16, 1 }
   0x6   : > { %166 = sbr.rel (%p163_p2) target bundleno = 230 (0xe6), region = 36 }
   0xb   : > { %v403_v0 = vmov 0.0   ;;  %v291_v1 = vld [vmem:[%s462_s2] sm:$0xf]  ;;  %s466_s16 = smov (!%p188_p3, %s369_s16), 1  ;;  %v404_v2 = vmov 0   ;;  %vm213_vm0 = vcmask 1043456  }
   0xc   : > { %284 = vmatprep.mubr.f32.mxu0 %v403_v0  ;;  %394 = vset.pattern.permute.xlu0 %v404_v2  ;;  %s383_s19 = smul.u32 80, %s466_s16  ;;  %v299_v3 = vld [vmem:[%s463_s3] sm:$0xf]  ;;  %vm209_vm1 = vcmask 293888   ;;  %s382_s27 = sshll.u32 %s466_s16, 3 }
   0xd   : > { %294 = vperm.xlu0 %394, %v291_v1   ;;  %v208_v14 = vld [vmem:[%s461_s1] sm:$0xf]  ;;  %s197_s30 = scalar_lea.vmem %s464_s4, %s382_s27 }
   0xe   : > { %s192_s24 = scalar_lea.vmem %s460_s0, %s383_s19 }
   0xf   : > { %v207_v4 = vld [vmem:[%s192_s24 + $0x48] sm:$0xf]  ;;  %v206_v5 = vld [vmem:[%s192_s24 + $0x40] sm:$0xf]  ;;  %v205_v6 = vld [vmem:[%s192_s24 + $0x38] sm:$0xff] }
  0x10   : > { %377 = vmatprep.subr.msk.mxu0 %vm213_vm0, %v207_v4  ;;  %v204_v7 = vld [vmem:[%s192_s24 + $0x30] sm:$0xff]  ;;  %v203_v8 = vld [vmem:[%s192_s24 + $0x28] sm:$0xff]  ;;  %v202_v9 = vld [vmem:[%s192_s24 + $0x20] sm:$0xff] }
  0x11   : > { %302 = vperm.xlu0 %394, %v299_v3   ;;  %378 = vmatpush1.msk.msra.mxu0 %vm213_vm0, %v206_v5  ;;  %v201_v10 = vld [vmem:[%s192_s24 + $0x18] sm:$0xff]  ;;  %v200_v11 = vld [vmem:[%s192_s24 + $0x10] sm:$0xff]  ;;  %v199_v12 = vld [vmem:[%s192_s24 + $0x8] sm:$0xff] }
  0x12   : > { %244 = vmatprep.subr.mxu0 %v205_v6  ;;  %v198_v13 = vld [vmem:[%s192_s24] sm:$0xff] }
  0x13   : > { %245 = vmatpush1.msra.mxu0 %v204_v7 }
  0x14   : > { %246 = vmatprep.subr.mxu0 %v203_v8 }
  0x15   : > { %247 = vmatpush1.msra.mxu0 %v202_v9 }
  0x16   : > { %248 = vmatprep.subr.mxu0 %v201_v10 }
  0x17   : > { %249 = vmatpush1.msra.mxu0 %v200_v11 }
  0x18   : > { %250 = vmatprep.subr.mxu0 %v199_v12 }
  0x19   : > { %251 = vmatpush1.msra.mxu0 %v198_v13 }
  0x1a   : > { %379 = vmatmul.mubr.msk.f32.vlgmr.msra.gmra.mxu0 %vm209_vm1, %v208_v14 }
  0x88   : > { %v295_v15 = vpop.permute.xlu0 %294 }
  0x8c   : > { %v303_v18 = vpop.permute.xlu0 %302 }
  0xda   : > { %v286_v16 = vpop.f32.mrf.mxu0 }
  0xdb   : > { %v297_v17 = vmul.f32 %v295_v15, %v286_v16 }
  0xdc   : > { %v288_v19 = vpop.f32.mrf.mxu0 }
  0xdd   : > { %v305_v20 = vadd.f32 %v303_v18, %v297_v17  ;;  %v298_v21 = vmul.f32 %v295_v15, %v288_v19 }
  0xdf   : > { %v306_v22 = vadd.f32 %v303_v18, %v298_v21  ;;  %v307_v23 = vmax.f32 %v305_v20, 0.0 }
  0xe1   : > { %v308_v24 = vmax.f32 %v306_v22, 0.0 }
  0xe3   : > { %v311_v25 = vcombine.low %v307_v23, %v308_v24 }
  0xe5   : > { %313 = vst [vmem:[%s197_s30] sm:$0xff] %v311_v25 }
  0xe6 PF: > { %s14_s15 = sadd.s32 1, %s401_s15  }
  0xe7   : > { %p11_p4 = scmp.ge.s32.totalorder %s14_s15, 4  }
  0xe9   :  { %13 = sbr.rel (!%p11_p4) target bundleno = 1 (0x1), region = 66 }

// kernel: _lambda_.47
= control target key start
LH: loop header
LB: loop body
LE: loop exit
PB: predicated region body
PF: predicated region fallthrough
CT: control target
= control target key end

     0   :  { %10 = vsyncpa [#allocation3], 0  ;;  %s769_s0 = inlined_call_operand.vmem [shape: f32[2,16,256], index: 0, kind: input, shape index: {}]   ;;  %s770_s1 = inlined_call_operand.hbm [shape: f32[4,16], index: 1, kind: input, shape index: {}]   ;;  %s771_s2 = inlined_call_operand.hbm [shape: f32[4,1], index: 2, kind: input, shape index: {}]   ;;  %s772_s3 = inlined_call_operand.hbm [shape: f32[4,1], index: 3, kind: input, shape index: {}]   ;;  %s773_s4 = inlined_call_operand.vmem [shape: f32[2,4,256], index: 4, kind: input, shape index: {}]   ;;  %s774_s5 = inlined_call_operand.vmem [shape: f32[2,4,256], index: 5, kind: output, shape index: {}]  }
   0x1   :  { %11 = vsyncpa [#allocation5], 0  ;;  %s685_s18 = smov 0  }
   0x2 LB: > { %s691_s19 = sadd.s32 4294967295, %s648_s18   ;;  %p492_p0 = scmp.ge.s32.totalorder %s648_s18, 1  ;;  %s648_s18 = sphi %s685_s18, %s17_s18  }
   0x3   : > { %p163_p1 = scmp.lt.s32.totalorder %s648_s18, 3  ;;  %p775_p2 = scmp.eq.s32.totalorder %s691_s19, 0 }
   0x4   : > { %s650_s21 = smov [#allocation4]   ;;  %s651_s23 = smov [#allocation2]  }
   0x5   : > { %p696_p3 = pnand %p492_p0, %p163_p1  ;;  %s187_s22 = sshll.u32 %s650_s21, 4  ;;  %s188_s22 = int_to_ptr.vmem [resolvable:$true] %s187_s22 }
   0x6   : > { %s176_s24 = sshll.u32 %s651_s23, 4  ;;  %s652_s25 = smov [#allocation6]   ;;  %s177_s24 = int_to_ptr.vmem [resolvable:$true] %s176_s24 }
   0x7   : > { %s777_s20 = scalar_select %p696_p3, 1, 0 }
   0x8   : > { %p525_p4 = pneg %p696_p3  ;;  %s198_s26 = sshll.u32 %s652_s25, 4  ;;  %s708_s26 = int_to_ptr.vmem [resolvable:$true] %s198_s26 }
   0x9   : > { %s567_s28 = scalar_lea.vmem %s188_s22, 64  ;;  %p575_p10 = scmp.lt.s32.totalorder %s188_s22, %s188_s22 }
   0xa   : > { %p704_p5 = pnand %p775_p2, %p525_p4  ;;  %p568_p7 = scmp.ne.s32.totalorder %s188_s22, %s567_s28 }
   0xb   : > { %p576_p11 = scmp.lt.s32.totalorder %s567_s28, %s567_s28 }
   0xc   : > { %p558_p6 = pneg %p704_p5 }
   0xd   : > { %p577_p12 = por %p576_p11, %p575_p10 }
   0xe   : > { %p570_p8 = pnand %p568_p7, %p558_p6 }
  0x10   : > { %p571_p9 = pneg %p570_p8 }
  0x12   : > { %p578_p13 = pnand %p577_p12, %p571_p9 }
  0x14   : > { %581 = shalt.err (!%p578_p13)
}
  0x15   : > { %531 = dma.hbm_to_vmem [thread:$0]  (!%p704_p5), %s771_s2, 64, %s188_s22, [#allocation5]  }
  0x16   : > { %s593_s6 = scalar_lea.vmem %s177_s24, 64  ;;  %p601_p7 = scmp.lt.s32.totalorder %s177_s24, %s177_s24 }
  0x17   : > { %p594_p0 = scmp.ne.s32.totalorder %s177_s24, %s593_s6  ;;  %p602_p8 = scmp.lt.s32.totalorder %s593_s6, %s593_s6 }
  0x19   : > { %p596_p1 = pnand %p594_p0, %p558_p6  ;;  %p603_p2 = por %p602_p8, %p601_p7 }
  0x1b   : > { %p597_p4 = pneg %p596_p1 }
  0x1d   : > { %p604_p3 = pnand %p603_p2, %p597_p4 }
  0x1f   : > { %607 = shalt.err (!%p604_p3)
}
  0x20   : > { %528 = dma.hbm_to_vmem [thread:$0]  (!%p704_p5), %s770_s1, 64, %s177_s24, [#allocation3]  }
  0x21   : > { %s619_s9 = scalar_lea.vmem %s708_s26, 64  ;;  %p627_p12 = scmp.lt.s32.totalorder %s708_s26, %s708_s26 }
  0x22   : > { %p620_p9 = scmp.ne.s32.totalorder %s708_s26, %s619_s9  ;;  %p628_p2 = scmp.lt.s32.totalorder %s619_s9, %s619_s9 }
  0x24   : > { %p622_p10 = pnand %p620_p9, %p558_p6  ;;  %p629_p3 = por %p628_p2, %p627_p12 }
  0x26   : > { %p623_p11 = pneg %p622_p10 }
  0x28   : > { %p630_p13 = pnand %p629_p3, %p623_p11 }
  0x2a   : > { %633 = shalt.err (!%p630_p13)
}
  0x2b   : > { %534 = dma.hbm_to_vmem [thread:$0]  (!%p704_p5), %s772_s3, 64, %s708_s26, [#allocation5]  }
  0x2c   : > { %p779_p0 = scmp.ne.s32.totalorder %s777_s20, 0 }
  0x2d   : > { %p780_p1 = scmp.eq.s32.totalorder (!%p779_p0), %s691_s19, 0 }
  0x2e   : > { %227 = sbr.rel (%p779_p0) target bundleno = 271 (0x10f), region = 40 }
  0x33   : > { %639 = dma.done.wait (%p780_p1), [#allocation3], 64   ;;  %p781_p6 = pmov %p780_p1 }
  0x34   : > { %p782_p4 = pmov %p780_p1 }
  0x35   : > { %641 = vsyncadd (%p781_p6), [#allocation3], 4294967232 }
  0x36   : > { %643 = dma.done.wait (%p782_p4), [#allocation5], 128   ;;  %p783_p7 = pmov %p780_p1 }
  0x37   : > { %p268_p8 = scmp.lt.s32.totalorder %s691_s19, 1  ;;  %v653_v0 = vmov 0.0   ;;  %v654_v1 = vmov 0   ;;  %v363_v6 = vld [vmem:[#allocation4] sm:$0xf]  ;;  %vm288_vm0 = vcmask 130048  }
  0x38   : > { %645 = vsyncadd (%p783_p7), [#allocation5], 4294967168  ;;  %356 = vmatprep.mubr.f32.mxu0 %v653_v0  ;;  %554 = vset.pattern.permute.xlu0 %v654_v1  ;;  %v287_v7 = vld [vmem:[#allocation2] sm:$0xf]  ;;  %v371_v8 = vld [vmem:[#allocation6] sm:$0xf] }
  0x39   : > { %s785_s19 = smov (!%p268_p8, %s691_s19), 1  ;;  %366 = vperm.xlu0 %554, %v363_v6  }
  0x3a   : > { %s510_s12 = sshll.u32 %s785_s19, 5  ;;  %s511_s16 = sshll.u32 %s785_s19, 3 }
  0x3b   : > { %s272_s15 = scalar_lea.vmem %s769_s0, %s510_s12  ;;  %s277_s21 = scalar_lea.vmem %s773_s4, %s511_s16 }
  0x3c   : > { %v286_v2 = vld [vmem:[%s272_s15 + $0x18] sm:$0xff]  ;;  %v285_v3 = vld [vmem:[%s272_s15 + $0x10] sm:$0xff]  ;;  %v284_v4 = vld [vmem:[%s272_s15 + $0x8] sm:$0xff]  ;;  %s282_s19 = scalar_lea.vmem %s774_s5, %s511_s16 }
  0x3d   : > { %320 = vmatprep.subr.mxu0 %v286_v2  ;;  %v283_v5 = vld [vmem:[%s272_s15] sm:$0xff]  ;;  %374 = vperm.xlu0 %554, %v371_v8  }
  0x3e   : > { %321 = vmatpush1.msra.mxu0 %v285_v3  ;;  %v381_v13 = vld [vmem:[%s277_s21] sm:$0xff] }
  0x3f   : > { %322 = vmatprep.subr.mxu0 %v284_v4  ;;  %v383_v19 = vcombine.high %v381_v13, %v381_v13 }
  0x40   : > { %323 = vmatpush1.msra.mxu0 %v283_v5 }
  0x41   : > { %507 = vmatmul.mubr.msk.f32.vlgmr.msra.gmra.mxu0 %vm288_vm0, %v287_v7 }
  0xb4   : > { %v367_v9 = vpop.permute.xlu0 %366 }
  0xb8   : > { %v375_v12 = vpop.permute.xlu0 %374 }
 0x101   : > { %v358_v10 = vpop.f32.mrf.mxu0 }
 0x102   : > { %v369_v11 = vmul.f32 %v367_v9, %v358_v10 }
 0x103   : > { %v360_v14 = vpop.f32.mrf.mxu0 }
 0x104   : > { %v377_v15 = vadd.f32 %v375_v12, %v369_v11  ;;  %v370_v16 = vmul.f32 %v367_v9, %v360_v14 }
 0x106   : > { %v379_v17 = vmax.f32 %v377_v15, 0.0  ;;  %v378_v18 = vadd.f32 %v375_v12, %v370_v16 }
 0x108   : > { %v380_v20 = vmax.f32 %v378_v18, 0.0  ;;  %v385_v21 = vadd.f32 %v381_v13, %v379_v17 }
 0x10a   : > { %v386_v22 = vadd.f32 %v383_v19, %v380_v20 }
 0x10c   : > { %v389_v23 = vcombine.low %v385_v21, %v386_v22 }
 0x10e   : > { %391 = vst [vmem:[%s282_s19] sm:$0xff] %v389_v23 }
 0x10f PF: > { %s17_s18 = sadd.s32 1, %s648_s18  }
 0x110   : > { %p14_p5 = scmp.ge.s32.totalorder %s17_s18, 4  }
 0x112   :  { %16 = sbr.rel (!%p14_p5) target bundleno = 2 (0x2), region = 86 }
 0x117   :  { %413 = vsyncpa [#allocation3], 1 }
 0x118   :  { %415 = vsyncpa [#allocation3 + $0x1], 1 }
 0x119   :  { %416 = vsyncpa [#allocation5], 1 }

// kernel: _lambda_.50
= control target key start
LH: loop header
LB: loop body
LE: loop exit
PB: predicated region body
PF: predicated region fallthrough
CT: control target
= control target key end

     0   :  { %s490_s18 = smov 0   ;;  %s523_s0 = inlined_call_operand.vmem [shape: f32[2,16,256], index: 0, kind: input, shape index: {}]   ;;  %s524_s1 = inlined_call_operand.vmem [shape: f32[4,16], index: 1, kind: input, shape index: {}]   ;;  %s525_s2 = inlined_call_operand.vmem [shape: f32[4,1], index: 2, kind: input, shape index: {}]   ;;  %s526_s3 = inlined_call_operand.vmem [shape: f32[4,1], index: 3, kind: input, shape index: {}]   ;;  %s527_s4 = inlined_call_operand.vmem [shape: f32[2,4,256], index: 4, kind: input, shape index: {}]   ;;  %s528_s5 = inlined_call_operand.vmem [shape: f32[2,4,256], index: 5, kind: output, shape index: {}]  }
   0x1 LB: > { %s421_s19 = sadd.s32 4294967295, %s456_s18   ;;  %p425_p0 = scmp.ge.s32.totalorder %s456_s18, 1  ;;  %s456_s18 = sphi %s490_s18, %s15_s18  }
   0x2   : > { %p197_p1 = scmp.lt.s32.totalorder %s456_s18, 3 }
   0x4   : > { %p198_p2 = pnand %p425_p0, %p197_p1 }
   0x5   : > { %p230_p3 = scmp.lt.s32.totalorder (!%p198_p2), %s421_s19, 1 }
   0x6   : > { %201 = sbr.rel (%p198_p2) target bundleno = 225 (0xe1), region = 40 }
   0xb   : > { %v458_v0 = vmov 0.0   ;;  %v459_v1 = vmov 0   ;;  %v325_v2 = vld [vmem:[%s525_s2] sm:$0xf]  ;;  %s530_s19 = smov (!%p230_p3, %s421_s19), 1  ;;  %vm250_vm0 = vcmask 130048  }
   0xc   : > { %318 = vmatprep.mubr.f32.mxu0 %v458_v0  ;;  %448 = vset.pattern.permute.xlu0 %v459_v1  ;;  %v333_v3 = vld [vmem:[%s526_s3] sm:$0xf]  ;;  %s435_s24 = sshll.u32 %s530_s19, 5  ;;  %s436_s30 = sshll.u32 %s530_s19, 3 }
   0xd   : > { %328 = vperm.xlu0 %448, %v325_v2   ;;  %s234_s27 = scalar_lea.vmem %s523_s0, %s435_s24  ;;  %v249_v8 = vld [vmem:[%s524_s1] sm:$0xf]  ;;  %s239_s8 = scalar_lea.vmem %s527_s4, %s436_s30 }
   0xe   : > { %v248_v4 = vld [vmem:[%s234_s27 + $0x18] sm:$0xff]  ;;  %v247_v5 = vld [vmem:[%s234_s27 + $0x10] sm:$0xff]  ;;  %v246_v6 = vld [vmem:[%s234_s27 + $0x8] sm:$0xff]  ;;  %s244_s11 = scalar_lea.vmem %s528_s5, %s436_s30 }
   0xf   : > { %282 = vmatprep.subr.mxu0 %v248_v4  ;;  %v245_v7 = vld [vmem:[%s234_s27] sm:$0xff] }
  0x10   : > { %283 = vmatpush1.msra.mxu0 %v247_v5  ;;  %v343_v13 = vld [vmem:[%s239_s8] sm:$0xff] }
  0x11   : > { %336 = vperm.xlu0 %448, %v333_v3   ;;  %284 = vmatprep.subr.mxu0 %v246_v6  ;;  %v345_v19 = vcombine.high %v343_v13, %v343_v13 }
  0x12   : > { %285 = vmatpush1.msra.mxu0 %v245_v7 }
  0x13   : > { %432 = vmatmul.mubr.msk.f32.vlgmr.msra.gmra.mxu0 %vm250_vm0, %v249_v8 }
  0x88   : > { %v329_v9 = vpop.permute.xlu0 %328 }
  0x8c   : > { %v337_v12 = vpop.permute.xlu0 %336 }
  0xd3   : > { %v320_v10 = vpop.f32.mrf.mxu0 }
  0xd4   : > { %v331_v11 = vmul.f32 %v329_v9, %v320_v10 }
  0xd5   : > { %v322_v14 = vpop.f32.mrf.mxu0 }
  0xd6   : > { %v339_v15 = vadd.f32 %v337_v12, %v331_v11  ;;  %v332_v16 = vmul.f32 %v329_v9, %v322_v14 }
  0xd8   : > { %v341_v17 = vmax.f32 %v339_v15, 0.0  ;;  %v340_v18 = vadd.f32 %v337_v12, %v332_v16 }
  0xda   : > { %v342_v20 = vmax.f32 %v340_v18, 0.0  ;;  %v347_v21 = vadd.f32 %v343_v13, %v341_v17 }
  0xdc   : > { %v348_v22 = vadd.f32 %v345_v19, %v342_v20 }
  0xde   : > { %v351_v23 = vcombine.low %v347_v21, %v348_v22 }
  0xe0   : > { %353 = vst [vmem:[%s244_s11] sm:$0xff] %v351_v23 }
  0xe1 PF: > { %s15_s18 = sadd.s32 1, %s456_s18  }
  0xe2   : > { %p12_p4 = scmp.ge.s32.totalorder %s15_s18, 4  }
  0xe4   :  { %14 = sbr.rel (!%p12_p4) target bundleno = 1 (0x1), region = 73 }

// kernel: _lambda_.51
= control target key start
LH: loop header
LB: loop body
LE: loop exit
PB: predicated region body
PF: predicated region fallthrough
CT: control target
= control target key end

     0   :  { %s446_s15 = smov 0   ;;  %s504_s0 = inlined_call_operand.vmem [shape: f32[2,100,256], index: 0, kind: input, shape index: {}]   ;;  %s505_s1 = inlined_call_operand.vmem [shape: f32[4,100], index: 1, kind: input, shape index: {}]   ;;  %s506_s2 = inlined_call_operand.vmem [shape: f32[4,1], index: 2, kind: input, shape index: {}]   ;;  %s507_s3 = inlined_call_operand.vmem [shape: f32[4,1], index: 3, kind: input, shape index: {}]   ;;  %s508_s4 = inlined_call_operand.vmem [shape: f32[2,4,256], index: 4, kind: output, shape index: {}]  }
   0x1 LB: > { %s385_s16 = sadd.s32 4294967295, %s417_s15   ;;  %p389_p0 = scmp.ge.s32.totalorder %s417_s15, 1  ;;  %s417_s15 = sphi %s446_s15, %s14_s15  }
   0x2   : > { %p162_p1 = scmp.lt.s32.totalorder %s417_s15, 3 }
   0x4   : > { %p163_p2 = pnand %p389_p0, %p162_p1 }
   0x5   : > { %p188_p3 = scmp.lt.s32.totalorder (!%p163_p2), %s385_s16, 1 }
   0x6   : > { %166 = sbr.rel (%p163_p2) target bundleno = 246 (0xf6), region = 36 }
   0xb   : > { %v419_v0 = vmov 0.0   ;;  %v307_v1 = vld [vmem:[%s506_s2] sm:$0xf]  ;;  %s510_s16 = smov (!%p188_p3, %s385_s16), 1  ;;  %v420_v2 = vmov 0   ;;  %vm229_vm0 = vcmask 1043456  }
   0xc   : > { %300 = vmatprep.mubr.f32.mxu0 %v419_v0  ;;  %410 = vset.pattern.permute.xlu0 %v420_v2  ;;  %s399_s19 = smul.u32 208, %s510_s16  ;;  %v315_v3 = vld [vmem:[%s507_s3] sm:$0xf]  ;;  %vm225_vm1 = vcmask 818176   ;;  %s398_s27 = sshll.u32 %s510_s16, 3 }
   0xd   : > { %310 = vperm.xlu0 %410, %v307_v1   ;;  %v224_v30 = vld [vmem:[%s505_s1] sm:$0xf]  ;;  %s197_s30 = scalar_lea.vmem %s508_s4, %s398_s27 }
   0xe   : > { %s466_s24 = scalar_lea.vmem %s504_s0, %s399_s19 }
   0xf   : > { %v223_v4 = vld [vmem:[%s466_s24 + $0xc8] sm:$0xf]  ;;  %v222_v5 = vld [vmem:[%s466_s24 + $0xc0] sm:$0xf]  ;;  %v221_v6 = vld [vmem:[%s466_s24 + $0xb8] sm:$0xff] }
  0x10   : > { %393 = vmatprep.subr.msk.mxu0 %vm229_vm0, %v223_v4  ;;  %v220_v7 = vld [vmem:[%s466_s24 + $0xb0] sm:$0xff]  ;;  %v219_v8 = vld [vmem:[%s466_s24 + $0xa8] sm:$0xff]  ;;  %v218_v9 = vld [vmem:[%s466_s24 + $0xa0] sm:$0xff] }
  0x11   : > { %318 = vperm.xlu0 %410, %v315_v3   ;;  %394 = vmatpush1.msk.msra.mxu0 %vm229_vm0, %v222_v5  ;;  %v217_v10 = vld [vmem:[%s466_s24 + $0x98] sm:$0xff]  ;;  %v216_v11 = vld [vmem:[%s466_s24 + $0x90] sm:$0xff]  ;;  %v215_v12 = vld [vmem:[%s466_s24 + $0x88] sm:$0xff] }
  0x12   : > { %244 = vmatprep.subr.mxu0 %v221_v6  ;;  %v214_v13 = vld [vmem:[%s466_s24 + $0x80] sm:$0xff]  ;;  %v213_v14 = vld [vmem:[%s466_s24 + $0x78] sm:$0xff]  ;;  %v212_v15 = vld [vmem:[%s466_s24 + $0x70] sm:$0xff] }
  0x13   : > { %245 = vmatpush1.msra.mxu0 %v220_v7  ;;  %v211_v16 = vld [vmem:[%s466_s24 + $0x68] sm:$0xff]  ;;  %v210_v17 = vld [vmem:[%s466_s24 + $0x60] sm:$0xff]  ;;  %v209_v18 = vld [vmem:[%s466_s24 + $0x58] sm:$0xff] }
  0x14   : > { %246 = vmatprep.subr.mxu0 %v219_v8  ;;  %v208_v19 = vld [vmem:[%s466_s24 + $0x50] sm:$0xff]  ;;  %v207_v20 = vld [vmem:[%s466_s24 + $0x48] sm:$0xff]  ;;  %v206_v21 = vld [vmem:[%s466_s24 + $0x40] sm:$0xff] }
  0x15   : > { %247 = vmatpush1.msra.mxu0 %v218_v9  ;;  %v205_v22 = vld [vmem:[%s466_s24 + $0x38] sm:$0xff]  ;;  %v204_v23 = vld [vmem:[%s466_s24 + $0x30] sm:$0xff]  ;;  %v203_v24 = vld [vmem:[%s466_s24 + $0x28] sm:$0xff] }
  0x16   : > { %248 = vmatprep.subr.mxu0 %v217_v10  ;;  %v202_v25 = vld [vmem:[%s466_s24 + $0x20] sm:$0xff]  ;;  %v201_v26 = vld [vmem:[%s466_s24 + $0x18] sm:$0xff]  ;;  %v200_v27 = vld [vmem:[%s466_s24 + $0x10] sm:$0xff] }
  0x17   : > { %249 = vmatpush1.msra.mxu0 %v216_v11  ;;  %v199_v28 = vld [vmem:[%s466_s24 + $0x8] sm:$0xff]  ;;  %v198_v29 = vld [vmem:[%s466_s24] sm:$0xff] }
  0x18   : > { %250 = vmatprep.subr.mxu0 %v215_v12 }
  0x19   : > { %251 = vmatpush1.msra.mxu0 %v214_v13 }
  0x1a   : > { %252 = vmatprep.subr.mxu0 %v213_v14 }
  0x1b   : > { %253 = vmatpush1.msra.mxu0 %v212_v15 }
  0x1c   : > { %254 = vmatprep.subr.mxu0 %v211_v16 }
  0x1d   : > { %255 = vmatpush1.msra.mxu0 %v210_v17 }
  0x1e   : > { %256 = vmatprep.subr.mxu0 %v209_v18 }
  0x1f   : > { %257 = vmatpush1.msra.mxu0 %v208_v19 }
  0x20   : > { %258 = vmatprep.subr.mxu0 %v207_v20 }
  0x21   : > { %259 = vmatpush1.msra.mxu0 %v206_v21 }
  0x22   : > { %260 = vmatprep.subr.mxu0 %v205_v22 }
  0x23   : > { %261 = vmatpush1.msra.mxu0 %v204_v23 }
  0x24   : > { %262 = vmatprep.subr.mxu0 %v203_v24 }
  0x25   : > { %263 = vmatpush1.msra.mxu0 %v202_v25 }
  0x26   : > { %264 = vmatprep.subr.mxu0 %v201_v26 }
  0x27   : > { %265 = vmatpush1.msra.mxu0 %v200_v27 }
  0x28   : > { %266 = vmatprep.subr.mxu0 %v199_v28 }
  0x29   : > { %267 = vmatpush1.msra.mxu0 %v198_v29 }
  0x2a   : > { %395 = vmatmul.mubr.msk.f32.vlgmr.msra.gmra.mxu0 %vm225_vm1, %v224_v30 }
  0x88   : > { %v311_v31 = vpop.permute.xlu0 %310 }
  0x8c   : > { %v319_v34 = vpop.permute.xlu0 %318 }
  0xea   : > { %v302_v32 = vpop.f32.mrf.mxu0 }
  0xeb   : > { %v313_v33 = vmul.f32 %v311_v31, %v302_v32 }
  0xec   : > { %v304_v35 = vpop.f32.mrf.mxu0 }
  0xed   : > { %v321_v36 = vadd.f32 %v319_v34, %v313_v33  ;;  %v314_v37 = vmul.f32 %v311_v31, %v304_v35 }
  0xef   : > { %v322_v38 = vadd.f32 %v319_v34, %v314_v37  ;;  %v323_v39 = vmax.f32 %v321_v36, 0.0 }
  0xf1   : > { %v324_v40 = vmax.f32 %v322_v38, 0.0 }
  0xf3   : > { %v327_v41 = vcombine.low %v323_v39, %v324_v40 }
  0xf5   : > { %329 = vst [vmem:[%s197_s30] sm:$0xff] %v327_v41 }
  0xf6 PF: > { %s14_s15 = sadd.s32 1, %s417_s15  }
  0xf7   : > { %p11_p4 = scmp.ge.s32.totalorder %s14_s15, 4  }
  0xf9   :  { %13 = sbr.rel (!%p11_p4) target bundleno = 1 (0x1), region = 66 }

// kernel: _lambda_.54
= control target key start
LH: loop header
LB: loop body
LE: loop exit
PB: predicated region body
PF: predicated region fallthrough
CT: control target
= control target key end

     0   :  { %s470_s15 = smov 0   ;;  %s557_s0 = inlined_call_operand.vmem [shape: f32[2,196,256], index: 0, kind: input, shape index: {}]   ;;  %s558_s1 = inlined_call_operand.vmem [shape: f32[4,196], index: 1, kind: input, shape index: {}]   ;;  %s559_s2 = inlined_call_operand.vmem [shape: f32[4,1], index: 2, kind: input, shape index: {}]   ;;  %s560_s3 = inlined_call_operand.vmem [shape: f32[4,1], index: 3, kind: input, shape index: {}]   ;;  %s561_s4 = inlined_call_operand.vmem [shape: f32[2,4,256], index: 4, kind: output, shape index: {}]  }
   0x1 LB: > { %s410_s16 = sadd.s32 4294967295, %s442_s15   ;;  %p414_p0 = scmp.ge.s32.totalorder %s442_s15, 1  ;;  %s442_s15 = sphi %s470_s15, %s14_s15  }
   0x2   : > { %p162_p1 = scmp.lt.s32.totalorder %s442_s15, 3 }
   0x4   : > { %p163_p2 = pnand %p414_p0, %p162_p1 }
   0x5   : > { %p188_p3 = scmp.lt.s32.totalorder (!%p163_p2), %s410_s16, 1 }
   0x6   : > { %166 = sbr.rel (%p163_p2) target bundleno = 270 (0x10e), region = 36 }
   0xb   : > { %v481_v0 = vld [vmem:[%s558_s1] sm:$0xff]  ;;  %vm251_vm0 = vcmask 556032   ;;  %v444_v2 = vmov 0   ;;  %s563_s16 = smov (!%p188_p3, %s410_s16), 1  ;;  %vm254_vm1 = vcmask 1043456  }
   0xc   : > { %v250_v1 = vcombine.high %v481_v0, %v481_v0  ;;  %434 = vset.pattern.permute.xlu0 %v444_v2  ;;  %v332_v3 = vld [vmem:[%s559_s2] sm:$0xf]  ;;  %s424_s23 = smul.u32 400, %s563_s16  ;;  %s423_s27 = sshll.u32 %s563_s16, 3 }
   0xd   : > { %335 = vperm.xlu0 %434, %v332_v3   ;;  %v340_v4 = vld [vmem:[%s560_s3] sm:$0xf]  ;;  %s197_s30 = scalar_lea.vmem %s561_s4, %s423_s27 }
   0xe   : > { %420 = vmatprep.mubr.msk.f32.mxu0 %vm251_vm0, %v250_v1  ;;  %s497_s26 = scalar_lea.vmem %s557_s0, %s424_s23 }
   0xf   : > { %v229_v5 = vld [vmem:[%s497_s26 + $0xf8] sm:$0xff]  ;;  %v228_v6 = vld [vmem:[%s497_s26 + $0xf0] sm:$0xff]  ;;  %v227_v7 = vld [vmem:[%s497_s26 + $0xe8] sm:$0xff] }
  0x10   : > { %261 = vmatprep.subr.mxu0 %v229_v5  ;;  %v226_v8 = vld [vmem:[%s497_s26 + $0xe0] sm:$0xff]  ;;  %v225_v9 = vld [vmem:[%s497_s26 + $0xd8] sm:$0xff]  ;;  %v224_v10 = vld [vmem:[%s497_s26 + $0xd0] sm:$0xff] }
  0x11   : > { %343 = vperm.xlu0 %434, %v340_v4   ;;  %262 = vmatpush1.msra.mxu0 %v228_v6  ;;  %v223_v11 = vld [vmem:[%s497_s26 + $0xc8] sm:$0xff]  ;;  %v222_v12 = vld [vmem:[%s497_s26 + $0xc0] sm:$0xff]  ;;  %v221_v13 = vld [vmem:[%s497_s26 + $0xb8] sm:$0xff] }
  0x12   : > { %263 = vmatprep.subr.mxu0 %v227_v7  ;;  %v220_v14 = vld [vmem:[%s497_s26 + $0xb0] sm:$0xff]  ;;  %v219_v15 = vld [vmem:[%s497_s26 + $0xa8] sm:$0xff]  ;;  %v218_v16 = vld [vmem:[%s497_s26 + $0xa0] sm:$0xff] }
  0x13   : > { %264 = vmatpush1.msra.mxu0 %v226_v8  ;;  %v217_v17 = vld [vmem:[%s497_s26 + $0x98] sm:$0xff]  ;;  %v216_v18 = vld [vmem:[%s497_s26 + $0x90] sm:$0xff]  ;;  %v215_v19 = vld [vmem:[%s497_s26 + $0x88] sm:$0xff] }
  0x14   : > { %265 = vmatprep.subr.mxu0 %v225_v9  ;;  %v214_v20 = vld [vmem:[%s497_s26 + $0x80] sm:$0xff]  ;;  %v213_v21 = vld [vmem:[%s497_s26 + $0x78] sm:$0xff]  ;;  %v212_v22 = vld [vmem:[%s497_s26 + $0x70] sm:$0xff] }
  0x15   : > { %266 = vmatpush1.msra.mxu0 %v224_v10  ;;  %v211_v23 = vld [vmem:[%s497_s26 + $0x68] sm:$0xff]  ;;  %v210_v24 = vld [vmem:[%s497_s26 + $0x60] sm:$0xff]  ;;  %v209_v25 = vld [vmem:[%s497_s26 + $0x58] sm:$0xff] }
  0x16   : > { %267 = vmatprep.subr.mxu0 %v223_v11  ;;  %v208_v26 = vld [vmem:[%s497_s26 + $0x50] sm:$0xff]  ;;  %v207_v27 = vld [vmem:[%s497_s26 + $0x48] sm:$0xff]  ;;  %v206_v28 = vld [vmem:[%s497_s26 + $0x40] sm:$0xff] }
  0x17   : > { %268 = vmatpush1.msra.mxu0 %v222_v12  ;;  %v205_v29 = vld [vmem:[%s497_s26 + $0x38] sm:$0xff]  ;;  %v204_v30 = vld [vmem:[%s497_s26 + $0x30] sm:$0xff]  ;;  %v203_v31 = vld [vmem:[%s497_s26 + $0x28] sm:$0xff] }
  0x18   : > { %269 = vmatprep.subr.mxu0 %v221_v13  ;;  %v202_v32 = vld [vmem:[%s497_s26 + $0x20] sm:$0xff]  ;;  %v201_v33 = vld [vmem:[%s497_s26 + $0x18] sm:$0xff]  ;;  %v200_v34 = vld [vmem:[%s497_s26 + $0x10] sm:$0xff] }
  0x19   : > { %270 = vmatpush1.msra.mxu0 %v220_v14  ;;  %v199_v35 = vld [vmem:[%s497_s26 + $0x8] sm:$0xff]  ;;  %v198_v36 = vld [vmem:[%s497_s26] sm:$0xff]  ;;  %v245_v39 = vld [vmem:[%s497_s26 + $0x178] sm:$0xff] }
  0x1a   : > { %271 = vmatprep.subr.mxu0 %v219_v15  ;;  %v247_v37 = vld [vmem:[%s497_s26 + $0x188] sm:$0xf]  ;;  %v246_v38 = vld [vmem:[%s497_s26 + $0x180] sm:$0xf]  ;;  %v244_v40 = vld [vmem:[%s497_s26 + $0x170] sm:$0xff] }
  0x1b   : > { %272 = vmatpush1.msra.mxu0 %v218_v16  ;;  %v243_v41 = vld [vmem:[%s497_s26 + $0x168] sm:$0xff]  ;;  %v242_v42 = vld [vmem:[%s497_s26 + $0x160] sm:$0xff]  ;;  %v241_v43 = vld [vmem:[%s497_s26 + $0x158] sm:$0xff] }
  0x1c   : > { %273 = vmatprep.subr.mxu0 %v217_v17  ;;  %v240_v44 = vld [vmem:[%s497_s26 + $0x150] sm:$0xff]  ;;  %v239_v45 = vld [vmem:[%s497_s26 + $0x148] sm:$0xff]  ;;  %v238_v46 = vld [vmem:[%s497_s26 + $0x140] sm:$0xff] }
  0x1d   : > { %274 = vmatpush1.msra.mxu0 %v216_v18  ;;  %v237_v47 = vld [vmem:[%s497_s26 + $0x138] sm:$0xff]  ;;  %v236_v48 = vld [vmem:[%s497_s26 + $0x130] sm:$0xff]  ;;  %v235_v49 = vld [vmem:[%s497_s26 + $0x128] sm:$0xff] }
  0x1e   : > { %275 = vmatprep.subr.mxu0 %v215_v19  ;;  %v234_v50 = vld [vmem:[%s497_s26 + $0x120] sm:$0xff]  ;;  %v233_v51 = vld [vmem:[%s497_s26 + $0x118] sm:$0xff]  ;;  %v232_v52 = vld [vmem:[%s497_s26 + $0x110] sm:$0xff] }
  0x1f   : > { %276 = vmatpush1.msra.mxu0 %v214_v20  ;;  %v231_v53 = vld [vmem:[%s497_s26 + $0x108] sm:$0xff]  ;;  %v230_v54 = vld [vmem:[%s497_s26 + $0x100] sm:$0xff] }
  0x20   : > { %277 = vmatprep.subr.mxu0 %v213_v21 }
  0x21   : > { %278 = vmatpush1.msra.mxu0 %v212_v22 }
  0x22   : > { %279 = vmatprep.subr.mxu0 %v211_v23 }
  0x23   : > { %280 = vmatpush1.msra.mxu0 %v210_v24 }
  0x24   : > { %281 = vmatprep.subr.mxu0 %v209_v25 }
  0x25   : > { %282 = vmatpush1.msra.mxu0 %v208_v26 }
  0x26   : > { %283 = vmatprep.subr.mxu0 %v207_v27 }
  0x27   : > { %284 = vmatpush1.msra.mxu0 %v206_v28 }
  0x28   : > { %285 = vmatprep.subr.mxu0 %v205_v29 }
  0x29   : > { %286 = vmatpush1.msra.mxu0 %v204_v30 }
  0x2a   : > { %287 = vmatprep.subr.mxu0 %v203_v31 }
  0x2b   : > { %288 = vmatpush1.msra.mxu0 %v202_v32 }
  0x2c   : > { %289 = vmatprep.subr.mxu0 %v201_v33 }
  0x2d   : > { %290 = vmatpush1.msra.mxu0 %v200_v34 }
  0x2e   : > { %291 = vmatprep.subr.mxu0 %v199_v35 }
  0x2f   : > { %292 = vmatpush1.msra.mxu0 %v198_v36 }
  0x30   : > { %418 = vmatprep.subr.msk.mxu0 %vm254_vm1, %v247_v37 }
  0x31   : > { %419 = vmatpush2.msk.msra.mxu0 %vm254_vm1, %v246_v38 }
  0x32   : > { %309 = vmatprep.subr.mxu0 %v245_v39 }
  0x33   : > { %310 = vmatpush2.msra.mxu0 %v244_v40 }
  0x34   : > { %311 = vmatprep.subr.mxu0 %v243_v41 }
  0x35   : > { %312 = vmatpush2.msra.mxu0 %v242_v42 }
  0x36   : > { %313 = vmatprep.subr.mxu0 %v241_v43 }
  0x37   : > { %314 = vmatpush2.msra.mxu0 %v240_v44 }
  0x38   : > { %315 = vmatprep.subr.mxu0 %v239_v45 }
  0x39   : > { %316 = vmatpush2.msra.mxu0 %v238_v46 }
  0x3a   : > { %317 = vmatprep.subr.mxu0 %v237_v47 }
  0x3b   : > { %318 = vmatpush2.msra.mxu0 %v236_v48 }
  0x3c   : > { %319 = vmatprep.subr.mxu0 %v235_v49 }
  0x3d   : > { %320 = vmatpush2.msra.mxu0 %v234_v50 }
  0x3e   : > { %321 = vmatprep.subr.mxu0 %v233_v51 }
  0x3f   : > { %322 = vmatpush2.msra.mxu0 %v232_v52 }
  0x40   : > { %323 = vmatprep.subr.mxu0 %v231_v53 }
  0x41   : > { %324 = vmatpush2.msra.mxu0 %v230_v54 }
  0x42   : > { %326 = vmatmul.mubr.f32.vlgmr.msra.gmra.mxu0 %v481_v0 }
  0x88   : > { %v336_v55 = vpop.permute.xlu0 %335 }
  0x8c   : > { %v344_v58 = vpop.permute.xlu0 %343 }
 0x102   : > { %v327_v56 = vpop.f32.mrf.mxu0 }
 0x103   : > { %v338_v57 = vmul.f32 %v336_v55, %v327_v56 }
 0x104   : > { %v329_v59 = vpop.f32.mrf.mxu0 }
 0x105   : > { %v346_v60 = vadd.f32 %v344_v58, %v338_v57  ;;  %v339_v61 = vmul.f32 %v336_v55, %v329_v59 }
 0x107   : > { %v347_v62 = vadd.f32 %v344_v58, %v339_v61  ;;  %v348_v63 = vmax.f32 %v346_v60, 0.0 }
 0x109   : > { %v349_v1 = vmax.f32 %v347_v62, 0.0 }
 0x10b   : > { %v352_v2 = vcombine.low %v348_v63, %v349_v1 }
 0x10d   : > { %354 = vst [vmem:[%s197_s30] sm:$0xff] %v352_v2 }
 0x10e PF: > { %s14_s15 = sadd.s32 1, %s442_s15  }
 0x10f   : > { %p11_p4 = scmp.ge.s32.totalorder %s14_s15, 4  }
 0x111   :  { %13 = sbr.rel (!%p11_p4) target bundleno = 1 (0x1), region = 66 }

// kernel: _lambda_.56
= control target key start
LH: loop header
LB: loop body
LE: loop exit
PB: predicated region body
PF: predicated region fallthrough
CT: control target
= control target key end

     0   :  { %s449_s15 = smov 0   ;;  %s491_s0 = inlined_call_operand.vmem [shape: f32[2,16,256], index: 0, kind: input, shape index: {}]   ;;  %s492_s1 = inlined_call_operand.vmem [shape: f32[16,16], index: 1, kind: input, shape index: {}]   ;;  %s493_s2 = inlined_call_operand.vmem [shape: f32[16,1], index: 2, kind: input, shape index: {}]   ;;  %s494_s3 = inlined_call_operand.vmem [shape: f32[16,1], index: 3, kind: input, shape index: {}]   ;;  %s495_s4 = inlined_call_operand.vmem [shape: f32[2,16,256], index: 4, kind: output, shape index: {}]  }
   0x1 LB: > { %s383_s16 = sadd.s32 4294967295, %s420_s15   ;;  %p387_p0 = scmp.ge.s32.totalorder %s420_s15, 1  ;;  %s420_s15 = sphi %s449_s15, %s14_s15  }
   0x2   : > { %p162_p1 = scmp.lt.s32.totalorder %s420_s15, 3 }
   0x4   : > { %p163_p2 = pnand %p387_p0, %p162_p1 }
   0x5   : > { %p188_p3 = scmp.lt.s32.totalorder (!%p163_p2), %s383_s16, 1 }
   0x6   : > { %166 = sbr.rel (%p163_p2) target bundleno = 221 (0xdd), region = 36 }
   0xb   : > { %v422_v0 = vmov 0.0   ;;  %v288_v1 = vld [vmem:[%s493_s2] sm:$0xff]  ;;  %s497_s16 = smov (!%p188_p3, %s383_s16), 1  ;;  %v423_v3 = vmov 0   ;;  %vm204_vm0 = vcmask 130048   ;;  %v203_v9 = vld [vmem:[%s492_s1 + $0x8] sm:$0xff] }
   0xc   : > { %275 = vmatprep.mubr.f32.mxu0 %v422_v0  ;;  %281 = vmatprep.mubr.f32.mxu1 %v422_v0  ;;  %v304_v2 = vld [vmem:[%s494_s3] sm:$0xff]  ;;  %s396_s21 = sshll.u32 %s497_s16, 5  ;;  %v289_v10 = vld [vmem:[%s493_s2 + $0x8] sm:$0xff] }
   0xd   : > { %412 = vset.pattern.permute.xlu0 %v423_v3  ;;  %413 = vset.pattern.permute.xlu1 %v423_v3  ;;  %s192_s24 = scalar_lea.vmem %s491_s0, %s396_s21  ;;  %v202_v8 = vld [vmem:[%s492_s1] sm:$0xff]  ;;  %v305_v11 = vld [vmem:[%s494_s3 + $0x8] sm:$0xff]  ;;  %s197_s9 = scalar_lea.vmem %s495_s4, %s396_s21 }
   0xe   : > { %292 = vperm.xlu0 %412, %v288_v1   ;;  %308 = vperm.xlu1 %413, %v304_v2   ;;  %v201_v4 = vld [vmem:[%s192_s24 + $0x18] sm:$0xff]  ;;  %v200_v5 = vld [vmem:[%s192_s24 + $0x10] sm:$0xff]  ;;  %v199_v6 = vld [vmem:[%s192_s24 + $0x8] sm:$0xff] }
   0xf   : > { %239 = vmatprep.subr.mxu0 %v201_v4  ;;  %398 = vmatprep.subr.mxu1 %v201_v4  ;;  %v198_v7 = vld [vmem:[%s192_s24] sm:$0xff] }
  0x10   : > { %240 = vmatpush1.msra.mxu0 %v200_v5  ;;  %400 = vmatpush1.msra.mxu1 %v200_v5 }
  0x11   : > { %241 = vmatprep.subr.mxu0 %v199_v6  ;;  %399 = vmatprep.subr.mxu1 %v199_v6 }
  0x12   : > { %242 = vmatpush1.msra.mxu0 %v198_v7  ;;  %401 = vmatpush1.msra.mxu1 %v198_v7 }
  0x13   : > { %392 = vmatmul.mubr.msk.f32.vlgmr.msra.gmra.mxu0 %vm204_vm0, %v202_v8  ;;  %393 = vmatmul.mubr.msk.f32.vlgmr.msra.gmra.mxu1 %vm204_vm0, %v203_v9 }
  0x14   : > { %297 = vperm.xlu0 %412, %v289_v10   ;;  %313 = vperm.xlu1 %413, %v305_v11  }
  0x89   : > { %v293_v12 = vpop.permute.xlu0 %292  ;;  %v309_v13 = vpop.permute.xlu1 %308 }
  0x8f   : > { %v298_v14 = vpop.permute.xlu0 %297  ;;  %v314_v17 = vpop.permute.xlu1 %313 }
  0xd3   : > { %v277_v15 = vpop.f32.mrf.mxu0  ;;  %v283_v16 = vpop.f32.mrf.mxu1 }
  0xd4   : > { %v300_v18 = vmul.f32 %v293_v12, %v277_v15  ;;  %v302_v19 = vmul.f32 %v298_v14, %v283_v16 }
  0xd5   : > { %v279_v20 = vpop.f32.mrf.mxu0  ;;  %v285_v21 = vpop.f32.mrf.mxu1 }
  0xd6   : > { %v316_v22 = vadd.f32 %v309_v13, %v300_v18  ;;  %v318_v23 = vadd.f32 %v314_v17, %v302_v19  ;;  %v301_v24 = vmul.f32 %v293_v12, %v279_v20  ;;  %v303_v25 = vmul.f32 %v298_v14, %v285_v21 }
  0xd8   : > { %v320_v26 = vmax.f32 %v316_v22, 0.0  ;;  %v322_v27 = vmax.f32 %v318_v23, 0.0  ;;  %v317_v28 = vadd.f32 %v309_v13, %v301_v24  ;;  %v319_v29 = vadd.f32 %v314_v17, %v303_v25 }
  0xda   : > { %324 = vst [vmem:[%s197_s9] sm:$0xff] %v320_v26  ;;  %326 = vst [vmem:[%s197_s9 + $0x10] sm:$0xff] %v322_v27  ;;  %v321_v30 = vmax.f32 %v317_v28, 0.0  ;;  %v323_v31 = vmax.f32 %v319_v29, 0.0 }
  0xdc   : > { %325 = vst [vmem:[%s197_s9 + $0x8] sm:$0xff] %v321_v30  ;;  %327 = vst [vmem:[%s197_s9 + $0x18] sm:$0xff] %v323_v31 }
  0xdd PF: > { %s14_s15 = sadd.s32 1, %s420_s15  }
  0xde   : > { %p11_p4 = scmp.ge.s32.totalorder %s14_s15, 4  }
  0xe0   :  { %13 = sbr.rel (!%p11_p4) target bundleno = 1 (0x1), region = 66 }

// kernel: _lambda_.31
= control target key start
LH: loop header
LB: loop body
LE: loop exit
PB: predicated region body
PF: predicated region fallthrough
CT: control target
= control target key end

     0   :  { %s416_s15 = smov 0   ;;  %s446_s0 = inlined_call_operand.vmem [shape: f32[2,16,256], index: 0, kind: input, shape index: {}]   ;;  %s447_s1 = inlined_call_operand.vmem [shape: f32[4,16], index: 1, kind: input, shape index: {}]   ;;  %s448_s2 = inlined_call_operand.vmem [shape: f32[4,1], index: 2, kind: input, shape index: {}]   ;;  %s449_s3 = inlined_call_operand.vmem [shape: f32[4,1], index: 3, kind: input, shape index: {}]   ;;  %s450_s4 = inlined_call_operand.vmem [shape: f32[2,4,256], index: 4, kind: output, shape index: {}]  }
   0x1 LB: > { %s356_s16 = sadd.s32 4294967295, %s387_s15   ;;  %p360_p0 = scmp.ge.s32.totalorder %s387_s15, 1  ;;  %s387_s15 = sphi %s416_s15, %s14_s15  }
   0x2   : > { %p162_p1 = scmp.lt.s32.totalorder %s387_s15, 3 }
   0x4   : > { %p163_p2 = pnand %p360_p0, %p162_p1 }
   0x5   : > { %p188_p3 = scmp.lt.s32.totalorder (!%p163_p2), %s356_s16, 1 }
   0x6   : > { %166 = sbr.rel (%p163_p2) target bundleno = 223 (0xdf), region = 36 }
   0xb   : > { %v389_v0 = vmov 0.0   ;;  %v390_v1 = vmov 0   ;;  %v278_v2 = vld [vmem:[%s448_s2] sm:$0xf]  ;;  %s452_s16 = smov (!%p188_p3, %s356_s16), 1  ;;  %vm203_vm0 = vcmask 130048  }
   0xc   : > { %271 = vmatprep.mubr.f32.mxu0 %v389_v0  ;;  %380 = vset.pattern.permute.xlu0 %v390_v1  ;;  %v286_v3 = vld [vmem:[%s449_s3] sm:$0xf]  ;;  %s368_s21 = sshll.u32 %s452_s16, 5  ;;  %s369_s27 = sshll.u32 %s452_s16, 3 }
   0xd   : > { %281 = vperm.xlu0 %380, %v278_v2   ;;  %s192_s24 = scalar_lea.vmem %s446_s0, %s368_s21  ;;  %v202_v8 = vld [vmem:[%s447_s1] sm:$0xf]  ;;  %s197_s30 = scalar_lea.vmem %s450_s4, %s369_s27 }
   0xe   : > { %v201_v4 = vld [vmem:[%s192_s24 + $0x18] sm:$0xff]  ;;  %v200_v5 = vld [vmem:[%s192_s24 + $0x10] sm:$0xff]  ;;  %v199_v6 = vld [vmem:[%s192_s24 + $0x8] sm:$0xff] }
   0xf   : > { %235 = vmatprep.subr.mxu0 %v201_v4  ;;  %v198_v7 = vld [vmem:[%s192_s24] sm:$0xff] }
  0x10   : > { %236 = vmatpush1.msra.mxu0 %v200_v5 }
  0x11   : > { %289 = vperm.xlu0 %380, %v286_v3   ;;  %237 = vmatprep.subr.mxu0 %v199_v6 }
  0x12   : > { %238 = vmatpush1.msra.mxu0 %v198_v7 }
  0x13   : > { %365 = vmatmul.mubr.msk.f32.vlgmr.msra.gmra.mxu0 %vm203_vm0, %v202_v8 }
  0x88   : > { %v282_v9 = vpop.permute.xlu0 %281 }
  0x8c   : > { %v290_v12 = vpop.permute.xlu0 %289 }
  0xd3   : > { %v273_v10 = vpop.f32.mrf.mxu0 }
  0xd4   : > { %v284_v11 = vmul.f32 %v282_v9, %v273_v10 }
  0xd5   : > { %v275_v13 = vpop.f32.mrf.mxu0 }
  0xd6   : > { %v292_v14 = vadd.f32 %v290_v12, %v284_v11  ;;  %v285_v15 = vmul.f32 %v282_v9, %v275_v13 }
  0xd8   : > { %v293_v16 = vadd.f32 %v290_v12, %v285_v15  ;;  %v294_v17 = vmax.f32 %v292_v14, 0.0 }
  0xda   : > { %v295_v18 = vmax.f32 %v293_v16, 0.0 }
  0xdc   : > { %v298_v19 = vcombine.low %v294_v17, %v295_v18 }
  0xde   : > { %300 = vst [vmem:[%s197_s30] sm:$0xff] %v298_v19 }
  0xdf PF: > { %s14_s15 = sadd.s32 1, %s387_s15  }
  0xe0   : > { %p11_p4 = scmp.ge.s32.totalorder %s14_s15, 4  }
  0xe2   :  { %13 = sbr.rel (!%p11_p4) target bundleno = 1 (0x1), region = 66 }

// kernel: _lambda_.32
= control target key start
LH: loop header
LB: loop body
LE: loop exit
PB: predicated region body
PF: predicated region fallthrough
CT: control target
= control target key end

     0   :  { %s423_s15 = smov 0   ;;  %s449_s0 = inlined_call_operand.vmem [shape: f32[2,4,256], index: 0, kind: input, shape index: {}]   ;;  %s450_s1 = inlined_call_operand.vmem [shape: f32[4,4], index: 1, kind: input, shape index: {}]   ;;  %s451_s2 = inlined_call_operand.vmem [shape: f32[4,1], index: 2, kind: input, shape index: {}]   ;;  %s452_s3 = inlined_call_operand.vmem [shape: f32[4,1], index: 3, kind: input, shape index: {}]   ;;  %s453_s4 = inlined_call_operand.vmem [shape: f32[2,4,256], index: 4, kind: output, shape index: {}]  }
   0x1 LB: > { %s360_s16 = sadd.s32 4294967295, %s394_s15   ;;  %p364_p0 = scmp.ge.s32.totalorder %s394_s15, 1  ;;  %s394_s15 = sphi %s423_s15, %s14_s15  }
   0x2   : > { %p162_p1 = scmp.lt.s32.totalorder %s394_s15, 3 }
   0x4   : > { %p163_p2 = pnand %p364_p0, %p162_p1 }
   0x5   : > { %p188_p3 = scmp.lt.s32.totalorder (!%p163_p2), %s360_s16, 1 }
   0x6   : > { %166 = sbr.rel (%p163_p2) target bundleno = 223 (0xdf), region = 36 }
   0xb   : > { %v396_v0 = vmov 0.0   ;;  %v282_v1 = vld [vmem:[%s451_s2] sm:$0xf]  ;;  %s455_s16 = smov (!%p188_p3, %s360_s16), 1  ;;  %v397_v2 = vmov 0   ;;  %vm206_vm0 = vcmask 1043456  }
   0xc   : > { %275 = vmatprep.mubr.f32.mxu0 %v396_v0  ;;  %386 = vset.pattern.permute.xlu0 %v397_v2  ;;  %s374_s19 = sshll.u32 %s455_s16, 3  ;;  %v290_v3 = vld [vmem:[%s452_s3] sm:$0xf]  ;;  %vm202_vm1 = vcmask 31744  }
   0xd   : > { %285 = vperm.xlu0 %386, %v282_v1   ;;  %s192_s24 = scalar_lea.vmem %s449_s0, %s374_s19  ;;  %v199_v6 = vld [vmem:[%s450_s1] sm:$0xf]  ;;  %s197_s29 = scalar_lea.vmem %s453_s4, %s374_s19 }
   0xe   : > { %v198_v4 = vld [vmem:[%s192_s24] sm:$0xff] }
   0xf   : > { %v201_v5 = vcombine.high %v198_v4, %v198_v4 }
  0x11   : > { %293 = vperm.xlu0 %386, %v290_v3   ;;  %369 = vmatprep.subr.msk.mxu0 %vm206_vm0, %v201_v5 }
  0x12   : > { %370 = vmatpush1.msk.msra.mxu0 %vm206_vm0, %v198_v4 }
  0x13   : > { %371 = vmatmul.mubr.msk.f32.vlgmr.msra.gmra.mxu0 %vm202_vm1, %v199_v6 }
  0x88   : > { %v286_v7 = vpop.permute.xlu0 %285 }
  0x8c   : > { %v294_v10 = vpop.permute.xlu0 %293 }
  0xd3   : > { %v277_v8 = vpop.f32.mrf.mxu0 }
  0xd4   : > { %v288_v9 = vmul.f32 %v286_v7, %v277_v8 }
  0xd5   : > { %v279_v11 = vpop.f32.mrf.mxu0 }
  0xd6   : > { %v296_v12 = vadd.f32 %v294_v10, %v288_v9  ;;  %v289_v13 = vmul.f32 %v286_v7, %v279_v11 }
  0xd8   : > { %v297_v14 = vadd.f32 %v294_v10, %v289_v13  ;;  %v298_v15 = vmax.f32 %v296_v12, 0.0 }
  0xda   : > { %v299_v16 = vmax.f32 %v297_v14, 0.0 }
  0xdc   : > { %v302_v17 = vcombine.low %v298_v15, %v299_v16 }
  0xde   : > { %304 = vst [vmem:[%s197_s29] sm:$0xff] %v302_v17 }
  0xdf PF: > { %s14_s15 = sadd.s32 1, %s394_s15  }
  0xe0   : > { %p11_p4 = scmp.ge.s32.totalorder %s14_s15, 4  }
  0xe2   :  { %13 = sbr.rel (!%p11_p4) target bundleno = 1 (0x1), region = 66 }

// kernel: _lambda_.57
= control target key start
LH: loop header
LB: loop body
LE: loop exit
PB: predicated region body
PF: predicated region fallthrough
CT: control target
= control target key end

     0   :  { %s657_s13 = smov 0   ;;  %s710_s0 = inlined_call_operand.<no memory space> [shape: f32[1], index: 0, kind: input, shape index: {}, may-alias: {0,1}]   ;;  %s711_s1 = inlined_call_operand.<no memory space> [shape: f32[1], index: 1, kind: input, shape index: {}, may-alias: {0,1}]   ;;  %s712_s2 = inlined_call_operand.vmem [shape: f32[2,16,256], index: 2, kind: input, shape index: {}]   ;;  %s713_s3 = inlined_call_operand.vmem [shape: f32[2,16,256], index: 3, kind: input, shape index: {}]   ;;  %s714_s4 = inlined_call_operand.vmem [shape: f32[2,16,256], index: 4, kind: input, shape index: {}]   ;;  %s715_s5 = inlined_call_operand.vmem [shape: f32[16,1], index: 5, kind: input, shape index: {}]   ;;  %s716_s6 = inlined_call_operand.vmem [shape: f32[16,1], index: 6, kind: input, shape index: {}]   ;;  %s717_s7 = inlined_call_operand.vmem [shape: f32[16,1], index: 7, kind: input, shape index: {}]   ;;  %s718_s8 = inlined_call_operand.vmem [shape: f32[16,1], index: 8, kind: input, shape index: {}]   ;;  %s719_s9 = inlined_call_operand.vmem [shape: f32[2,16,256], index: 9, kind: output, shape index: {}]  }
   0x1   :  { %14 = sst [smem:[#allocation2]] %s710_s0 }
   0x2   :  { %15 = sst [smem:[#allocation3]] %s711_s1 }
   0x3 LB: > { %s562_s14 = sadd.s32 4294967295, %s598_s13   ;;  %p566_p0 = scmp.ge.s32.totalorder %s598_s13, 1  ;;  %s598_s13 = sphi %s657_s13, %s21_s13  }
   0x4   : > { %p309_p1 = scmp.lt.s32.totalorder %s598_s13, 3 }
   0x6   : > { %p310_p2 = pnand %p566_p0, %p309_p1 }
   0x7   : > { %p355_p3 = scmp.lt.s32.totalorder (!%p310_p2), %s562_s14, 1  ;;  %s375_s29 = sld [smem:[#allocation2]] (!%p310_p2) }
   0x8   : > { %313 = sbr.rel (%p310_p2) target bundleno = 158 (0x9e), region = 56  ;;  %s376_s16 = sld [smem:[#allocation3]] (!%p310_p2) }
   0xd   : > { %v414_v0 = vld [vmem:[%s716_s6] sm:$0xff]  ;;  %v600_v2 = vmov 0   ;;  %v415_v3 = vld [vmem:[%s716_s6 + $0x8] sm:$0xff]  ;;  %s721_s14 = smov (!%p355_p3, %s562_s14), 1  ;;  %v391_v11 = vstv %s375_s29 }
   0xe   : > { %v389_v1 = vld [vmem:[%s715_s5] sm:$0xff]  ;;  %591 = vset.pattern.permute.xlu1 %v600_v2  ;;  %590 = vset.pattern.permute.xlu0 %v600_v2  ;;  %v390_v4 = vld [vmem:[%s715_s5 + $0x8] sm:$0xff]  ;;  %s689_s30 = sshll.u32 %s721_s14, 5  ;;  %v436_v26 = vstv %s376_s16 }
   0xf   : > { %418 = vperm.xlu1 %591, %v414_v0   ;;  %402 = vperm.xlu0 %590, %v389_v1   ;;  %v435_v5 = vld [vmem:[%s717_s7 + $0x8] sm:$0xff]  ;;  %v434_v6 = vld [vmem:[%s717_s7] sm:$0xff]  ;;  %s364_s12 = scalar_lea.vmem %s713_s3, %s689_s30  ;;  %s359_s1 = scalar_lea.vmem %s712_s2, %s689_s30 }
  0x10   : > { %v460_v7 = vld [vmem:[%s718_s8 + $0x8] sm:$0xff]  ;;  %v459_v8 = vld [vmem:[%s718_s8] sm:$0xff]  ;;  %v383_v16 = vld [vmem:[%s364_s12 + $0x10] sm:$0xff]  ;;  %s369_s18 = scalar_lea.vmem %s714_s4, %s689_s30  ;;  %s374_s21 = scalar_lea.vmem %s719_s9, %s689_s30 }
  0x11   : > { %v381_v9 = vld [vmem:[%s364_s12] sm:$0xff]  ;;  %v382_v10 = vld [vmem:[%s364_s12 + $0x8] sm:$0xff]  ;;  %v384_v17 = vld [vmem:[%s364_s12 + $0x18] sm:$0xff]  ;;  %v394_v20 = vmul.f32 %v391_v11, %v383_v16 }
  0x12   : > { %v377_v12 = vld [vmem:[%s359_s1] sm:$0xff]  ;;  %v392_v13 = vmul.f32 %v391_v11, %v381_v9  ;;  %v393_v14 = vmul.f32 %v391_v11, %v382_v10  ;;  %v378_v15 = vld [vmem:[%s359_s1 + $0x8] sm:$0xff]  ;;  %v395_v21 = vmul.f32 %v391_v11, %v384_v17  ;;  %v379_v22 = vld [vmem:[%s359_s1 + $0x10] sm:$0xff] }
  0x13   : > { %423 = vperm.xlu1 %591, %v415_v3   ;;  %407 = vperm.xlu0 %590, %v390_v4   ;;  %v380_v23 = vld [vmem:[%s359_s1 + $0x18] sm:$0xff]  ;;  %v385_v27 = vld [vmem:[%s369_s18] sm:$0xff]  ;;  %v386_v28 = vld [vmem:[%s369_s18 + $0x8] sm:$0xff]  ;;  %v398_v31 = vsub.f32 %v379_v22, %v394_v20 }
  0x14   : > { %v396_v18 = vsub.f32 %v377_v12, %v392_v13  ;;  %v397_v19 = vsub.f32 %v378_v15, %v393_v14  ;;  %v399_v32 = vsub.f32 %v380_v23, %v395_v21  ;;  %v387_v35 = vld [vmem:[%s369_s18 + $0x10] sm:$0xff]  ;;  %v388_v36 = vld [vmem:[%s369_s18 + $0x18] sm:$0xff]  ;;  %v437_v37 = vmul.f32 %v436_v26, %v385_v27 }
  0x15   : > { %v438_v38 = vmul.f32 %v436_v26, %v386_v28  ;;  %v439_v45 = vmul.f32 %v436_v26, %v387_v35  ;;  %v440_v46 = vmul.f32 %v436_v26, %v388_v36 }
  0x17   : > { %452 = vperm.xlu1 %591, %v435_v5   ;;  %447 = vperm.xlu0 %590, %v434_v6  }
  0x1b   : > { %468 = vperm.xlu1 %591, %v460_v7   ;;  %463 = vperm.xlu0 %590, %v459_v8  }
  0x8a   : > { %v419_v24 = vpop.permute.xlu1 %418  ;;  %v403_v25 = vpop.permute.xlu0 %402 }
  0x8b   : > { %v410_v29 = vmul.f32 %v403_v25, %v396_v18  ;;  %v411_v30 = vmul.f32 %v403_v25, %v397_v19 }
  0x8d   : > { %v426_v33 = vadd.f32 %v419_v24, %v410_v29  ;;  %v427_v34 = vadd.f32 %v419_v24, %v411_v30 }
  0x8e   : > { %v424_v39 = vpop.permute.xlu1 %423  ;;  %v408_v40 = vpop.permute.xlu0 %407 }
  0x8f   : > { %v430_v41 = vmax.f32 %v426_v33, 0.0  ;;  %v431_v42 = vmax.f32 %v427_v34, 0.0  ;;  %v412_v43 = vmul.f32 %v408_v40, %v398_v31  ;;  %v413_v44 = vmul.f32 %v408_v40, %v399_v32 }
  0x91   : > { %v428_v47 = vadd.f32 %v424_v39, %v412_v43  ;;  %v429_v48 = vadd.f32 %v424_v39, %v413_v44  ;;  %v441_v49 = vadd.f32 %v437_v37, %v430_v41  ;;  %v442_v50 = vadd.f32 %v438_v38, %v431_v42 }
  0x92   : > { %v453_v51 = vpop.permute.xlu1 %452  ;;  %v448_v52 = vpop.permute.xlu0 %447 }
  0x93   : > { %v432_v53 = vmax.f32 %v428_v47, 0.0  ;;  %v433_v54 = vmax.f32 %v429_v48, 0.0  ;;  %v455_v57 = vmul.f32 %v448_v52, %v441_v49  ;;  %v456_v58 = vmul.f32 %v448_v52, %v442_v50 }
  0x95   : > { %v443_v55 = vadd.f32 %v439_v45, %v432_v53  ;;  %v444_v56 = vadd.f32 %v440_v46, %v433_v54 }
  0x96   : > { %v464_v59 = vpop.permute.xlu0 %463  ;;  %v469_v0 = vpop.permute.xlu1 %468 }
  0x97   : > { %v457_v60 = vmul.f32 %v453_v51, %v443_v55  ;;  %v458_v61 = vmul.f32 %v453_v51, %v444_v56  ;;  %v471_v62 = vadd.f32 %v464_v59, %v455_v57  ;;  %v472_v63 = vadd.f32 %v464_v59, %v456_v58 }
  0x99   : > { %v473_v1 = vadd.f32 %v469_v0, %v457_v60  ;;  %v474_v2 = vadd.f32 %v469_v0, %v458_v61  ;;  %v475_v3 = vmax.f32 %v471_v62, 0.0  ;;  %v476_v4 = vmax.f32 %v472_v63, 0.0 }
  0x9b   : > { %v477_v5 = vmax.f32 %v473_v1, 0.0  ;;  %v478_v6 = vmax.f32 %v474_v2, 0.0  ;;  %479 = vst [vmem:[%s374_s21] sm:$0xff] %v475_v3  ;;  %480 = vst [vmem:[%s374_s21 + $0x8] sm:$0xff] %v476_v4 }
  0x9d   : > { %481 = vst [vmem:[%s374_s21 + $0x10] sm:$0xff] %v477_v5  ;;  %482 = vst [vmem:[%s374_s21 + $0x18] sm:$0xff] %v478_v6 }
  0x9e PF: > { %s21_s13 = sadd.s32 1, %s598_s13  }
  0x9f   : > { %p18_p4 = scmp.ge.s32.totalorder %s21_s13, 4  }
  0xa1   :  { %20 = sbr.rel (!%p18_p4) target bundleno = 3 (0x3), region = 92 }

// kernel: _lambda_.58
= control target key start
LH: loop header
LB: loop body
LE: loop exit
PB: predicated region body
PF: predicated region fallthrough
CT: control target
= control target key end

     0   :  { %s884_s19 = smov 0   ;;  %s1132_s0 = inlined_call_operand.vmem [shape: f32[2,784,256], index: 0, kind: input, shape index: {}]   ;;  %s1133_s1 = inlined_call_operand.vmem [shape: f32[1,784], index: 1, kind: input, shape index: {}]   ;;  %s1134_s2 = inlined_call_operand.<no memory space> [shape: f32[1,1], index: 2, kind: input, shape index: {}]   ;;  %s1135_s4 = inlined_call_operand.vmem [shape: f32[2,1,256], index: 4, kind: output, shape index: {}]   ;;  %s1136_s3 = inlined_call_operand.<no memory space> [shape: f32[1,1], index: 3, kind: input, shape index: {}]  }
   0x1   :  { %v9_v0 = vstv %s1134_s2  ;;  %v11_v1 = vstv %s1136_s3 }
   0x2   :  { %10 = vst [vmem:[#allocation2] sm:$0x1] %v9_v0  ;;  %12 = vst [vmem:[#allocation3] sm:$0x1] %v11_v1 }
   0x3 LB: > { %s819_s20 = sadd.s32 4294967295, %s848_s19   ;;  %p823_p0 = scmp.ge.s32.totalorder %s848_s19, 1  ;;  %s848_s19 = sphi %s884_s19, %s18_s19  }
   0x4   : > { %p166_p1 = scmp.lt.s32.totalorder %s848_s19, 3 }
   0x6   : > { %p167_p2 = pnand %p823_p0, %p166_p1 }
   0x7   : > { %p191_p3 = scmp.lt.s32.totalorder (!%p167_p2), %s819_s20, 1 }
   0x8   : > { %170 = sbr.rel (%p167_p2) target bundleno = 358 (0x166), region = 36 }
   0xd   : > { %s1138_s20 = smov (!%p191_p3, %s819_s20), 1  ;;  %vm432_vm0 = vcmask 130048  }
   0xe   : > { %s829_s2 = smul.u32 1568, %s1138_s20  ;;  %s825_s25 = sshll.u32 %s1138_s20, 1 }
   0xf   : > { %s199_s28 = scalar_lea.vmem %s1135_s4, %s825_s25 }
  0x10   : > { %s898_s22 = scalar_lea.vmem %s1132_s0, %s829_s2 }
  0x11   : > { %v231_v2 = vld [vmem:[%s898_s22 + $0xf8] sm:$0xff]  ;;  %v230_v4 = vld [vmem:[%s898_s22 + $0xf0] sm:$0xff]  ;;  %v229_v6 = vld [vmem:[%s898_s22 + $0xe8] sm:$0xff] }
  0x12   : > { %v295_v3 = vld [vmem:[%s898_s22 + $0x2f8] sm:$0xff]  ;;  %435 = vmatprep.subr.mxu0 %v231_v2  ;;  %v294_v5 = vld [vmem:[%s898_s22 + $0x2f0] sm:$0xff]  ;;  %v293_v7 = vld [vmem:[%s898_s22 + $0x2e8] sm:$0xff] }
  0x13   : > { %506 = vmatprep.subr.mxu1 %v295_v3  ;;  %436 = vmatpush1.msra.mxu0 %v230_v4  ;;  %v228_v8 = vld [vmem:[%s898_s22 + $0xe0] sm:$0xff]  ;;  %v227_v10 = vld [vmem:[%s898_s22 + $0xd8] sm:$0xff]  ;;  %v226_v12 = vld [vmem:[%s898_s22 + $0xd0] sm:$0xff] }
  0x14   : > { %507 = vmatpush1.msra.mxu1 %v294_v5  ;;  %v292_v9 = vld [vmem:[%s898_s22 + $0x2e0] sm:$0xff]  ;;  %437 = vmatprep.subr.mxu0 %v229_v6  ;;  %v291_v11 = vld [vmem:[%s898_s22 + $0x2d8] sm:$0xff]  ;;  %v290_v13 = vld [vmem:[%s898_s22 + $0x2d0] sm:$0xff] }
  0x15   : > { %508 = vmatprep.subr.mxu1 %v293_v7  ;;  %438 = vmatpush1.msra.mxu0 %v228_v8  ;;  %v225_v14 = vld [vmem:[%s898_s22 + $0xc8] sm:$0xff]  ;;  %v224_v16 = vld [vmem:[%s898_s22 + $0xc0] sm:$0xff]  ;;  %v223_v18 = vld [vmem:[%s898_s22 + $0xb8] sm:$0xff] }
  0x16   : > { %509 = vmatpush1.msra.mxu1 %v292_v9  ;;  %v289_v15 = vld [vmem:[%s898_s22 + $0x2c8] sm:$0xff]  ;;  %439 = vmatprep.subr.mxu0 %v227_v10  ;;  %v288_v17 = vld [vmem:[%s898_s22 + $0x2c0] sm:$0xff]  ;;  %v287_v19 = vld [vmem:[%s898_s22 + $0x2b8] sm:$0xff] }
  0x17   : > { %510 = vmatprep.subr.mxu1 %v291_v11  ;;  %440 = vmatpush1.msra.mxu0 %v226_v12  ;;  %v222_v20 = vld [vmem:[%s898_s22 + $0xb0] sm:$0xff]  ;;  %v221_v22 = vld [vmem:[%s898_s22 + $0xa8] sm:$0xff]  ;;  %v220_v24 = vld [vmem:[%s898_s22 + $0xa0] sm:$0xff] }
  0x18   : > { %511 = vmatpush1.msra.mxu1 %v290_v13  ;;  %441 = vmatprep.subr.mxu0 %v225_v14  ;;  %v286_v21 = vld [vmem:[%s898_s22 + $0x2b0] sm:$0xff]  ;;  %v285_v23 = vld [vmem:[%s898_s22 + $0x2a8] sm:$0xff]  ;;  %v284_v25 = vld [vmem:[%s898_s22 + $0x2a0] sm:$0xff] }
  0x19   : > { %512 = vmatprep.subr.mxu1 %v289_v15  ;;  %442 = vmatpush1.msra.mxu0 %v224_v16  ;;  %v219_v26 = vld [vmem:[%s898_s22 + $0x98] sm:$0xff]  ;;  %v218_v28 = vld [vmem:[%s898_s22 + $0x90] sm:$0xff]  ;;  %v217_v30 = vld [vmem:[%s898_s22 + $0x88] sm:$0xff] }
  0x1a   : > { %513 = vmatpush1.msra.mxu1 %v288_v17  ;;  %443 = vmatprep.subr.mxu0 %v223_v18  ;;  %v283_v27 = vld [vmem:[%s898_s22 + $0x298] sm:$0xff]  ;;  %v282_v29 = vld [vmem:[%s898_s22 + $0x290] sm:$0xff]  ;;  %v281_v31 = vld [vmem:[%s898_s22 + $0x288] sm:$0xff] }
  0x1b   : > { %514 = vmatprep.subr.mxu1 %v287_v19  ;;  %444 = vmatpush1.msra.mxu0 %v222_v20  ;;  %v216_v32 = vld [vmem:[%s898_s22 + $0x80] sm:$0xff]  ;;  %v215_v34 = vld [vmem:[%s898_s22 + $0x78] sm:$0xff]  ;;  %v214_v36 = vld [vmem:[%s898_s22 + $0x70] sm:$0xff] }
  0x1c   : > { %515 = vmatpush1.msra.mxu1 %v286_v21  ;;  %445 = vmatprep.subr.mxu0 %v221_v22  ;;  %v280_v33 = vld [vmem:[%s898_s22 + $0x280] sm:$0xff]  ;;  %v279_v35 = vld [vmem:[%s898_s22 + $0x278] sm:$0xff]  ;;  %v278_v37 = vld [vmem:[%s898_s22 + $0x270] sm:$0xff] }
  0x1d   : > { %516 = vmatprep.subr.mxu1 %v285_v23  ;;  %446 = vmatpush1.msra.mxu0 %v220_v24  ;;  %v213_v38 = vld [vmem:[%s898_s22 + $0x68] sm:$0xff]  ;;  %v212_v40 = vld [vmem:[%s898_s22 + $0x60] sm:$0xff]  ;;  %v211_v42 = vld [vmem:[%s898_s22 + $0x58] sm:$0xff] }
  0x1e   : > { %517 = vmatpush1.msra.mxu1 %v284_v25  ;;  %447 = vmatprep.subr.mxu0 %v219_v26  ;;  %v277_v39 = vld [vmem:[%s898_s22 + $0x268] sm:$0xff]  ;;  %v276_v41 = vld [vmem:[%s898_s22 + $0x260] sm:$0xff]  ;;  %v275_v43 = vld [vmem:[%s898_s22 + $0x258] sm:$0xff] }
  0x1f   : > { %518 = vmatprep.subr.mxu1 %v283_v27  ;;  %448 = vmatpush1.msra.mxu0 %v218_v28  ;;  %v210_v44 = vld [vmem:[%s898_s22 + $0x50] sm:$0xff]  ;;  %v209_v46 = vld [vmem:[%s898_s22 + $0x48] sm:$0xff]  ;;  %v208_v48 = vld [vmem:[%s898_s22 + $0x40] sm:$0xff] }
  0x20   : > { %519 = vmatpush1.msra.mxu1 %v282_v29  ;;  %449 = vmatprep.subr.mxu0 %v217_v30  ;;  %v274_v45 = vld [vmem:[%s898_s22 + $0x250] sm:$0xff]  ;;  %v273_v47 = vld [vmem:[%s898_s22 + $0x248] sm:$0xff]  ;;  %v272_v49 = vld [vmem:[%s898_s22 + $0x240] sm:$0xff] }
  0x21   : > { %520 = vmatprep.subr.mxu1 %v281_v31  ;;  %450 = vmatpush1.msra.mxu0 %v216_v32  ;;  %v207_v50 = vld [vmem:[%s898_s22 + $0x38] sm:$0xff]  ;;  %v206_v52 = vld [vmem:[%s898_s22 + $0x30] sm:$0xff]  ;;  %v205_v54 = vld [vmem:[%s898_s22 + $0x28] sm:$0xff] }
  0x22   : > { %521 = vmatpush1.msra.mxu1 %v280_v33  ;;  %451 = vmatprep.subr.mxu0 %v215_v34  ;;  %v271_v51 = vld [vmem:[%s898_s22 + $0x238] sm:$0xff]  ;;  %v270_v53 = vld [vmem:[%s898_s22 + $0x230] sm:$0xff]  ;;  %v269_v55 = vld [vmem:[%s898_s22 + $0x228] sm:$0xff] }
  0x23   : > { %522 = vmatprep.subr.mxu1 %v279_v35  ;;  %452 = vmatpush1.msra.mxu0 %v214_v36  ;;  %v204_v56 = vld [vmem:[%s898_s22 + $0x20] sm:$0xff]  ;;  %v203_v58 = vld [vmem:[%s898_s22 + $0x18] sm:$0xff]  ;;  %v202_v60 = vld [vmem:[%s898_s22 + $0x10] sm:$0xff] }
  0x24   : > { %523 = vmatpush1.msra.mxu1 %v278_v37  ;;  %453 = vmatprep.subr.mxu0 %v213_v38  ;;  %v268_v57 = vld [vmem:[%s898_s22 + $0x220] sm:$0xff]  ;;  %v267_v59 = vld [vmem:[%s898_s22 + $0x218] sm:$0xff]  ;;  %v266_v61 = vld [vmem:[%s898_s22 + $0x210] sm:$0xff] }
  0x25   : > { %524 = vmatprep.subr.mxu1 %v277_v39  ;;  %454 = vmatpush1.msra.mxu0 %v212_v40  ;;  %v201_v62 = vld [vmem:[%s898_s22 + $0x8] sm:$0xff]  ;;  %v200_v0 = vld [vmem:[%s898_s22] sm:$0xff]  ;;  %v263_v2 = vld [vmem:[%s898_s22 + $0x1f8] sm:$0xff]  ;;  %v398_v40 = vlaneseq }
  0x26   : > { %525 = vmatpush1.msra.mxu1 %v276_v41  ;;  %455 = vmatprep.subr.mxu0 %v211_v42  ;;  %v265_v63 = vld [vmem:[%s898_s22 + $0x208] sm:$0xff]  ;;  %v264_v1 = vld [vmem:[%s898_s22 + $0x200] sm:$0xff]  ;;  %v327_v3 = vld [vmem:[%s898_s22 + $0x3f8] sm:$0xff] }
  0x27   : > { %526 = vmatprep.subr.mxu1 %v275_v43  ;;  %456 = vmatpush1.msra.mxu0 %v210_v44  ;;  %v262_v4 = vld [vmem:[%s898_s22 + $0x1f0] sm:$0xff]  ;;  %v261_v6 = vld [vmem:[%s898_s22 + $0x1e8] sm:$0xff]  ;;  %v260_v8 = vld [vmem:[%s898_s22 + $0x1e0] sm:$0xff]  ;;  %vm763_vm1 = vcmp.lt.s32.totalorder %v398_v40, 256 }
  0x28   : > { %527 = vmatpush1.msra.mxu1 %v274_v45  ;;  %457 = vmatprep.subr.mxu0 %v209_v46  ;;  %v326_v5 = vld [vmem:[%s898_s22 + $0x3f0] sm:$0xff]  ;;  %v325_v7 = vld [vmem:[%s898_s22 + $0x3e8] sm:$0xff]  ;;  %v324_v9 = vld [vmem:[%s898_s22 + $0x3e0] sm:$0xff] }
  0x29   : > { %528 = vmatprep.subr.mxu1 %v273_v47  ;;  %458 = vmatpush1.msra.mxu0 %v208_v48  ;;  %v259_v10 = vld [vmem:[%s898_s22 + $0x1d8] sm:$0xff]  ;;  %v258_v12 = vld [vmem:[%s898_s22 + $0x1d0] sm:$0xff]  ;;  %v257_v14 = vld [vmem:[%s898_s22 + $0x1c8] sm:$0xff] }
  0x2a   : > { %529 = vmatpush1.msra.mxu1 %v272_v49  ;;  %459 = vmatprep.subr.mxu0 %v207_v50  ;;  %v323_v11 = vld [vmem:[%s898_s22 + $0x3d8] sm:$0xff]  ;;  %v322_v13 = vld [vmem:[%s898_s22 + $0x3d0] sm:$0xff]  ;;  %v321_v15 = vld [vmem:[%s898_s22 + $0x3c8] sm:$0xff]  ;;  %v1011_v49 = vshrl.u32 %v398_v40, 7 }
  0x2b   : > { %530 = vmatprep.subr.mxu1 %v271_v51  ;;  %460 = vmatpush1.msra.mxu0 %v206_v52  ;;  %v256_v16 = vld [vmem:[%s898_s22 + $0x1c0] sm:$0xff]  ;;  %v255_v18 = vld [vmem:[%s898_s22 + $0x1b8] sm:$0xff]  ;;  %v254_v20 = vld [vmem:[%s898_s22 + $0x1b0] sm:$0xff] }
  0x2c   : > { %531 = vmatpush1.msra.mxu1 %v270_v53  ;;  %461 = vmatprep.subr.mxu0 %v205_v54  ;;  %v320_v17 = vld [vmem:[%s898_s22 + $0x3c0] sm:$0xff]  ;;  %v319_v19 = vld [vmem:[%s898_s22 + $0x3b8] sm:$0xff]  ;;  %v318_v21 = vld [vmem:[%s898_s22 + $0x3b0] sm:$0xff] }
  0x2d   : > { %532 = vmatprep.subr.mxu1 %v269_v55  ;;  %462 = vmatpush1.msra.mxu0 %v204_v56  ;;  %v253_v22 = vld [vmem:[%s898_s22 + $0x1a8] sm:$0xff]  ;;  %v252_v24 = vld [vmem:[%s898_s22 + $0x1a0] sm:$0xff]  ;;  %v251_v26 = vld [vmem:[%s898_s22 + $0x198] sm:$0xff] }
  0x2e   : > { %533 = vmatpush1.msra.mxu1 %v268_v57  ;;  %463 = vmatprep.subr.mxu0 %v203_v58  ;;  %v317_v23 = vld [vmem:[%s898_s22 + $0x3a8] sm:$0xff]  ;;  %v316_v25 = vld [vmem:[%s898_s22 + $0x3a0] sm:$0xff]  ;;  %v315_v27 = vld [vmem:[%s898_s22 + $0x398] sm:$0xff]  ;;  %v404_v58 = vsub.s32 1, %v1011_v49 }
  0x2f   : > { %534 = vmatprep.subr.mxu1 %v267_v59  ;;  %464 = vmatpush1.msra.mxu0 %v202_v60  ;;  %v250_v28 = vld [vmem:[%s898_s22 + $0x190] sm:$0xff]  ;;  %v249_v30 = vld [vmem:[%s898_s22 + $0x188] sm:$0xff]  ;;  %v248_v32 = vld [vmem:[%s898_s22 + $0x180] sm:$0xff] }
  0x30   : > { %535 = vmatpush1.msra.mxu1 %v266_v61  ;;  %465 = vmatprep.subr.mxu0 %v201_v62  ;;  %v314_v29 = vld [vmem:[%s898_s22 + $0x390] sm:$0xff]  ;;  %v313_v31 = vld [vmem:[%s898_s22 + $0x388] sm:$0xff]  ;;  %v312_v33 = vld [vmem:[%s898_s22 + $0x380] sm:$0xff]  ;;  %v412_v62 = vsub.s32 3, %v1011_v49 }
  0x31   : > { %536 = vmatprep.subr.mxu1 %v265_v63  ;;  %466 = vmatpush1.msra.mxu0 %v200_v0  ;;  %v247_v34 = vld [vmem:[%s898_s22 + $0x178] sm:$0xff]  ;;  %v246_v36 = vld [vmem:[%s898_s22 + $0x170] sm:$0xff]  ;;  %v245_v38 = vld [vmem:[%s898_s22 + $0x168] sm:$0xff] }
  0x32   : > { %537 = vmatpush1.msra.mxu1 %v264_v1  ;;  %467 = vmatprep.subr.mxu0 %v263_v2  ;;  %v311_v35 = vld [vmem:[%s898_s22 + $0x378] sm:$0xff]  ;;  %v310_v37 = vld [vmem:[%s898_s22 + $0x370] sm:$0xff]  ;;  %v309_v39 = vld [vmem:[%s898_s22 + $0x368] sm:$0xff]  ;;  %v1033_v1 = vsub.s32 0, %v1011_v49  ;;  %v408_v2 = vsub.s32 2, %v1011_v49 }
  0x33   : > { %538 = vmatprep.subr.mxu1 %v327_v3  ;;  %468 = vmatpush2.msra.mxu0 %v262_v4  ;;  %v244_v41 = vld [vmem:[%s898_s22 + $0x160] sm:$0xff]  ;;  %v243_v43 = vld [vmem:[%s898_s22 + $0x158] sm:$0xff]  ;;  %v242_v45 = vld [vmem:[%s898_s22 + $0x150] sm:$0xff] }
  0x34   : > { %539 = vmatpush2.msra.mxu1 %v326_v5  ;;  %469 = vmatprep.subr.mxu0 %v261_v6  ;;  %v308_v42 = vld [vmem:[%s898_s22 + $0x360] sm:$0xff]  ;;  %v307_v44 = vld [vmem:[%s898_s22 + $0x358] sm:$0xff]  ;;  %v306_v46 = vld [vmem:[%s898_s22 + $0x350] sm:$0xff] }
  0x35   : > { %540 = vmatprep.subr.mxu1 %v325_v7  ;;  %470 = vmatpush2.msra.mxu0 %v260_v8  ;;  %v241_v47 = vld [vmem:[%s898_s22 + $0x148] sm:$0xff]  ;;  %v240_v50 = vld [vmem:[%s898_s22 + $0x140] sm:$0xff]  ;;  %v239_v52 = vld [vmem:[%s898_s22 + $0x138] sm:$0xff] }
  0x36   : > { %541 = vmatpush2.msra.mxu1 %v324_v9  ;;  %471 = vmatprep.subr.mxu0 %v259_v10  ;;  %v305_v48 = vld [vmem:[%s898_s22 + $0x348] sm:$0xff]  ;;  %v304_v51 = vld [vmem:[%s898_s22 + $0x340] sm:$0xff]  ;;  %v303_v53 = vld [vmem:[%s898_s22 + $0x338] sm:$0xff] }
  0x37   : > { %542 = vmatprep.subr.mxu1 %v323_v11  ;;  %472 = vmatpush2.msra.mxu0 %v258_v12  ;;  %v238_v54 = vld [vmem:[%s898_s22 + $0x130] sm:$0xff]  ;;  %v237_v56 = vld [vmem:[%s898_s22 + $0x128] sm:$0xff]  ;;  %v236_v59 = vld [vmem:[%s898_s22 + $0x120] sm:$0xff] }
  0x38   : > { %543 = vmatpush2.msra.mxu1 %v322_v13  ;;  %473 = vmatprep.subr.mxu0 %v257_v14  ;;  %v302_v55 = vld [vmem:[%s898_s22 + $0x330] sm:$0xff]  ;;  %v301_v57 = vld [vmem:[%s898_s22 + $0x328] sm:$0xff]  ;;  %v300_v60 = vld [vmem:[%s898_s22 + $0x320] sm:$0xff]  ;;  %v420_v13 = vsub.s32 5, %v1011_v49 }
  0x39   : > { %544 = vmatprep.subr.mxu1 %v321_v15  ;;  %474 = vmatpush2.msra.mxu0 %v256_v16  ;;  %v1027_v61 = vld [vmem:[%s1133_s1] sm:$0x7f]  ;;  %v235_v63 = vld [vmem:[%s898_s22 + $0x118] sm:$0xff]  ;;  %v234_v3 = vld [vmem:[%s898_s22 + $0x110] sm:$0xff] }
  0x3a   : > { %545 = vmatpush2.msra.mxu1 %v320_v17  ;;  %475 = vmatprep.subr.mxu0 %v255_v18  ;;  %v299_v0 = vld [vmem:[%s898_s22 + $0x318] sm:$0xff]  ;;  %v298_v4 = vld [vmem:[%s898_s22 + $0x310] sm:$0xff]  ;;  %v233_v5 = vld [vmem:[%s898_s22 + $0x108] sm:$0xff]  ;;  %v405_v7 = vrot.slane %v1027_v61, %v404_v58  ;;  %v413_v9 = vrot.slane %v1027_v61, %v412_v62  ;;  %v401_v11 = vrot.slane %v1027_v61, %v1033_v1  ;;  %v424_v18 = vsub.s32 6, %v1011_v49 }
  0x3b   : > { %546 = vmatprep.subr.mxu1 %v319_v19  ;;  %476 = vmatpush2.msra.mxu0 %v254_v20  ;;  %v297_v6 = vld [vmem:[%s898_s22 + $0x308] sm:$0xff]  ;;  %v232_v8 = vld [vmem:[%s898_s22 + $0x100] sm:$0xff]  ;;  %v409_v12 = vrot.slane %v1027_v61, %v408_v2  ;;  %v359_v14 = vld [vmem:[%s898_s22 + $0x4f8] sm:$0xff] }
  0x3c   : > { %547 = vmatpush2.msra.mxu1 %v318_v21  ;;  %477 = vmatprep.subr.mxu0 %v253_v22  ;;  %v296_v10 = vld [vmem:[%s898_s22 + $0x300] sm:$0xff]  ;;  %v395_v15 = vld [vmem:[%s898_s22 + $0x618] sm:$0xff]  ;;  %v358_v16 = vld [vmem:[%s898_s22 + $0x4f0] sm:$0xff]  ;;  %v421_v21 = vrot.slane %v1027_v61, %v420_v13 }
  0x3d   : > { %548 = vmatprep.subr.mxu1 %v317_v23  ;;  %478 = vmatpush2.msra.mxu0 %v252_v24  ;;  %v394_v17 = vld [vmem:[%s898_s22 + $0x610] sm:$0xff]  ;;  %v357_v19 = vld [vmem:[%s898_s22 + $0x4e8] sm:$0xff]  ;;  %v356_v22 = vld [vmem:[%s898_s22 + $0x4e0] sm:$0xff] }
  0x3e   : > { %549 = vmatpush2.msra.mxu1 %v316_v25  ;;  %479 = vmatprep.subr.mxu0 %v251_v26  ;;  %v393_v20 = vld [vmem:[%s898_s22 + $0x608] sm:$0xff]  ;;  %v355_v23 = vld [vmem:[%s898_s22 + $0x4d8] sm:$0xff]  ;;  %v392_v24 = vld [vmem:[%s898_s22 + $0x600] sm:$0xff]  ;;  %v425_v26 = vrot.slane %v1027_v61, %v424_v18 }
  0x3f   : > { %550 = vmatprep.subr.mxu1 %v315_v27  ;;  %480 = vmatpush2.msra.mxu0 %v250_v28  ;;  %v354_v25 = vld [vmem:[%s898_s22 + $0x4d0] sm:$0xff]  ;;  %v353_v27 = vld [vmem:[%s898_s22 + $0x4c8] sm:$0xff]  ;;  %v352_v28 = vld [vmem:[%s898_s22 + $0x4c0] sm:$0xff] }
  0x40   : > { %551 = vmatpush2.msra.mxu1 %v314_v29  ;;  %481 = vmatprep.subr.mxu0 %v249_v30  ;;  %v351_v29 = vld [vmem:[%s898_s22 + $0x4b8] sm:$0xff]  ;;  %v850_v30 = vmov 0.0   ;;  %v328_v58 = vld [vmem:[%s898_s22 + $0x400] sm:$0xff]  ;;  %v389_v62 = vld [vmem:[%s898_s22 + $0x5e8] sm:$0xff] }
  0x41   : > { %552 = vmatprep.subr.mxu1 %v313_v31  ;;  %482 = vmatpush2.msra.mxu0 %v248_v32  ;;  %v719_v31 = vld [vmem:[#allocation2] sm:$0x1]  ;;  %v350_v32 = vld [vmem:[%s898_s22 + $0x4b0] sm:$0xff]  ;;  %v375_v13 = vld [vmem:[%s898_s22 + $0x578] sm:$0xff] }
  0x42   : > { %553 = vmatpush2.msra.mxu1 %v312_v33  ;;  %483 = vmatprep.subr.mxu0 %v247_v34  ;;  %v349_v33 = vld [vmem:[%s898_s22 + $0x4a8] sm:$0xff]  ;;  %v851_v34 = vmov 0   ;;  %v386_v2 = vld [vmem:[%s898_s22 + $0x5d0] sm:$0xff] }
  0x43   : > { %554 = vmatprep.subr.mxu1 %v311_v35  ;;  %484 = vmatpush2.msra.mxu0 %v246_v36  ;;  %v348_v35 = vld [vmem:[%s898_s22 + $0x4a0] sm:$0xff]  ;;  %v347_v36 = vld [vmem:[%s898_s22 + $0x498] sm:$0xff]  ;;  %v370_v18 = vld [vmem:[%s898_s22 + $0x550] sm:$0xff] }
  0x44   : > { %555 = vmatpush2.msra.mxu1 %v310_v37  ;;  %485 = vmatprep.subr.mxu0 %v245_v38  ;;  %v731_v37 = vld [vmem:[#allocation3] sm:$0x1]  ;;  %v346_v38 = vld [vmem:[%s898_s22 + $0x490] sm:$0xff] }
  0x45   : > { %556 = vmatprep.subr.mxu1 %v309_v39  ;;  %486 = vmatpush2.msra.mxu0 %v244_v41  ;;  %v345_v39 = vld [vmem:[%s898_s22 + $0x488] sm:$0xff]  ;;  %v344_v41 = vld [vmem:[%s898_s22 + $0x480] sm:$0xff] }
  0x46   : > { %557 = vmatpush2.msra.mxu1 %v308_v42  ;;  %487 = vmatprep.subr.mxu0 %v243_v43  ;;  %v343_v42 = vld [vmem:[%s898_s22 + $0x478] sm:$0xff]  ;;  %v342_v43 = vld [vmem:[%s898_s22 + $0x470] sm:$0xff] }
  0x47   : > { %558 = vmatprep.subr.mxu1 %v307_v44  ;;  %488 = vmatpush2.msra.mxu0 %v242_v45  ;;  %v341_v44 = vld [vmem:[%s898_s22 + $0x468] sm:$0xff]  ;;  %v340_v45 = vld [vmem:[%s898_s22 + $0x460] sm:$0xff] }
  0x48   : > { %559 = vmatpush2.msra.mxu1 %v306_v46  ;;  %489 = vmatprep.subr.mxu0 %v241_v47  ;;  %v339_v46 = vld [vmem:[%s898_s22 + $0x458] sm:$0xff]  ;;  %v338_v47 = vld [vmem:[%s898_s22 + $0x450] sm:$0xff] }
  0x49   : > { %560 = vmatprep.subr.mxu1 %v305_v48  ;;  %490 = vmatpush2.msra.mxu0 %v240_v50  ;;  %v337_v48 = vld [vmem:[%s898_s22 + $0x448] sm:$0xff]  ;;  %v336_v50 = vld [vmem:[%s898_s22 + $0x440] sm:$0xff] }
  0x4a   : > { %561 = vmatpush2.msra.mxu1 %v304_v51  ;;  %491 = vmatprep.subr.mxu0 %v239_v52  ;;  %v335_v51 = vld [vmem:[%s898_s22 + $0x438] sm:$0xff]  ;;  %v334_v52 = vld [vmem:[%s898_s22 + $0x430] sm:$0xff] }
  0x4b   : > { %562 = vmatprep.subr.mxu1 %v303_v53  ;;  %492 = vmatpush2.msra.mxu0 %v238_v54  ;;  %v333_v53 = vld [vmem:[%s898_s22 + $0x428] sm:$0xff]  ;;  %v332_v54 = vld [vmem:[%s898_s22 + $0x420] sm:$0xff] }
  0x4c   : > { %563 = vmatpush2.msra.mxu1 %v302_v55  ;;  %493 = vmatprep.subr.mxu0 %v237_v56  ;;  %v331_v55 = vld [vmem:[%s898_s22 + $0x418] sm:$0xff]  ;;  %v330_v56 = vld [vmem:[%s898_s22 + $0x410] sm:$0xff] }
  0x4d   : > { %564 = vmatprep.subr.mxu1 %v301_v57  ;;  %494 = vmatpush2.msra.mxu0 %v236_v59  ;;  %v329_v57 = vld [vmem:[%s898_s22 + $0x408] sm:$0xff]  ;;  %v391_v59 = vld [vmem:[%s898_s22 + $0x5f8] sm:$0xff] }
  0x4e   : > { %565 = vmatpush2.msra.mxu1 %v300_v60  ;;  %495 = vmatprep.subr.mxu0 %v235_v63  ;;  %v390_v60 = vld [vmem:[%s898_s22 + $0x5f0] sm:$0xff]  ;;  %v388_v63 = vld [vmem:[%s898_s22 + $0x5e0] sm:$0xff] }
  0x4f   : > { %566 = vmatprep.subr.mxu1 %v299_v0  ;;  %496 = vmatpush2.msra.mxu0 %v234_v3  ;;  %v387_v0 = vld [vmem:[%s898_s22 + $0x5d8] sm:$0xff]  ;;  %v385_v3 = vld [vmem:[%s898_s22 + $0x5c8] sm:$0xff] }
  0x50   : > { %567 = vmatpush2.msra.mxu1 %v298_v4  ;;  %497 = vmatprep.subr.mxu0 %v233_v5  ;;  %v384_v4 = vld [vmem:[%s898_s22 + $0x5c0] sm:$0xff]  ;;  %v383_v5 = vld [vmem:[%s898_s22 + $0x5b8] sm:$0xff] }
  0x51   : > { %568 = vmatprep.subr.mxu1 %v297_v6  ;;  %498 = vmatpush2.msra.mxu0 %v232_v8  ;;  %v382_v6 = vld [vmem:[%s898_s22 + $0x5b0] sm:$0xff]  ;;  %v380_v8 = vld [vmem:[%s898_s22 + $0x5a0] sm:$0xff] }
  0x52   : > { %499 = vmatprep.mubr.f32.mxu0 %v405_v7  ;;  %569 = vmatpush2.msra.mxu1 %v296_v10  ;;  %v381_v7 = vld [vmem:[%s898_s22 + $0x5a8] sm:$0xff]  ;;  %v378_v10 = vld [vmem:[%s898_s22 + $0x590] sm:$0xff] }
  0x53   : > { %570 = vmatprep.mubr.f32.mxu1 %v413_v9  ;;  %500 = vmatmul.mubr.f32.vlgmr.msra.gmra.mxu0 %v401_v11  ;;  %v379_v9 = vld [vmem:[%s898_s22 + $0x598] sm:$0xff]  ;;  %v377_v11 = vld [vmem:[%s898_s22 + $0x588] sm:$0xff] }
  0x54   : > { %571 = vmatmul.mubr.f32.vlgmr.msra.gmra.mxu1 %v409_v12  ;;  %577 = vmatprep.subr.mxu0 %v359_v14  ;;  %v376_v12 = vld [vmem:[%s898_s22 + $0x580] sm:$0xff]  ;;  %v374_v14 = vld [vmem:[%s898_s22 + $0x570] sm:$0xff] }
  0x55   : > { %676 = vmatprep.subr.mxu1 %v395_v15  ;;  %578 = vmatpush1.msra.mxu0 %v358_v16  ;;  %v373_v15 = vld [vmem:[%s898_s22 + $0x568] sm:$0xff]  ;;  %v372_v16 = vld [vmem:[%s898_s22 + $0x560] sm:$0xff] }
  0x56   : > { %677 = vmatpush1.msra.mxu1 %v394_v17  ;;  %579 = vmatprep.subr.mxu0 %v357_v19  ;;  %v371_v17 = vld [vmem:[%s898_s22 + $0x558] sm:$0xff]  ;;  %v369_v19 = vld [vmem:[%s898_s22 + $0x548] sm:$0xff] }
  0x57   : > { %678 = vmatprep.subr.mxu1 %v393_v20  ;;  %580 = vmatpush1.msra.mxu0 %v356_v22  ;;  %v368_v20 = vld [vmem:[%s898_s22 + $0x540] sm:$0xff]  ;;  %v366_v22 = vld [vmem:[%s898_s22 + $0x530] sm:$0xff] }
  0x58   : > { %641 = vmatprep.mubr.f32.mxu0 %v421_v21  ;;  %581 = vmatprep.subr.mxu0 %v355_v23  ;;  %v367_v21 = vld [vmem:[%s898_s22 + $0x538] sm:$0xff]  ;;  %v365_v23 = vld [vmem:[%s898_s22 + $0x528] sm:$0xff] }
  0x59   : > { %679 = vmatpush1.msra.mxu1 %v392_v24  ;;  %582 = vmatpush1.msra.mxu0 %v354_v25  ;;  %v364_v24 = vld [vmem:[%s898_s22 + $0x520] sm:$0xff]  ;;  %v416_v25 = vsub.s32 4, %v1011_v49 }
  0x5a   : > { %712 = vmatprep.mubr.f32.mxu1 %v850_v30  ;;  %583 = vmatprep.subr.mxu0 %v353_v27  ;;  %v362_v27 = vld [vmem:[%s898_s22 + $0x510] sm:$0xff] }
  0x5b   : > { %826 = vmatmul.mubr.msk.f32.vlgmr.msra.gmra.mxu1 %vm432_vm0, %v425_v26  ;;  %584 = vmatpush1.msra.mxu0 %v352_v28  ;;  %v363_v26 = vld [vmem:[%s898_s22 + $0x518] sm:$0xff]  ;;  %v361_v28 = vld [vmem:[%s898_s22 + $0x508] sm:$0xff]  ;;  %v417_v30 = vrot.slane %v1027_v61, %v416_v25 }
  0x5c   : > { %841 = vset.pattern.permute.xlu0 %v851_v34  ;;  %585 = vmatprep.subr.mxu0 %v351_v29  ;;  %v360_v29 = vld [vmem:[%s898_s22 + $0x500] sm:$0xff] }
  0x5d   : > { %722 = vperm.xlu0 %841, %v719_v31   ;;  %586 = vmatpush1.msra.mxu0 %v350_v32 }
  0x5e   : > { %587 = vmatprep.subr.mxu0 %v349_v33 }
  0x5f   : > { %588 = vmatpush1.msra.mxu0 %v348_v35 }
  0x60   : > { %589 = vmatprep.subr.mxu0 %v347_v36 }
  0x61   : > { %734 = vperm.xlu0 %841, %v731_v37   ;;  %590 = vmatpush1.msra.mxu0 %v346_v38 }
  0x62   : > { %591 = vmatprep.subr.mxu0 %v345_v39 }
  0x63   : > { %592 = vmatpush1.msra.mxu0 %v344_v41 }
  0x64   : > { %593 = vmatprep.subr.mxu0 %v343_v42 }
  0x65   : > { %594 = vmatpush1.msra.mxu0 %v342_v43  ;;  %v852_v43 = vmov 1966171168  }
  0x66   : > { %595 = vmatprep.subr.mxu0 %v341_v44  ;;  %v747_v44 = vunpack.c.l.s4 %v852_v43 }
  0x67   : > { %596 = vmatpush1.msra.mxu0 %v340_v45 }
  0x68   : > { %597 = vmatprep.subr.mxu0 %v339_v46 }
  0x69   : > { %598 = vmatpush1.msra.mxu0 %v338_v47 }
  0x6a   : > { %599 = vmatprep.subr.mxu0 %v337_v48 }
  0x6b   : > { %600 = vmatpush1.msra.mxu0 %v336_v50 }
  0x6c   : > { %601 = vmatprep.subr.mxu0 %v335_v51 }
  0x6d   : > { %602 = vmatpush1.msra.mxu0 %v334_v52  ;;  %v748_v52 = vunpack.c.0.s8 %v747_v44 }
  0x6e   : > { %603 = vmatprep.subr.mxu0 %v333_v53 }
  0x6f   : > { %604 = vmatpush1.msra.mxu0 %v332_v54 }
  0x70   : > { %605 = vmatprep.subr.mxu0 %v331_v55 }
  0x71   : > { %606 = vmatpush1.msra.mxu0 %v330_v56 }
  0x72   : > { %607 = vmatprep.subr.mxu0 %v329_v57  ;;  %v751_v57 = vsub.s32 %v748_v52, %v1011_v49 }
  0x73   : > { %608 = vmatpush1.msra.mxu0 %v328_v58 }
  0x74   : > { %609 = vmatprep.subr.mxu0 %v391_v59 }
  0x75   : > { %610 = vmatpush2.msra.mxu0 %v390_v60 }
  0x76   : > { %611 = vmatprep.subr.mxu0 %v389_v62 }
  0x77   : > { %612 = vmatpush2.msra.mxu0 %v388_v63 }
  0x78   : > { %613 = vmatprep.subr.mxu0 %v387_v0 }
  0x79   : > { %614 = vmatpush2.msra.mxu0 %v386_v2 }
  0x7a   : > { %615 = vmatprep.subr.mxu0 %v385_v3 }
  0x7b   : > { %616 = vmatpush2.msra.mxu0 %v384_v4 }
  0x7c   : > { %617 = vmatprep.subr.mxu0 %v383_v5 }
  0x7d   : > { %618 = vmatpush2.msra.mxu0 %v382_v6 }
  0x7e   : > { %619 = vmatprep.subr.mxu0 %v381_v7 }
  0x7f   : > { %620 = vmatpush2.msra.mxu0 %v380_v8 }
  0x80   : > { %621 = vmatprep.subr.mxu0 %v379_v9 }
  0x81   : > { %622 = vmatpush2.msra.mxu0 %v378_v10 }
  0x82   : > { %623 = vmatprep.subr.mxu0 %v377_v11 }
  0x83   : > { %624 = vmatpush2.msra.mxu0 %v376_v12 }
  0x84   : > { %625 = vmatprep.subr.mxu0 %v375_v13 }
  0x85   : > { %626 = vmatpush2.msra.mxu0 %v374_v14 }
  0x86   : > { %627 = vmatprep.subr.mxu0 %v373_v15 }
  0x87   : > { %628 = vmatpush2.msra.mxu0 %v372_v16 }
  0x88   : > { %629 = vmatprep.subr.mxu0 %v371_v17 }
  0x89   : > { %630 = vmatpush2.msra.mxu0 %v370_v18 }
  0x8a   : > { %631 = vmatprep.subr.mxu0 %v369_v19 }
  0x8b   : > { %632 = vmatpush2.msra.mxu0 %v368_v20 }
  0x8c   : > { %633 = vmatprep.subr.mxu0 %v367_v21 }
  0x8d   : > { %634 = vmatpush2.msra.mxu0 %v366_v22 }
  0x8e   : > { %635 = vmatprep.subr.mxu0 %v365_v23 }
  0x8f   : > { %636 = vmatpush2.msra.mxu0 %v364_v24 }
  0x90   : > { %637 = vmatprep.subr.mxu0 %v363_v26 }
  0x91   : > { %638 = vmatpush2.msra.mxu0 %v362_v27 }
  0x92   : > { %639 = vmatprep.subr.mxu0 %v361_v28 }
  0x93   : > { %640 = vmatpush2.msra.mxu0 %v360_v29 }
  0x94   : > { %642 = vmatmul.mubr.f32.vlgmr.msra.gmra.mxu0 %v417_v30 }
  0xd8   : > { %v723_v33 = vpop.permute.xlu0 %722 }
  0xd9   : > { %v728_v41 = vrot.slane %v723_v33, %v1033_v1 }
  0xdc   : > { %v735_v47 = vpop.permute.xlu0 %734 }
  0xdd   : > { %v740_v53 = vrot.slane %v735_v47, %v1033_v1 }
 0x113   : > { %v501_v31 = vpop.f32.mrf.mxu0 }
 0x114   : > { %v572_v32 = vpop.f32.mrf.mxu1 }
 0x115   : > { %v503_v34 = vpop.f32.mrf.mxu0  ;;  %v573_v36 = vadd.f32 %v572_v32, %v501_v31 }
 0x116   : > { %v574_v35 = vpop.f32.mrf.mxu1 }
 0x117   : > { %v575_v39 = vadd.f32 %v574_v35, %v503_v34 }
 0x11b   : > { %v714_v38 = vpop.f32.mrf.mxu1 }
 0x11d   : > { %v716_v48 = vpop.f32.mrf.mxu1 }
 0x154   : > { %v643_v37 = vpop.f32.mrf.mxu0 }
 0x155   : > { %v644_v42 = vadd.f32 %v643_v37, %v573_v36 }
 0x156   : > { %v645_v61 = vpop.f32.mrf.mxu0 }
 0x157   : > { %v715_v45 = vadd.f32 %v714_v38, %v644_v42  ;;  %v646_v46 = vadd.f32 %v645_v61, %v575_v39 }
 0x159   : > { %v729_v50 = vmul.f32 %v728_v41, %v715_v45  ;;  %v717_v51 = vadd.f32 %v716_v48, %v646_v46 }
 0x15b   : > { %v730_v54 = vmul.f32 %v728_v41, %v717_v51  ;;  %v741_v55 = vadd.f32 %v740_v53, %v729_v50 }
 0x15d   : > { %v742_v56 = vadd.f32 %v740_v53, %v730_v54 }
 0x15f   : > { %v745_v58 = vcombine.low %v741_v55, %v742_v56 }
 0x161   : > { %v752_v59 = vrot.slane %v745_v58, %v751_v57 }
 0x163   : > { %v759_v60 = vrot.slane %v752_v59, %v751_v57 }
 0x165   : > { %765 = vst.msk [vmem:[%s199_s28] sm:$0x3] %vm763_vm1, %v759_v60 }
 0x166 PF: > { %s18_s19 = sadd.s32 1, %s848_s19  }
 0x167   : > { %p15_p4 = scmp.ge.s32.totalorder %s18_s19, 4  }
 0x169   :  { %17 = sbr.rel (!%p15_p4) target bundleno = 3 (0x3), region = 66 }

// kernel: _lambda_.59
= control target key start
LH: loop header
LB: loop body
LE: loop exit
PB: predicated region body
PF: predicated region fallthrough
CT: control target
= control target key end

     0   :  { %s414_s15 = smov 0   ;;  %s440_s0 = inlined_call_operand.vmem [shape: f32[2,16,256], index: 0, kind: input, shape index: {}]   ;;  %s441_s1 = inlined_call_operand.vmem [shape: f32[3,16], index: 1, kind: input, shape index: {}]   ;;  %s442_s2 = inlined_call_operand.vmem [shape: f32[3,1], index: 2, kind: input, shape index: {}]   ;;  %s443_s3 = inlined_call_operand.vmem [shape: f32[3,1], index: 3, kind: input, shape index: {}]   ;;  %s444_s4 = inlined_call_operand.vmem [shape: f32[2,3,256], index: 4, kind: output, shape index: {}]  }
   0x1 LB: > { %s354_s16 = sadd.s32 4294967295, %s385_s15   ;;  %p358_p0 = scmp.ge.s32.totalorder %s385_s15, 1  ;;  %s385_s15 = sphi %s414_s15, %s14_s15  }
   0x2   : > { %p162_p1 = scmp.lt.s32.totalorder %s385_s15, 3 }
   0x4   : > { %p163_p2 = pnand %p358_p0, %p162_p1 }
   0x5   : > { %p188_p3 = scmp.lt.s32.totalorder (!%p163_p2), %s354_s16, 1 }
   0x6   : > { %166 = sbr.rel (%p163_p2) target bundleno = 221 (0xdd), region = 36 }
   0xb   : > { %v387_v0 = vmov 0.0   ;;  %v388_v1 = vmov 0   ;;  %v278_v2 = vld [vmem:[%s442_s2] sm:$0x7]  ;;  %s446_s16 = smov (!%p188_p3, %s354_s16), 1  ;;  %vm203_vm0 = vcmask 130048  }
   0xc   : > { %271 = vmatprep.mubr.f32.mxu0 %v387_v0  ;;  %378 = vset.pattern.permute.xlu0 %v388_v1  ;;  %v286_v3 = vld [vmem:[%s443_s3] sm:$0x7]  ;;  %s366_s21 = sshll.u32 %s446_s16, 5  ;;  %s367_s27 = sshll.u32 %s446_s16, 3 }
   0xd   : > { %281 = vperm.xlu0 %378, %v278_v2   ;;  %s192_s24 = scalar_lea.vmem %s440_s0, %s366_s21  ;;  %v202_v8 = vld [vmem:[%s441_s1] sm:$0x7]  ;;  %s197_s30 = scalar_lea.vmem %s444_s4, %s367_s27 }
   0xe   : > { %v201_v4 = vld [vmem:[%s192_s24 + $0x18] sm:$0xff]  ;;  %v200_v5 = vld [vmem:[%s192_s24 + $0x10] sm:$0xff]  ;;  %v199_v6 = vld [vmem:[%s192_s24 + $0x8] sm:$0xff] }
   0xf   : > { %235 = vmatprep.subr.mxu0 %v201_v4  ;;  %v198_v7 = vld [vmem:[%s192_s24] sm:$0xff] }
  0x10   : > { %236 = vmatpush1.msra.mxu0 %v200_v5 }
  0x11   : > { %289 = vperm.xlu0 %378, %v286_v3   ;;  %237 = vmatprep.subr.mxu0 %v199_v6 }
  0x12   : > { %238 = vmatpush1.msra.mxu0 %v198_v7 }
  0x13   : > { %363 = vmatmul.mubr.msk.f32.vlgmr.msra.gmra.mxu0 %vm203_vm0, %v202_v8 }
  0x88   : > { %v282_v9 = vpop.permute.xlu0 %281 }
  0x8c   : > { %v290_v14 = vpop.permute.xlu0 %289 }
  0xd3   : > { %v273_v10 = vpop.f32.mrf.mxu0 }
  0xd4   : > { %v284_v11 = vmul.f32 %v282_v9, %v273_v10 }
  0xd5   : > { %v275_v12 = vpop.f32.mrf.mxu0 }
  0xd6   : > { %v285_v13 = vmul.f32 %v282_v9, %v275_v12  ;;  %v292_v15 = vadd.f32 %v290_v14, %v284_v11 }
  0xd8   : > { %v293_v16 = vadd.f32 %v290_v14, %v285_v13 }
  0xda   : > { %v296_v17 = vcombine.low %v292_v15, %v293_v16 }
  0xdc   : > { %298 = vst [vmem:[%s197_s30] sm:$0x77] %v296_v17 }
  0xdd PF: > { %s14_s15 = sadd.s32 1, %s385_s15  }
  0xde   : > { %p11_p4 = scmp.ge.s32.totalorder %s14_s15, 4  }
  0xe0   :  { %13 = sbr.rel (!%p11_p4) target bundleno = 1 (0x1), region = 66 }

</bundles_post_ra>
